<compile_context>
chip_gen: v7x
topology: tpu7x:2x2x1
jax: 0.10.0
libtpu: 0.0.40
codegen_flags: <defaults>
</compile_context>

<pallas_src>
import numpy as np
import jax
import jax.numpy as jnp
from jax.experimental import pallas as pl
from jax.experimental.pallas import tpu as pltpu


def _same_pad(kernel_size):
    return kernel_size // 2


def _round_up(x, m):
    return ((x + m - 1) // m) * m


def _make_kernel(*, num_conv_blocks, kernel_size, valid_len, TL, Hpad, W, Cout_p):
    P = _same_pad(kernel_size)
    K = kernel_size

    def dw_conv(x, wd):
        # x: (W, C) f32, wd: (K, C) f32 taps; out[l, c] = sum_k x[l+k-P, c]*wd[k, c].
        # pltpu.roll wrap-around only corrupts the outer num_conv_blocks*P halo
        # rows, which never feed the central TL output rows.
        acc = x * wd[P:P + 1, :]
        for k in range(K):                       # static unroll (small K here)
            if k == P:
                continue
            d = k - P
            sh = pltpu.roll(x, shift=(-d) % W, axis=0)
            acc = acc + sh * wd[k:k + 1, :]
        return acc

    def kernel(x_hbm, *rest):
        # rest = per-block (wd, wp_folded_bf16, bias) * num_conv_blocks,
        #        residual (wp_folded_bf16, bias), output ref, then scratch.
        *wrefs, o_ref, xbuf, sem = rest
        b = pl.program_id(0)
        t = pl.program_id(1)
        n_t = pl.num_programs(1)

        def copy_in(tt, slot):
            start = pl.multiple_of(tt * TL, 8)
            return pltpu.make_async_copy(
                x_hbm.at[b, pl.ds(start, W)], xbuf.at[slot], sem.at[slot])

        # Manual double-buffered halo DMA: prime at t == 0, prefetch t+1 while
        # computing t.  (Time axis is "arbitrary" so order is sequential.)
        @pl.when(t == 0)
        def _():
            copy_in(t, 0).start()

        slot = t % 2
        copy_in(t, slot).wait()

        @pl.when(t + 1 < n_t)
        def _():
            copy_in(t + 1, 1 - slot).start()

        x_bf = xbuf[slot]                               # (W, Cin_p) bf16
        out = x_bf.astype(jnp.float32)

        # One validity mask per tile: global positions outside [0, valid_len)
        # must behave as zeros at every conv-block input ('same' zero padding).
        if num_conv_blocks > 1:
            rows = jax.lax.broadcasted_iota(jnp.int32, (W, Cout_p), 0)
            pos = rows + (t * TL - Hpad)
            valid = jnp.logical_and(pos >= 0, pos < valid_len)

        idx = 0
        for i in range(num_conv_blocks):
            wd = wrefs[idx][...]                        # (K, C) f32
            wp = wrefs[idx + 1][...]                    # (C, Cout_p) bf16, BN folded
            bi = wrefs[idx + 2][...]                    # (1, Cout_p) f32
            idx += 3
            if i > 0:
                out = jnp.where(valid, out, 0.0)        # re-zero invalid rows
            acc = dw_conv(out, wd)                      # f32 accumulate
            if i + 1 == num_conv_blocks:
                acc = acc[Hpad:Hpad + TL, :]            # halo no longer needed
            out = jnp.dot(acc.astype(jnp.bfloat16), wp,
                          preferred_element_type=jnp.float32) + bi
            if i + 1 < num_conv_blocks:
                out = jnp.maximum(out, 0.0)             # ReLU (all but last block)

        wpr = wrefs[idx][...]                           # residual pointwise (bf16)
        bir = wrefs[idx + 1][...]
        res = jnp.dot(x_bf[Hpad:Hpad + TL, :], wpr,     # central rows only
                      preferred_element_type=jnp.float32) + bir

        o_ref[0] = jnp.maximum(out + res, 0.0).astype(o_ref.dtype)

    return kernel


def quartznet_block_pallas(x, params, *, kernel_size, num_conv_blocks,
                           time_tile=512):
    """x: (B, L, Cin) float32 -> (B, L, Cout) float32 (eval-mode BatchNorm)."""
    assert kernel_size % 2 == 1, "only odd kernel_size ('same' padding) supported"
    assert num_conv_blocks >= 1
    B, L, Cin = x.shape
    Cout = params["res"]["wp"].shape[1]

    LANE, SUB = 128, 8
    Cin_p = _round_up(Cin, LANE)
    Cout_p = _round_up(Cout, LANE)

    P = _same_pad(kernel_size)
    H = num_conv_blocks * P                    # halo needed by the chained convs
    Hpad = _round_up(H, SUB)                   # sublane-aligned halo slices
    TL = min(_round_up(max(time_tile, SUB), SUB), _round_up(L, SUB))
    nT = pl.cdiv(L, TL)
    Lt = nT * TL                               # tiled time extent
    W = TL + 2 * Hpad                          # rows fetched per tile (with halo)

    # bf16 activation stream: halves HBM traffic and the input double buffer.
    xp = jnp.pad(x.astype(jnp.bfloat16),
                 ((0, 0), (Hpad, Lt - L + Hpad), (0, Cin_p - Cin)))

    # BN scale folded into the pointwise weights; kernel only adds a bias.
    weights = []
    cur, cur_p = Cin, Cin_p
    for blk in params["blocks"]:
        wd = jnp.pad(blk["wd"], ((0, 0), (0, cur_p - cur))).astype(jnp.float32)
        wp_f = blk["wp"] * blk["scale"]
        wp_f = jnp.pad(wp_f, ((0, cur_p - cur), (0, Cout_p - Cout))).astype(jnp.bfloat16)
        bi = jnp.pad(blk["bias"], ((0, 0), (0, Cout_p - Cout))).astype(jnp.float32)
        weights += [wd, wp_f, bi]
        cur, cur_p = Cout, Cout_p
    wpr = params["res"]["wp"] * params["res"]["scale"]
    wpr = jnp.pad(wpr, ((0, Cin_p - Cin), (0, Cout_p - Cout))).astype(jnp.bfloat16)
    bir = jnp.pad(params["res"]["bias"], ((0, 0), (0, Cout_p - Cout))).astype(jnp.float32)
    weights += [wpr, bir]

    kernel = _make_kernel(num_conv_blocks=num_conv_blocks, kernel_size=kernel_size,
                          valid_len=L, TL=TL, Hpad=Hpad, W=W, Cout_p=Cout_p)

    # Advisory cost estimate for XLA's scheduler.
    flops = 2 * B * Lt * Cin_p * Cout_p                  # residual pointwise
    c = Cin_p
    for i in range(num_conv_blocks):
        flops += 2 * B * nT * W * kernel_size * c        # depthwise MACs
        rows = TL if i + 1 == num_conv_blocks else W
        flops += 2 * B * nT * rows * c * Cout_p          # pointwise matmul
        c = Cout_p
    w_bytes = sum(int(w.size) * w.dtype.itemsize for w in weights)
    bytes_accessed = int(xp.size) * 2 + B * Lt * Cout_p * 4 + w_bytes

    # VMEM limit derived from the tile footprint, capped below physical VMEM.
    foot = (2 * W * Cin_p * 2                  # double-buffered input halo tile
            + 2 * TL * Cout_p * 4              # double-buffered output tile
            + 2 * w_bytes                      # weights (worst case 2 buffers)
            + 6 * W * max(Cin_p, Cout_p) * 4)  # live slab temporaries
    try:
        vmem_cap = int(pltpu.get_tpu_info().vmem_capacity_bytes)
    except Exception:                          # query unavailable -> assume v7x
        vmem_cap = 64 * 1024 * 1024
    vmem_limit = int(min(max(32 * 1024 * 1024, 2 * foot), vmem_cap * 3 // 4))

    def run(single_buffer_weights):
        def w_spec(shape):
            kw = {}
            if single_buffer_weights:
                kw["pipeline_mode"] = pl.Buffered(1)     # constant index map
            return pl.BlockSpec(shape, lambda b, t, nd=len(shape): (0,) * nd, **kw)

        in_specs = [pl.BlockSpec(memory_space=pl.ANY)]   # raw HBM; manual halo DMA
        in_specs += [w_spec(w.shape) for w in weights]

        return pl.pallas_call(
            kernel,
            out_shape=jax.ShapeDtypeStruct((B, Lt, Cout_p), jnp.float32),
            grid_spec=pltpu.PrefetchScalarGridSpec(
                num_scalar_prefetch=0,
                grid=(B, nT),
                in_specs=in_specs,
                out_specs=pl.BlockSpec((1, TL, Cout_p), lambda b, t: (b, t, 0)),
                scratch_shapes=[pltpu.VMEM((2, W, Cin_p), jnp.bfloat16),
                                pltpu.SemaphoreType.DMA((2,))]),
            compiler_params=pltpu.CompilerParams(
                # Batch is megacore-parallel; the halo prefetch chain needs the
                # time axis to stay sequential within a core.
                dimension_semantics=("parallel", "arbitrary"),
                vmem_limit_bytes=vmem_limit),
            cost_estimate=pl.CostEstimate(flops=int(flops), transcendentals=0,
                                          bytes_accessed=int(bytes_accessed)),
        )(xp, *weights)

    try:
        out = run(single_buffer_weights=True)
    except Exception:
        # TODO(synk): JAX versions without BlockSpec pipeline_mode / Buffered(1)
        # support fall back to default (double-buffered) weight blocks.
        out = run(single_buffer_weights=False)

    return out[:, :L, :Cout]


def init_params(key, in_channels, out_channels, kernel_size, num_conv_blocks):
    """Deterministic synthetic parameters; BN running stats folded into scale/bias."""
    eps = 1e-5
    keys = jax.random.split(key, num_conv_blocks * 6 + 5)
    ki = [0]

    def nxt():
        k = keys[ki[0]]
        ki[0] += 1
        return k

    def bn_fold():
        gamma = jax.random.uniform(nxt(), (out_channels,), jnp.float32, 0.5, 1.5)
        beta = jax.random.normal(nxt(), (out_channels,), jnp.float32) * 0.1
        mean = jax.random.normal(nxt(), (out_channels,), jnp.float32) * 0.1
        var = jax.random.uniform(nxt(), (out_channels,), jnp.float32, 0.5, 1.5)
        scale = gamma / jnp.sqrt(var + eps)
        bias = beta - mean * scale
        return scale.reshape(1, -1), bias.reshape(1, -1)

    blocks = []
    cur = in_channels
    for _ in range(num_conv_blocks):
        wd = jax.random.normal(nxt(), (kernel_size, cur), jnp.float32) * 0.3
        wp = (jax.random.normal(nxt(), (cur, out_channels), jnp.float32)
              * (1.0 / np.sqrt(cur)))
        scale, bias = bn_fold()
        blocks.append(dict(wd=wd, wp=wp, scale=scale, bias=bias))
        cur = out_channels

    wp_res = (jax.random.normal(nxt(), (in_channels, out_channels), jnp.float32)
              * (1.0 / np.sqrt(in_channels)))
    scale_r, bias_r = bn_fold()
    res = dict(wp=wp_res, scale=scale_r, bias=bias_r)
    return dict(blocks=blocks, res=res)


def quartznet_block_reference(x, params, *, kernel_size, num_conv_blocks):
    """Pure-JAX f32 reference mirroring the PyTorch forward (eval-mode BN)."""
    P = _same_pad(kernel_size)
    out = x
    for i, blk in enumerate(params["blocks"]):
        L = out.shape[1]
        xp = jnp.pad(out, ((0, 0), (P, P), (0, 0)))
        acc = jnp.zeros_like(out)
        for k in range(kernel_size):
            acc = acc + xp[:, k:k + L, :] * blk["wd"][k][None, None, :]
        out = jnp.einsum("blc,cd->bld", acc, blk["wp"])
        out = out * blk["scale"][None] + blk["bias"][None]
        if i + 1 < num_conv_blocks:
            out = jnp.maximum(out, 0.0)
    res = (jnp.einsum("blc,cd->bld", x, params["res"]["wp"])
           * params["res"]["scale"][None] + params["res"]["bias"][None])
    return jnp.maximum(out + res, 0.0)


if __name__ == "__main__":
    B, L = 2, 40
    in_channels, out_channels = 8, 16
    kernel_size = 5
    num_conv_blocks = 3

    key = jax.random.PRNGKey(0)
    kx, kp = jax.random.split(key)
    x = jax.random.normal(kx, (B, L, in_channels), jnp.float32)
    params = init_params(kp, in_channels, out_channels, kernel_size,
                         num_conv_blocks)

    # time_tile=16 exercises the multi-tile halo / masking / double-buffer path
    # even at toy L (including a partial last tile); production uses default 512.
    out = quartznet_block_pallas(x, params, kernel_size=kernel_size,
                                 num_conv_blocks=num_conv_blocks, time_tile=16)
    out = jax.block_until_ready(out)

    ref = quartznet_block_reference(x, params, kernel_size=kernel_size,
                                    num_conv_blocks=num_conv_blocks)
    # bf16 activation stream + bf16 MXU operands (f32 accumulate) vs. a pure-f32
    # reference -> a few-percent differences are expected.
    np.testing.assert_allclose(np.asarray(out), np.asarray(ref),
                               rtol=5e-2, atol=5e-2)
    print("KERNEL_OK")
</pallas_src>

<mosaic_0001>
module attributes {stable_mosaic.version = 11 : i64} {
  func.func @kernel(%arg0: i32, %arg1: i32, %arg2: memref<2x64x128xbf16, #tpu.memory_space<any>>, %arg3: memref<5x128xf32, #tpu.memory_space<vmem>>, %arg4: memref<128x128xbf16, #tpu.memory_space<vmem>>, %arg5: memref<1x128xf32, #tpu.memory_space<vmem>>, %arg6: memref<5x128xf32, #tpu.memory_space<vmem>>, %arg7: memref<128x128xbf16, #tpu.memory_space<vmem>>, %arg8: memref<1x128xf32, #tpu.memory_space<vmem>>, %arg9: memref<5x128xf32, #tpu.memory_space<vmem>>, %arg10: memref<128x128xbf16, #tpu.memory_space<vmem>>, %arg11: memref<1x128xf32, #tpu.memory_space<vmem>>, %arg12: memref<128x128xbf16, #tpu.memory_space<vmem>>, %arg13: memref<1x128xf32, #tpu.memory_space<vmem>>, %arg14: memref<1x16x128xf32, #tpu.memory_space<vmem>>, %arg15: memref<2x32x128xbf16, #tpu.memory_space<vmem>>, %arg16: memref<2x!tpu.dma_semaphore, #tpu.memory_space<semaphore_mem>>) attributes {dimension_semantics = [#tpu.dimension_semantics<parallel>, #tpu.dimension_semantics<arbitrary>], iteration_bounds = array<i64: 2, 3>, scalar_prefetch = 0 : i64, scratch_operands = 2 : i64, tpu.core_type = #tpu.core_type<tc>, window_params = [{}, {pipeline_mode = #tpu.pipeline_mode<synchronous>, transform_indices = @transform_1, window_bounds = array<i64: 5, 128>}, {pipeline_mode = #tpu.pipeline_mode<synchronous>, transform_indices = @transform_2, window_bounds = array<i64: 128, 128>}, {pipeline_mode = #tpu.pipeline_mode<synchronous>, transform_indices = @transform_3, window_bounds = array<i64: 1, 128>}, {pipeline_mode = #tpu.pipeline_mode<synchronous>, transform_indices = @transform_4, window_bounds = array<i64: 5, 128>}, {pipeline_mode = #tpu.pipeline_mode<synchronous>, transform_indices = @transform_5, window_bounds = array<i64: 128, 128>}, {pipeline_mode = #tpu.pipeline_mode<synchronous>, transform_indices = @transform_6, window_bounds = array<i64: 1, 128>}, {pipeline_mode = #tpu.pipeline_mode<synchronous>, transform_indices = @transform_7, window_bounds = array<i64: 5, 128>}, {pipeline_mode = #tpu.pipeline_mode<synchronous>, transform_indices = @transform_8, window_bounds = array<i64: 128, 128>}, {pipeline_mode = #tpu.pipeline_mode<synchronous>, transform_indices = @transform_9, window_bounds = array<i64: 1, 128>}, {pipeline_mode = #tpu.pipeline_mode<synchronous>, transform_indices = @transform_10, window_bounds = array<i64: 128, 128>}, {pipeline_mode = #tpu.pipeline_mode<synchronous>, transform_indices = @transform_11, window_bounds = array<i64: 1, 128>}, {transform_indices = @transform_12, window_bounds = array<i64: 1, 16, 128>}]} {
    %c0_i32 = arith.constant 0 : i32
    %0 = arith.cmpi eq, %arg1, %c0_i32 : i32
    %1 = arith.extui %0 : i1 to i32
    %c0_i32_0 = arith.constant 0 : i32
    %2 = arith.cmpi ne, %1, %c0_i32_0 : i32
    scf.if %2 {
      %c16_i32_56 = arith.constant 16 : i32
      %150 = arith.muli %arg1, %c16_i32_56 : i32
      %151 = tpu.assume_multiple %150, 8 : i32
      %c0_i32_57 = arith.constant 0 : i32
      %c0_i32_58 = arith.constant 0 : i32
      %c0_i32_59 = arith.constant 0 : i32
      %152 = tpu.memref_slice %arg2[%arg0, %151, %c0_i32_59] : memref<2x64x128xbf16, #tpu.memory_space<any>> -> memref<1x32x128xbf16, #tpu.memory_space<any>>
      %153 = tpu.memref_squeeze %152 : memref<1x32x128xbf16, #tpu.memory_space<any>> -> memref<32x128xbf16, #tpu.memory_space<any>>
      %c0_i32_60 = arith.constant 0 : i32
      %c0_i32_61 = arith.constant 0 : i32
      %154 = tpu.memref_slice %arg15[%c0_i32_57, %c0_i32_60, %c0_i32_61] : memref<2x32x128xbf16, #tpu.memory_space<vmem>> -> memref<1x32x128xbf16, #tpu.memory_space<vmem>>
      %155 = tpu.memref_squeeze %154 : memref<1x32x128xbf16, #tpu.memory_space<vmem>> -> memref<32x128xbf16, #tpu.memory_space<vmem>>
      %156 = tpu.memref_slice %arg16[%c0_i32_58] : memref<2x!tpu.dma_semaphore, #tpu.memory_space<semaphore_mem>> -> memref<1x!tpu.dma_semaphore, #tpu.memory_space<semaphore_mem>>
      %157 = tpu.memref_squeeze %156 : memref<1x!tpu.dma_semaphore, #tpu.memory_space<semaphore_mem>> -> memref<!tpu.dma_semaphore, #tpu.memory_space<semaphore_mem>>
      tpu.enqueue_dma source(%153 : memref<32x128xbf16, #tpu.memory_space<any>>) target(%155 : memref<32x128xbf16, #tpu.memory_space<vmem>>) target_semaphore(%157 : memref<!tpu.dma_semaphore, #tpu.memory_space<semaphore_mem>>)
    } else {
    }
    %c2_i32 = arith.constant 2 : i32
    %c0_i32_1 = arith.constant 0 : i32
    %3 = arith.cmpi eq, %c2_i32, %c0_i32_1 : i32
    %c1_i32 = arith.constant 1 : i32
    %4 = arith.select %3, %c1_i32, %c2_i32 : i32
    %5 = arith.remsi %arg1, %4 : i32
    %c0_i32_2 = arith.constant 0 : i32
    %6 = arith.cmpi ne, %5, %c0_i32_2 : i32
    %c0_i32_3 = arith.constant 0 : i32
    %7 = arith.cmpi slt, %5, %c0_i32_3 : i32
    %c0_i32_4 = arith.constant 0 : i32
    %8 = arith.cmpi slt, %4, %c0_i32_4 : i32
    %9 = arith.xori %7, %8 : i1
    %10 = arith.andi %9, %6 : i1
    %11 = arith.addi %5, %4 : i32
    %12 = arith.select %10, %11, %5 : i32
    %c16_i32 = arith.constant 16 : i32
    %13 = arith.muli %arg1, %c16_i32 : i32
    %14 = tpu.assume_multiple %13, 8 : i32
    %c0_i32_5 = arith.constant 0 : i32
    %15 = tpu.memref_slice %arg2[%arg0, %14, %c0_i32_5] : memref<2x64x128xbf16, #tpu.memory_space<any>> -> memref<1x32x128xbf16, #tpu.memory_space<any>>
    %16 = tpu.memref_squeeze %15 : memref<1x32x128xbf16, #tpu.memory_space<any>> -> memref<32x128xbf16, #tpu.memory_space<any>>
    %c0_i32_6 = arith.constant 0 : i32
    %c0_i32_7 = arith.constant 0 : i32
    %17 = tpu.memref_slice %arg15[%12, %c0_i32_6, %c0_i32_7] : memref<2x32x128xbf16, #tpu.memory_space<vmem>> -> memref<1x32x128xbf16, #tpu.memory_space<vmem>>
    %18 = tpu.memref_squeeze %17 : memref<1x32x128xbf16, #tpu.memory_space<vmem>> -> memref<32x128xbf16, #tpu.memory_space<vmem>>
    %19 = tpu.memref_slice %arg16[%12] : memref<2x!tpu.dma_semaphore, #tpu.memory_space<semaphore_mem>> -> memref<1x!tpu.dma_semaphore, #tpu.memory_space<semaphore_mem>>
    %20 = tpu.memref_squeeze %19 : memref<1x!tpu.dma_semaphore, #tpu.memory_space<semaphore_mem>> -> memref<!tpu.dma_semaphore, #tpu.memory_space<semaphore_mem>>
    tpu.wait_dma2 semaphore(%20 : memref<!tpu.dma_semaphore, #tpu.memory_space<semaphore_mem>>) src(%16 : memref<32x128xbf16, #tpu.memory_space<any>>) dst(%18 : memref<32x128xbf16, #tpu.memory_space<vmem>>)
    %c1_i32_8 = arith.constant 1 : i32
    %21 = arith.addi %arg1, %c1_i32_8 : i32
    %c3_i32 = arith.constant 3 : i32
    %22 = arith.cmpi slt, %21, %c3_i32 : i32
    %23 = arith.extui %22 : i1 to i32
    %c0_i32_9 = arith.constant 0 : i32
    %24 = arith.cmpi ne, %23, %c0_i32_9 : i32
    scf.if %24 {
      %c1_i32_56 = arith.constant 1 : i32
      %150 = arith.addi %arg1, %c1_i32_56 : i32
      %c1_i32_57 = arith.constant 1 : i32
      %151 = arith.subi %c1_i32_57, %12 : i32
      %c16_i32_58 = arith.constant 16 : i32
      %152 = arith.muli %150, %c16_i32_58 : i32
      %153 = tpu.assume_multiple %152, 8 : i32
      %c0_i32_59 = arith.constant 0 : i32
      %154 = tpu.memref_slice %arg2[%arg0, %153, %c0_i32_59] : memref<2x64x128xbf16, #tpu.memory_space<any>> -> memref<1x32x128xbf16, #tpu.memory_space<any>>
      %155 = tpu.memref_squeeze %154 : memref<1x32x128xbf16, #tpu.memory_space<any>> -> memref<32x128xbf16, #tpu.memory_space<any>>
      %c0_i32_60 = arith.constant 0 : i32
      %c0_i32_61 = arith.constant 0 : i32
      %156 = tpu.memref_slice %arg15[%151, %c0_i32_60, %c0_i32_61] : memref<2x32x128xbf16, #tpu.memory_space<vmem>> -> memref<1x32x128xbf16, #tpu.memory_space<vmem>>
      %157 = tpu.memref_squeeze %156 : memref<1x32x128xbf16, #tpu.memory_space<vmem>> -> memref<32x128xbf16, #tpu.memory_space<vmem>>
      %158 = tpu.memref_slice %arg16[%151] : memref<2x!tpu.dma_semaphore, #tpu.memory_space<semaphore_mem>> -> memref<1x!tpu.dma_semaphore, #tpu.memory_space<semaphore_mem>>
      %159 = tpu.memref_squeeze %158 : memref<1x!tpu.dma_semaphore, #tpu.memory_space<semaphore_mem>> -> memref<!tpu.dma_semaphore, #tpu.memory_space<semaphore_mem>>
      tpu.enqueue_dma source(%155 : memref<32x128xbf16, #tpu.memory_space<any>>) target(%157 : memref<32x128xbf16, #tpu.memory_space<vmem>>) target_semaphore(%159 : memref<!tpu.dma_semaphore, #tpu.memory_space<semaphore_mem>>)
    } else {
    }
    %25 = arith.index_cast %12 : i32 to index
    %c0 = arith.constant 0 : index
    %c0_10 = arith.constant 0 : index
    %26 = vector.load %arg15[%25, %c0, %c0_10] : memref<2x32x128xbf16, #tpu.memory_space<vmem>>, vector<1x32x128xbf16>
    %27 = vector.shape_cast %26 : vector<1x32x128xbf16> to vector<32x128xbf16>
    %28 = arith.extf %27 : vector<32x128xbf16> to vector<32x128xf32>
    %29 = tpu.iota {dimensions = array<i32: 0>} : vector<32x128xi32>
    %c16_i32_11 = arith.constant 16 : i32
    %30 = arith.muli %arg1, %c16_i32_11 : i32
    %c8_i32 = arith.constant 8 : i32
    %31 = arith.subi %30, %c8_i32 : i32
    %32 = vector.broadcast %31 : i32 to vector<32x128xi32>
    %33 = arith.addi %29, %32 : vector<32x128xi32>
    %c0_i32_12 = arith.constant 0 : i32
    %34 = vector.broadcast %c0_i32_12 : i32 to vector<32x128xi32>
    %35 = arith.cmpi sge, %33, %34 : vector<32x128xi32>
    %c40_i32 = arith.constant 40 : i32
    %36 = vector.broadcast %c40_i32 : i32 to vector<32x128xi32>
    %37 = arith.cmpi slt, %33, %36 : vector<32x128xi32>
    %38 = arith.andi %35, %37 : vector<32x128xi1>
    %c0_13 = arith.constant 0 : index
    %c0_14 = arith.constant 0 : index
    %39 = vector.load %arg3[%c0_13, %c0_14] : memref<5x128xf32, #tpu.memory_space<vmem>>, vector<5x128xf32>
    %c0_15 = arith.constant 0 : index
    %c0_16 = arith.constant 0 : index
    %40 = vector.load %arg4[%c0_15, %c0_16] : memref<128x128xbf16, #tpu.memory_space<vmem>>, vector<128x128xbf16>
    %c0_17 = arith.constant 0 : index
    %c0_18 = arith.constant 0 : index
    %41 = vector.load %arg5[%c0_17, %c0_18] : memref<1x128xf32, #tpu.memory_space<vmem>>, vector<1x128xf32>
    %42 = vector.extract_strided_slice %39 {offsets = [2, 0], sizes = [1, 128], strides = [1, 1]} : vector<5x128xf32> to vector<1x128xf32>
    %43 = vector.broadcast %42 : vector<1x128xf32> to vector<32x128xf32>
    %44 = arith.mulf %28, %43 : vector<32x128xf32>
    %c2_i32_19 = arith.constant 2 : i32
    %45 = tpu.dynamic_rotate %28 by %c2_i32_19 dim 0 : vector<32x128xf32>, i32 -> vector<32x128xf32>
    %46 = vector.extract_strided_slice %39 {offsets = [0, 0], sizes = [1, 128], strides = [1, 1]} : vector<5x128xf32> to vector<1x128xf32>
    %47 = vector.broadcast %46 : vector<1x128xf32> to vector<32x128xf32>
    %48 = arith.mulf %45, %47 : vector<32x128xf32>
    %49 = arith.addf %44, %48 : vector<32x128xf32>
    %c1_i32_20 = arith.constant 1 : i32
    %50 = tpu.dynamic_rotate %28 by %c1_i32_20 dim 0 : vector<32x128xf32>, i32 -> vector<32x128xf32>
    %51 = vector.extract_strided_slice %39 {offsets = [1, 0], sizes = [1, 128], strides = [1, 1]} : vector<5x128xf32> to vector<1x128xf32>
    %52 = vector.broadcast %51 : vector<1x128xf32> to vector<32x128xf32>
    %53 = arith.mulf %50, %52 : vector<32x128xf32>
    %54 = arith.addf %49, %53 : vector<32x128xf32>
    %c31_i32 = arith.constant 31 : i32
    %55 = tpu.dynamic_rotate %28 by %c31_i32 dim 0 : vector<32x128xf32>, i32 -> vector<32x128xf32>
    %56 = vector.extract_strided_slice %39 {offsets = [3, 0], sizes = [1, 128], strides = [1, 1]} : vector<5x128xf32> to vector<1x128xf32>
    %57 = vector.broadcast %56 : vector<1x128xf32> to vector<32x128xf32>
    %58 = arith.mulf %55, %57 : vector<32x128xf32>
    %59 = arith.addf %54, %58 : vector<32x128xf32>
    %c30_i32 = arith.constant 30 : i32
    %60 = tpu.dynamic_rotate %28 by %c30_i32 dim 0 : vector<32x128xf32>, i32 -> vector<32x128xf32>
    %61 = vector.extract_strided_slice %39 {offsets = [4, 0], sizes = [1, 128], strides = [1, 1]} : vector<5x128xf32> to vector<1x128xf32>
    %62 = vector.broadcast %61 : vector<1x128xf32> to vector<32x128xf32>
    %63 = arith.mulf %60, %62 : vector<32x128xf32>
    %64 = arith.addf %59, %63 : vector<32x128xf32>
    %65 = arith.truncf %64 : vector<32x128xf32> to vector<32x128xbf16>
    %cst = arith.constant dense<0.000000e+00> : vector<32x128xf32>
    %66 = tpu.matmul %65, %40, %cst {dimension_numbers = #tpu.dot_dimension_numbers<[1], [0], [0], [1], [0, 0, 1, 1], [], []>} : vector<32x128xbf16>, vector<128x128xbf16>, vector<32x128xf32> -> vector<32x128xf32>
    %67 = vector.broadcast %41 : vector<1x128xf32> to vector<32x128xf32>
    %68 = arith.addf %66, %67 : vector<32x128xf32>
    %cst_21 = arith.constant 0.000000e+00 : f32
    %69 = vector.broadcast %cst_21 : f32 to vector<32x128xf32>
    %70 = arith.maximumf %68, %69 : vector<32x128xf32>
    %c0_22 = arith.constant 0 : index
    %c0_23 = arith.constant 0 : index
    %71 = vector.load %arg6[%c0_22, %c0_23] : memref<5x128xf32, #tpu.memory_space<vmem>>, vector<5x128xf32>
    %c0_24 = arith.constant 0 : index
    %c0_25 = arith.constant 0 : index
    %72 = vector.load %arg7[%c0_24, %c0_25] : memref<128x128xbf16, #tpu.memory_space<vmem>>, vector<128x128xbf16>
    %c0_26 = arith.constant 0 : index
    %c0_27 = arith.constant 0 : index
    %73 = vector.load %arg8[%c0_26, %c0_27] : memref<1x128xf32, #tpu.memory_space<vmem>>, vector<1x128xf32>
    %cst_28 = arith.constant 0.000000e+00 : f32
    %74 = vector.broadcast %cst_28 : f32 to vector<32x128xf32>
    %75 = arith.select %38, %70, %74 : vector<32x128xi1>, vector<32x128xf32>
    %76 = vector.extract_strided_slice %71 {offsets = [2, 0], sizes = [1, 128], strides = [1, 1]} : vector<5x128xf32> to vector<1x128xf32>
    %77 = vector.broadcast %76 : vector<1x128xf32> to vector<32x128xf32>
    %78 = arith.mulf %75, %77 : vector<32x128xf32>
    %c2_i32_29 = arith.constant 2 : i32
    %79 = tpu.dynamic_rotate %75 by %c2_i32_29 dim 0 : vector<32x128xf32>, i32 -> vector<32x128xf32>
    %80 = vector.extract_strided_slice %71 {offsets = [0, 0], sizes = [1, 128], strides = [1, 1]} : vector<5x128xf32> to vector<1x128xf32>
    %81 = vector.broadcast %80 : vector<1x128xf32> to vector<32x128xf32>
    %82 = arith.mulf %79, %81 : vector<32x128xf32>
    %83 = arith.addf %78, %82 : vector<32x128xf32>
    %c1_i32_30 = arith.constant 1 : i32
    %84 = tpu.dynamic_rotate %75 by %c1_i32_30 dim 0 : vector<32x128xf32>, i32 -> vector<32x128xf32>
    %85 = vector.extract_strided_slice %71 {offsets = [1, 0], sizes = [1, 128], strides = [1, 1]} : vector<5x128xf32> to vector<1x128xf32>
    %86 = vector.broadcast %85 : vector<1x128xf32> to vector<32x128xf32>
    %87 = arith.mulf %84, %86 : vector<32x128xf32>
    %88 = arith.addf %83, %87 : vector<32x128xf32>
    %c31_i32_31 = arith.constant 31 : i32
    %89 = tpu.dynamic_rotate %75 by %c31_i32_31 dim 0 : vector<32x128xf32>, i32 -> vector<32x128xf32>
    %90 = vector.extract_strided_slice %71 {offsets = [3, 0], sizes = [1, 128], strides = [1, 1]} : vector<5x128xf32> to vector<1x128xf32>
    %91 = vector.broadcast %90 : vector<1x128xf32> to vector<32x128xf32>
    %92 = arith.mulf %89, %91 : vector<32x128xf32>
    %93 = arith.addf %88, %92 : vector<32x128xf32>
    %c30_i32_32 = arith.constant 30 : i32
    %94 = tpu.dynamic_rotate %75 by %c30_i32_32 dim 0 : vector<32x128xf32>, i32 -> vector<32x128xf32>
    %95 = vector.extract_strided_slice %71 {offsets = [4, 0], sizes = [1, 128], strides = [1, 1]} : vector<5x128xf32> to vector<1x128xf32>
    %96 = vector.broadcast %95 : vector<1x128xf32> to vector<32x128xf32>
    %97 = arith.mulf %94, %96 : vector<32x128xf32>
    %98 = arith.addf %93, %97 : vector<32x128xf32>
    %99 = arith.truncf %98 : vector<32x128xf32> to vector<32x128xbf16>
    %cst_33 = arith.constant dense<0.000000e+00> : vector<32x128xf32>
    %100 = tpu.matmul %99, %72, %cst_33 {dimension_numbers = #tpu.dot_dimension_numbers<[1], [0], [0], [1], [0, 0, 1, 1], [], []>} : vector<32x128xbf16>, vector<128x128xbf16>, vector<32x128xf32> -> vector<32x128xf32>
    %101 = vector.broadcast %73 : vector<1x128xf32> to vector<32x128xf32>
    %102 = arith.addf %100, %101 : vector<32x128xf32>
    %cst_34 = arith.constant 0.000000e+00 : f32
    %103 = vector.broadcast %cst_34 : f32 to vector<32x128xf32>
    %104 = arith.maximumf %102, %103 : vector<32x128xf32>
    %c0_35 = arith.constant 0 : index
    %c0_36 = arith.constant 0 : index
    %105 = vector.load %arg9[%c0_35, %c0_36] : memref<5x128xf32, #tpu.memory_space<vmem>>, vector<5x128xf32>
    %c0_37 = arith.constant 0 : index
    %c0_38 = arith.constant 0 : index
    %106 = vector.load %arg10[%c0_37, %c0_38] : memref<128x128xbf16, #tpu.memory_space<vmem>>, vector<128x128xbf16>
    %c0_39 = arith.constant 0 : index
    %c0_40 = arith.constant 0 : index
    %107 = vector.load %arg11[%c0_39, %c0_40] : memref<1x128xf32, #tpu.memory_space<vmem>>, vector<1x128xf32>
    %cst_41 = arith.constant 0.000000e+00 : f32
    %108 = vector.broadcast %cst_41 : f32 to vector<32x128xf32>
    %109 = arith.select %38, %104, %108 : vector<32x128xi1>, vector<32x128xf32>
    %110 = vector.extract_strided_slice %105 {offsets = [2, 0], sizes = [1, 128], strides = [1, 1]} : vector<5x128xf32> to vector<1x128xf32>
    %111 = vector.broadcast %110 : vector<1x128xf32> to vector<32x128xf32>
    %112 = arith.mulf %109, %111 : vector<32x128xf32>
    %c2_i32_42 = arith.constant 2 : i32
    %113 = tpu.dynamic_rotate %109 by %c2_i32_42 dim 0 : vector<32x128xf32>, i32 -> vector<32x128xf32>
    %114 = vector.extract_strided_slice %105 {offsets = [0, 0], sizes = [1, 128], strides = [1, 1]} : vector<5x128xf32> to vector<1x128xf32>
    %115 = vector.broadcast %114 : vector<1x128xf32> to vector<32x128xf32>
    %116 = arith.mulf %113, %115 : vector<32x128xf32>
    %117 = arith.addf %112, %116 : vector<32x128xf32>
    %c1_i32_43 = arith.constant 1 : i32
    %118 = tpu.dynamic_rotate %109 by %c1_i32_43 dim 0 : vector<32x128xf32>, i32 -> vector<32x128xf32>
    %119 = vector.extract_strided_slice %105 {offsets = [1, 0], sizes = [1, 128], strides = [1, 1]} : vector<5x128xf32> to vector<1x128xf32>
    %120 = vector.broadcast %119 : vector<1x128xf32> to vector<32x128xf32>
    %121 = arith.mulf %118, %120 : vector<32x128xf32>
    %122 = arith.addf %117, %121 : vector<32x128xf32>
    %c31_i32_44 = arith.constant 31 : i32
    %123 = tpu.dynamic_rotate %109 by %c31_i32_44 dim 0 : vector<32x128xf32>, i32 -> vector<32x128xf32>
    %124 = vector.extract_strided_slice %105 {offsets = [3, 0], sizes = [1, 128], strides = [1, 1]} : vector<5x128xf32> to vector<1x128xf32>
    %125 = vector.broadcast %124 : vector<1x128xf32> to vector<32x128xf32>
    %126 = arith.mulf %123, %125 : vector<32x128xf32>
    %127 = arith.addf %122, %126 : vector<32x128xf32>
    %c30_i32_45 = arith.constant 30 : i32
    %128 = tpu.dynamic_rotate %109 by %c30_i32_45 dim 0 : vector<32x128xf32>, i32 -> vector<32x128xf32>
    %129 = vector.extract_strided_slice %105 {offsets = [4, 0], sizes = [1, 128], strides = [1, 1]} : vector<5x128xf32> to vector<1x128xf32>
    %130 = vector.broadcast %129 : vector<1x128xf32> to vector<32x128xf32>
    %131 = arith.mulf %128, %130 : vector<32x128xf32>
    %132 = arith.addf %127, %131 : vector<32x128xf32>
    %133 = vector.extract_strided_slice %132 {offsets = [8, 0], sizes = [16, 128], strides = [1, 1]} : vector<32x128xf32> to vector<16x128xf32>
    %134 = arith.truncf %133 : vector<16x128xf32> to vector<16x128xbf16>
    %cst_46 = arith.constant dense<0.000000e+00> : vector<16x128xf32>
    %135 = tpu.matmul %134, %106, %cst_46 {dimension_numbers = #tpu.dot_dimension_numbers<[1], [0], [0], [1], [0, 0, 1, 1], [], []>} : vector<16x128xbf16>, vector<128x128xbf16>, vector<16x128xf32> -> vector<16x128xf32>
    %136 = vector.broadcast %107 : vector<1x128xf32> to vector<16x128xf32>
    %137 = arith.addf %135, %136 : vector<16x128xf32>
    %c0_47 = arith.constant 0 : index
    %c0_48 = arith.constant 0 : index
    %138 = vector.load %arg12[%c0_47, %c0_48] : memref<128x128xbf16, #tpu.memory_space<vmem>>, vector<128x128xbf16>
    %c0_49 = arith.constant 0 : index
    %c0_50 = arith.constant 0 : index
    %139 = vector.load %arg13[%c0_49, %c0_50] : memref<1x128xf32, #tpu.memory_space<vmem>>, vector<1x128xf32>
    %140 = vector.extract_strided_slice %27 {offsets = [8, 0], sizes = [16, 128], strides = [1, 1]} : vector<32x128xbf16> to vector<16x128xbf16>
    %cst_51 = arith.constant dense<0.000000e+00> : vector<16x128xf32>
    %141 = tpu.matmul %140, %138, %cst_51 {dimension_numbers = #tpu.dot_dimension_numbers<[1], [0], [0], [1], [0, 0, 1, 1], [], []>} : vector<16x128xbf16>, vector<128x128xbf16>, vector<16x128xf32> -> vector<16x128xf32>
    %142 = vector.broadcast %139 : vector<1x128xf32> to vector<16x128xf32>
    %143 = arith.addf %141, %142 : vector<16x128xf32>
    %144 = arith.addf %137, %143 : vector<16x128xf32>
    %cst_52 = arith.constant 0.000000e+00 : f32
    %145 = vector.broadcast %cst_52 : f32 to vector<16x128xf32>
    %146 = arith.maximumf %144, %145 : vector<16x128xf32>
    %c0_53 = arith.constant 0 : index
    %c0_54 = arith.constant 0 : index
    %c0_55 = arith.constant 0 : index
    %147 = vector.load %arg14[%c0_53, %c0_54, %c0_55] : memref<1x16x128xf32, #tpu.memory_space<vmem>>, vector<1x16x128xf32>
    %148 = vector.shape_cast %147 : vector<1x16x128xf32> to vector<16x128xf32>
    %149 = vector.shape_cast %146 : vector<16x128xf32> to vector<1x16x128xf32>
    tpu.vector_store %arg14[%c0_53, %c0_54, %c0_55], %149 {strides = array<i32>} : memref<1x16x128xf32, #tpu.memory_space<vmem>>, vector<1x16x128xf32>,
    return
  }
  func.func @transform_1(%arg0: i32, %arg1: i32) -> (i32, i32) {
    %c0_i32 = arith.constant 0 : i32
    %c0_i32_0 = arith.constant 0 : i32
    %c0_i32_1 = arith.constant 0 : i32
    return %c0_i32, %c0_i32_0 : i32, i32
  }
  func.func @transform_2(%arg0: i32, %arg1: i32) -> (i32, i32) {
    %c0_i32 = arith.constant 0 : i32
    %c0_i32_0 = arith.constant 0 : i32
    %c0_i32_1 = arith.constant 0 : i32
    return %c0_i32, %c0_i32_0 : i32, i32
  }
  func.func @transform_3(%arg0: i32, %arg1: i32) -> (i32, i32) {
    %c0_i32 = arith.constant 0 : i32
    %c0_i32_0 = arith.constant 0 : i32
    %c0_i32_1 = arith.constant 0 : i32
    return %c0_i32, %c0_i32_0 : i32, i32
  }
  func.func @transform_4(%arg0: i32, %arg1: i32) -> (i32, i32) {
    %c0_i32 = arith.constant 0 : i32
    %c0_i32_0 = arith.constant 0 : i32
    %c0_i32_1 = arith.constant 0 : i32
    return %c0_i32, %c0_i32_0 : i32, i32
  }
  func.func @transform_5(%arg0: i32, %arg1: i32) -> (i32, i32) {
    %c0_i32 = arith.constant 0 : i32
    %c0_i32_0 = arith.constant 0 : i32
    %c0_i32_1 = arith.constant 0 : i32
    return %c0_i32, %c0_i32_0 : i32, i32
  }
  func.func @transform_6(%arg0: i32, %arg1: i32) -> (i32, i32) {
    %c0_i32 = arith.constant 0 : i32
    %c0_i32_0 = arith.constant 0 : i32
    %c0_i32_1 = arith.constant 0 : i32
    return %c0_i32, %c0_i32_0 : i32, i32
  }
  func.func @transform_7(%arg0: i32, %arg1: i32) -> (i32, i32) {
    %c0_i32 = arith.constant 0 : i32
    %c0_i32_0 = arith.constant 0 : i32
    %c0_i32_1 = arith.constant 0 : i32
    return %c0_i32, %c0_i32_0 : i32, i32
  }
  func.func @transform_8(%arg0: i32, %arg1: i32) -> (i32, i32) {
    %c0_i32 = arith.constant 0 : i32
    %c0_i32_0 = arith.constant 0 : i32
    %c0_i32_1 = arith.constant 0 : i32
    return %c0_i32, %c0_i32_0 : i32, i32
  }
  func.func @transform_9(%arg0: i32, %arg1: i32) -> (i32, i32) {
    %c0_i32 = arith.constant 0 : i32
    %c0_i32_0 = arith.constant 0 : i32
    %c0_i32_1 = arith.constant 0 : i32
    return %c0_i32, %c0_i32_0 : i32, i32
  }
  func.func @transform_10(%arg0: i32, %arg1: i32) -> (i32, i32) {
    %c0_i32 = arith.constant 0 : i32
    %c0_i32_0 = arith.constant 0 : i32
    %c0_i32_1 = arith.constant 0 : i32
    return %c0_i32, %c0_i32_0 : i32, i32
  }
  func.func @transform_11(%arg0: i32, %arg1: i32) -> (i32, i32) {
    %c0_i32 = arith.constant 0 : i32
    %c0_i32_0 = arith.constant 0 : i32
    %c0_i32_1 = arith.constant 0 : i32
    return %c0_i32, %c0_i32_0 : i32, i32
  }
  func.func @transform_12(%arg0: i32, %arg1: i32) -> (i32, i32, i32) {
    %c0_i32 = arith.constant 0 : i32
    %c0_i32_0 = arith.constant 0 : i32
    return %arg0, %arg1, %c0_i32 : i32, i32, i32
  }
}

module attributes {stable_mosaic.version = 11 : i64} {
  func.func @kernel(%arg0: i32, %arg1: i32, %arg2: memref<2x64x128xbf16, #tpu.memory_space<any>>, %arg3: memref<5x128xf32, #tpu.memory_space<vmem>>, %arg4: memref<128x128xbf16, #tpu.memory_space<vmem>>, %arg5: memref<1x128xf32, #tpu.memory_space<vmem>>, %arg6: memref<5x128xf32, #tpu.memory_space<vmem>>, %arg7: memref<128x128xbf16, #tpu.memory_space<vmem>>, %arg8: memref<1x128xf32, #tpu.memory_space<vmem>>, %arg9: memref<5x128xf32, #tpu.memory_space<vmem>>, %arg10: memref<128x128xbf16, #tpu.memory_space<vmem>>, %arg11: memref<1x128xf32, #tpu.memory_space<vmem>>, %arg12: memref<128x128xbf16, #tpu.memory_space<vmem>>, %arg13: memref<1x128xf32, #tpu.memory_space<vmem>>, %arg14: memref<1x16x128xf32, #tpu.memory_space<vmem>>, %arg15: memref<2x32x128xbf16, #tpu.memory_space<vmem>>, %arg16: memref<2x!tpu.dma_semaphore, #tpu.memory_space<semaphore_mem>>) attributes {dimension_semantics = [#tpu.dimension_semantics<parallel>, #tpu.dimension_semantics<arbitrary>], iteration_bounds = array<i64: 2, 3>, scalar_prefetch = 0 : i64, scratch_operands = 2 : i64, tpu.core_type = #tpu.core_type<tc>, window_params = [{}, {pipeline_mode = #tpu.pipeline_mode<synchronous>, transform_indices = @transform_1, window_bounds = array<i64: 5, 128>}, {pipeline_mode = #tpu.pipeline_mode<synchronous>, transform_indices = @transform_2, window_bounds = array<i64: 128, 128>}, {pipeline_mode = #tpu.pipeline_mode<synchronous>, transform_indices = @transform_3, window_bounds = array<i64: 1, 128>}, {pipeline_mode = #tpu.pipeline_mode<synchronous>, transform_indices = @transform_4, window_bounds = array<i64: 5, 128>}, {pipeline_mode = #tpu.pipeline_mode<synchronous>, transform_indices = @transform_5, window_bounds = array<i64: 128, 128>}, {pipeline_mode = #tpu.pipeline_mode<synchronous>, transform_indices = @transform_6, window_bounds = array<i64: 1, 128>}, {pipeline_mode = #tpu.pipeline_mode<synchronous>, transform_indices = @transform_7, window_bounds = array<i64: 5, 128>}, {pipeline_mode = #tpu.pipeline_mode<synchronous>, transform_indices = @transform_8, window_bounds = array<i64: 128, 128>}, {pipeline_mode = #tpu.pipeline_mode<synchronous>, transform_indices = @transform_9, window_bounds = array<i64: 1, 128>}, {pipeline_mode = #tpu.pipeline_mode<synchronous>, transform_indices = @transform_10, window_bounds = array<i64: 128, 128>}, {pipeline_mode = #tpu.pipeline_mode<synchronous>, transform_indices = @transform_11, window_bounds = array<i64: 1, 128>}, {transform_indices = @transform_12, window_bounds = array<i64: 1, 16, 128>}]} {
    %c0_i32 = arith.constant 0 : i32
    %0 = arith.cmpi eq, %arg1, %c0_i32 : i32
    %1 = arith.extui %0 : i1 to i32
    %c0_i32_0 = arith.constant 0 : i32
    %2 = arith.cmpi ne, %1, %c0_i32_0 : i32
    scf.if %2 {
      %c16_i32_56 = arith.constant 16 : i32
      %150 = arith.muli %arg1, %c16_i32_56 : i32
      %151 = tpu.assume_multiple %150, 8 : i32
      %c0_i32_57 = arith.constant 0 : i32
      %c0_i32_58 = arith.constant 0 : i32
      %c0_i32_59 = arith.constant 0 : i32
      %152 = tpu.memref_slice %arg2[%arg0, %151, %c0_i32_59] : memref<2x64x128xbf16, #tpu.memory_space<any>> -> memref<1x32x128xbf16, #tpu.memory_space<any>>
      %153 = tpu.memref_squeeze %152 : memref<1x32x128xbf16, #tpu.memory_space<any>> -> memref<32x128xbf16, #tpu.memory_space<any>>
      %c0_i32_60 = arith.constant 0 : i32
      %c0_i32_61 = arith.constant 0 : i32
      %154 = tpu.memref_slice %arg15[%c0_i32_57, %c0_i32_60, %c0_i32_61] : memref<2x32x128xbf16, #tpu.memory_space<vmem>> -> memref<1x32x128xbf16, #tpu.memory_space<vmem>>
      %155 = tpu.memref_squeeze %154 : memref<1x32x128xbf16, #tpu.memory_space<vmem>> -> memref<32x128xbf16, #tpu.memory_space<vmem>>
      %156 = tpu.memref_slice %arg16[%c0_i32_58] : memref<2x!tpu.dma_semaphore, #tpu.memory_space<semaphore_mem>> -> memref<1x!tpu.dma_semaphore, #tpu.memory_space<semaphore_mem>>
      %157 = tpu.memref_squeeze %156 : memref<1x!tpu.dma_semaphore, #tpu.memory_space<semaphore_mem>> -> memref<!tpu.dma_semaphore, #tpu.memory_space<semaphore_mem>>
      tpu.enqueue_dma source(%153 : memref<32x128xbf16, #tpu.memory_space<any>>) target(%155 : memref<32x128xbf16, #tpu.memory_space<vmem>>) target_semaphore(%157 : memref<!tpu.dma_semaphore, #tpu.memory_space<semaphore_mem>>)
    } else {
    }
    %c2_i32 = arith.constant 2 : i32
    %c0_i32_1 = arith.constant 0 : i32
    %3 = arith.cmpi eq, %c2_i32, %c0_i32_1 : i32
    %c1_i32 = arith.constant 1 : i32
    %4 = arith.select %3, %c1_i32, %c2_i32 : i32
    %5 = arith.remsi %arg1, %4 : i32
    %c0_i32_2 = arith.constant 0 : i32
    %6 = arith.cmpi ne, %5, %c0_i32_2 : i32
    %c0_i32_3 = arith.constant 0 : i32
    %7 = arith.cmpi slt, %5, %c0_i32_3 : i32
    %c0_i32_4 = arith.constant 0 : i32
    %8 = arith.cmpi slt, %4, %c0_i32_4 : i32
    %9 = arith.xori %7, %8 : i1
    %10 = arith.andi %9, %6 : i1
    %11 = arith.addi %5, %4 : i32
    %12 = arith.select %10, %11, %5 : i32
    %c16_i32 = arith.constant 16 : i32
    %13 = arith.muli %arg1, %c16_i32 : i32
    %14 = tpu.assume_multiple %13, 8 : i32
    %c0_i32_5 = arith.constant 0 : i32
    %15 = tpu.memref_slice %arg2[%arg0, %14, %c0_i32_5] : memref<2x64x128xbf16, #tpu.memory_space<any>> -> memref<1x32x128xbf16, #tpu.memory_space<any>>
    %16 = tpu.memref_squeeze %15 : memref<1x32x128xbf16, #tpu.memory_space<any>> -> memref<32x128xbf16, #tpu.memory_space<any>>
    %c0_i32_6 = arith.constant 0 : i32
    %c0_i32_7 = arith.constant 0 : i32
    %17 = tpu.memref_slice %arg15[%12, %c0_i32_6, %c0_i32_7] : memref<2x32x128xbf16, #tpu.memory_space<vmem>> -> memref<1x32x128xbf16, #tpu.memory_space<vmem>>
    %18 = tpu.memref_squeeze %17 : memref<1x32x128xbf16, #tpu.memory_space<vmem>> -> memref<32x128xbf16, #tpu.memory_space<vmem>>
    %19 = tpu.memref_slice %arg16[%12] : memref<2x!tpu.dma_semaphore, #tpu.memory_space<semaphore_mem>> -> memref<1x!tpu.dma_semaphore, #tpu.memory_space<semaphore_mem>>
    %20 = tpu.memref_squeeze %19 : memref<1x!tpu.dma_semaphore, #tpu.memory_space<semaphore_mem>> -> memref<!tpu.dma_semaphore, #tpu.memory_space<semaphore_mem>>
    tpu.wait_dma2 semaphore(%20 : memref<!tpu.dma_semaphore, #tpu.memory_space<semaphore_mem>>) src(%16 : memref<32x128xbf16, #tpu.memory_space<any>>) dst(%18 : memref<32x128xbf16, #tpu.memory_space<vmem>>)
    %c1_i32_8 = arith.constant 1 : i32
    %21 = arith.addi %arg1, %c1_i32_8 : i32
    %c3_i32 = arith.constant 3 : i32
    %22 = arith.cmpi slt, %21, %c3_i32 : i32
    %23 = arith.extui %22 : i1 to i32
    %c0_i32_9 = arith.constant 0 : i32
    %24 = arith.cmpi ne, %23, %c0_i32_9 : i32
    scf.if %24 {
      %c1_i32_56 = arith.constant 1 : i32
      %150 = arith.addi %arg1, %c1_i32_56 : i32
      %c1_i32_57 = arith.constant 1 : i32
      %151 = arith.subi %c1_i32_57, %12 : i32
      %c16_i32_58 = arith.constant 16 : i32
      %152 = arith.muli %150, %c16_i32_58 : i32
      %153 = tpu.assume_multiple %152, 8 : i32
      %c0_i32_59 = arith.constant 0 : i32
      %154 = tpu.memref_slice %arg2[%arg0, %153, %c0_i32_59] : memref<2x64x128xbf16, #tpu.memory_space<any>> -> memref<1x32x128xbf16, #tpu.memory_space<any>>
      %155 = tpu.memref_squeeze %154 : memref<1x32x128xbf16, #tpu.memory_space<any>> -> memref<32x128xbf16, #tpu.memory_space<any>>
      %c0_i32_60 = arith.constant 0 : i32
      %c0_i32_61 = arith.constant 0 : i32
      %156 = tpu.memref_slice %arg15[%151, %c0_i32_60, %c0_i32_61] : memref<2x32x128xbf16, #tpu.memory_space<vmem>> -> memref<1x32x128xbf16, #tpu.memory_space<vmem>>
      %157 = tpu.memref_squeeze %156 : memref<1x32x128xbf16, #tpu.memory_space<vmem>> -> memref<32x128xbf16, #tpu.memory_space<vmem>>
      %158 = tpu.memref_slice %arg16[%151] : memref<2x!tpu.dma_semaphore, #tpu.memory_space<semaphore_mem>> -> memref<1x!tpu.dma_semaphore, #tpu.memory_space<semaphore_mem>>
      %159 = tpu.memref_squeeze %158 : memref<1x!tpu.dma_semaphore, #tpu.memory_space<semaphore_mem>> -> memref<!tpu.dma_semaphore, #tpu.memory_space<semaphore_mem>>
      tpu.enqueue_dma source(%155 : memref<32x128xbf16, #tpu.memory_space<any>>) target(%157 : memref<32x128xbf16, #tpu.memory_space<vmem>>) target_semaphore(%159 : memref<!tpu.dma_semaphore, #tpu.memory_space<semaphore_mem>>)
    } else {
    }
    %25 = arith.index_cast %12 : i32 to index
    %c0 = arith.constant 0 : index
    %c0_10 = arith.constant 0 : index
    %26 = vector.load %arg15[%25, %c0, %c0_10] : memref<2x32x128xbf16, #tpu.memory_space<vmem>>, vector<1x32x128xbf16>
    %27 = vector.shape_cast %26 : vector<1x32x128xbf16> to vector<32x128xbf16>
    %28 = arith.extf %27 : vector<32x128xbf16> to vector<32x128xf32>
    %29 = tpu.iota {dimensions = array<i32: 0>} : vector<32x128xi32>
    %c16_i32_11 = arith.constant 16 : i32
    %30 = arith.muli %arg1, %c16_i32_11 : i32
    %c8_i32 = arith.constant 8 : i32
    %31 = arith.subi %30, %c8_i32 : i32
    %32 = vector.broadcast %31 : i32 to vector<32x128xi32>
    %33 = arith.addi %29, %32 : vector<32x128xi32>
    %c0_i32_12 = arith.constant 0 : i32
    %34 = vector.broadcast %c0_i32_12 : i32 to vector<32x128xi32>
    %35 = arith.cmpi sge, %33, %34 : vector<32x128xi32>
    %c40_i32 = arith.constant 40 : i32
    %36 = vector.broadcast %c40_i32 : i32 to vector<32x128xi32>
    %37 = arith.cmpi slt, %33, %36 : vector<32x128xi32>
    %38 = arith.andi %35, %37 : vector<32x128xi1>
    %c0_13 = arith.constant 0 : index
    %c0_14 = arith.constant 0 : index
    %39 = vector.load %arg3[%c0_13, %c0_14] : memref<5x128xf32, #tpu.memory_space<vmem>>, vector<5x128xf32>
    %c0_15 = arith.constant 0 : index
    %c0_16 = arith.constant 0 : index
    %40 = vector.load %arg4[%c0_15, %c0_16] : memref<128x128xbf16, #tpu.memory_space<vmem>>, vector<128x128xbf16>
    %c0_17 = arith.constant 0 : index
    %c0_18 = arith.constant 0 : index
    %41 = vector.load %arg5[%c0_17, %c0_18] : memref<1x128xf32, #tpu.memory_space<vmem>>, vector<1x128xf32>
    %42 = vector.extract_strided_slice %39 {offsets = [2, 0], sizes = [1, 128], strides = [1, 1]} : vector<5x128xf32> to vector<1x128xf32>
    %43 = vector.broadcast %42 : vector<1x128xf32> to vector<32x128xf32>
    %44 = arith.mulf %28, %43 : vector<32x128xf32>
    %c2_i32_19 = arith.constant 2 : i32
    %45 = tpu.dynamic_rotate %28 by %c2_i32_19 dim 0 : vector<32x128xf32>, i32 -> vector<32x128xf32>
    %46 = vector.extract_strided_slice %39 {offsets = [0, 0], sizes = [1, 128], strides = [1, 1]} : vector<5x128xf32> to vector<1x128xf32>
    %47 = vector.broadcast %46 : vector<1x128xf32> to vector<32x128xf32>
    %48 = arith.mulf %45, %47 : vector<32x128xf32>
    %49 = arith.addf %44, %48 : vector<32x128xf32>
    %c1_i32_20 = arith.constant 1 : i32
    %50 = tpu.dynamic_rotate %28 by %c1_i32_20 dim 0 : vector<32x128xf32>, i32 -> vector<32x128xf32>
    %51 = vector.extract_strided_slice %39 {offsets = [1, 0], sizes = [1, 128], strides = [1, 1]} : vector<5x128xf32> to vector<1x128xf32>
    %52 = vector.broadcast %51 : vector<1x128xf32> to vector<32x128xf32>
    %53 = arith.mulf %50, %52 : vector<32x128xf32>
    %54 = arith.addf %49, %53 : vector<32x128xf32>
    %c31_i32 = arith.constant 31 : i32
    %55 = tpu.dynamic_rotate %28 by %c31_i32 dim 0 : vector<32x128xf32>, i32 -> vector<32x128xf32>
    %56 = vector.extract_strided_slice %39 {offsets = [3, 0], sizes = [1, 128], strides = [1, 1]} : vector<5x128xf32> to vector<1x128xf32>
    %57 = vector.broadcast %56 : vector<1x128xf32> to vector<32x128xf32>
    %58 = arith.mulf %55, %57 : vector<32x128xf32>
    %59 = arith.addf %54, %58 : vector<32x128xf32>
    %c30_i32 = arith.constant 30 : i32
    %60 = tpu.dynamic_rotate %28 by %c30_i32 dim 0 : vector<32x128xf32>, i32 -> vector<32x128xf32>
    %61 = vector.extract_strided_slice %39 {offsets = [4, 0], sizes = [1, 128], strides = [1, 1]} : vector<5x128xf32> to vector<1x128xf32>
    %62 = vector.broadcast %61 : vector<1x128xf32> to vector<32x128xf32>
    %63 = arith.mulf %60, %62 : vector<32x128xf32>
    %64 = arith.addf %59, %63 : vector<32x128xf32>
    %65 = arith.truncf %64 : vector<32x128xf32> to vector<32x128xbf16>
    %cst = arith.constant dense<0.000000e+00> : vector<32x128xf32>
    %66 = tpu.matmul %65, %40, %cst {dimension_numbers = #tpu.dot_dimension_numbers<[1], [0], [0], [1], [0, 0, 1, 1], [], []>} : vector<32x128xbf16>, vector<128x128xbf16>, vector<32x128xf32> -> vector<32x128xf32>
    %67 = vector.broadcast %41 : vector<1x128xf32> to vector<32x128xf32>
    %68 = arith.addf %66, %67 : vector<32x128xf32>
    %cst_21 = arith.constant 0.000000e+00 : f32
    %69 = vector.broadcast %cst_21 : f32 to vector<32x128xf32>
    %70 = arith.maximumf %68, %69 : vector<32x128xf32>
    %c0_22 = arith.constant 0 : index
    %c0_23 = arith.constant 0 : index
    %71 = vector.load %arg6[%c0_22, %c0_23] : memref<5x128xf32, #tpu.memory_space<vmem>>, vector<5x128xf32>
    %c0_24 = arith.constant 0 : index
    %c0_25 = arith.constant 0 : index
    %72 = vector.load %arg7[%c0_24, %c0_25] : memref<128x128xbf16, #tpu.memory_space<vmem>>, vector<128x128xbf16>
    %c0_26 = arith.constant 0 : index
    %c0_27 = arith.constant 0 : index
    %73 = vector.load %arg8[%c0_26, %c0_27] : memref<1x128xf32, #tpu.memory_space<vmem>>, vector<1x128xf32>
    %cst_28 = arith.constant 0.000000e+00 : f32
    %74 = vector.broadcast %cst_28 : f32 to vector<32x128xf32>
    %75 = arith.select %38, %70, %74 : vector<32x128xi1>, vector<32x128xf32>
    %76 = vector.extract_strided_slice %71 {offsets = [2, 0], sizes = [1, 128], strides = [1, 1]} : vector<5x128xf32> to vector<1x128xf32>
    %77 = vector.broadcast %76 : vector<1x128xf32> to vector<32x128xf32>
    %78 = arith.mulf %75, %77 : vector<32x128xf32>
    %c2_i32_29 = arith.constant 2 : i32
    %79 = tpu.dynamic_rotate %75 by %c2_i32_29 dim 0 : vector<32x128xf32>, i32 -> vector<32x128xf32>
    %80 = vector.extract_strided_slice %71 {offsets = [0, 0], sizes = [1, 128], strides = [1, 1]} : vector<5x128xf32> to vector<1x128xf32>
    %81 = vector.broadcast %80 : vector<1x128xf32> to vector<32x128xf32>
    %82 = arith.mulf %79, %81 : vector<32x128xf32>
    %83 = arith.addf %78, %82 : vector<32x128xf32>
    %c1_i32_30 = arith.constant 1 : i32
    %84 = tpu.dynamic_rotate %75 by %c1_i32_30 dim 0 : vector<32x128xf32>, i32 -> vector<32x128xf32>
    %85 = vector.extract_strided_slice %71 {offsets = [1, 0], sizes = [1, 128], strides = [1, 1]} : vector<5x128xf32> to vector<1x128xf32>
    %86 = vector.broadcast %85 : vector<1x128xf32> to vector<32x128xf32>
    %87 = arith.mulf %84, %86 : vector<32x128xf32>
    %88 = arith.addf %83, %87 : vector<32x128xf32>
    %c31_i32_31 = arith.constant 31 : i32
    %89 = tpu.dynamic_rotate %75 by %c31_i32_31 dim 0 : vector<32x128xf32>, i32 -> vector<32x128xf32>
    %90 = vector.extract_strided_slice %71 {offsets = [3, 0], sizes = [1, 128], strides = [1, 1]} : vector<5x128xf32> to vector<1x128xf32>
    %91 = vector.broadcast %90 : vector<1x128xf32> to vector<32x128xf32>
    %92 = arith.mulf %89, %91 : vector<32x128xf32>
    %93 = arith.addf %88, %92 : vector<32x128xf32>
    %c30_i32_32 = arith.constant 30 : i32
    %94 = tpu.dynamic_rotate %75 by %c30_i32_32 dim 0 : vector<32x128xf32>, i32 -> vector<32x128xf32>
    %95 = vector.extract_strided_slice %71 {offsets = [4, 0], sizes = [1, 128], strides = [1, 1]} : vector<5x128xf32> to vector<1x128xf32>
    %96 = vector.broadcast %95 : vector<1x128xf32> to vector<32x128xf32>
    %97 = arith.mulf %94, %96 : vector<32x128xf32>
    %98 = arith.addf %93, %97 : vector<32x128xf32>
    %99 = arith.truncf %98 : vector<32x128xf32> to vector<32x128xbf16>
    %cst_33 = arith.constant dense<0.000000e+00> : vector<32x128xf32>
    %100 = tpu.matmul %99, %72, %cst_33 {dimension_numbers = #tpu.dot_dimension_numbers<[1], [0], [0], [1], [0, 0, 1, 1], [], []>} : vector<32x128xbf16>, vector<128x128xbf16>, vector<32x128xf32> -> vector<32x128xf32>
    %101 = vector.broadcast %73 : vector<1x128xf32> to vector<32x128xf32>
    %102 = arith.addf %100, %101 : vector<32x128xf32>
    %cst_34 = arith.constant 0.000000e+00 : f32
    %103 = vector.broadcast %cst_34 : f32 to vector<32x128xf32>
    %104 = arith.maximumf %102, %103 : vector<32x128xf32>
    %c0_35 = arith.constant 0 : index
    %c0_36 = arith.constant 0 : index
    %105 = vector.load %arg9[%c0_35, %c0_36] : memref<5x128xf32, #tpu.memory_space<vmem>>, vector<5x128xf32>
    %c0_37 = arith.constant 0 : index
    %c0_38 = arith.constant 0 : index
    %106 = vector.load %arg10[%c0_37, %c0_38] : memref<128x128xbf16, #tpu.memory_space<vmem>>, vector<128x128xbf16>
    %c0_39 = arith.constant 0 : index
    %c0_40 = arith.constant 0 : index
    %107 = vector.load %arg11[%c0_39, %c0_40] : memref<1x128xf32, #tpu.memory_space<vmem>>, vector<1x128xf32>
    %cst_41 = arith.constant 0.000000e+00 : f32
    %108 = vector.broadcast %cst_41 : f32 to vector<32x128xf32>
    %109 = arith.select %38, %104, %108 : vector<32x128xi1>, vector<32x128xf32>
    %110 = vector.extract_strided_slice %105 {offsets = [2, 0], sizes = [1, 128], strides = [1, 1]} : vector<5x128xf32> to vector<1x128xf32>
    %111 = vector.broadcast %110 : vector<1x128xf32> to vector<32x128xf32>
    %112 = arith.mulf %109, %111 : vector<32x128xf32>
    %c2_i32_42 = arith.constant 2 : i32
    %113 = tpu.dynamic_rotate %109 by %c2_i32_42 dim 0 : vector<32x128xf32>, i32 -> vector<32x128xf32>
    %114 = vector.extract_strided_slice %105 {offsets = [0, 0], sizes = [1, 128], strides = [1, 1]} : vector<5x128xf32> to vector<1x128xf32>
    %115 = vector.broadcast %114 : vector<1x128xf32> to vector<32x128xf32>
    %116 = arith.mulf %113, %115 : vector<32x128xf32>
    %117 = arith.addf %112, %116 : vector<32x128xf32>
    %c1_i32_43 = arith.constant 1 : i32
    %118 = tpu.dynamic_rotate %109 by %c1_i32_43 dim 0 : vector<32x128xf32>, i32 -> vector<32x128xf32>
    %119 = vector.extract_strided_slice %105 {offsets = [1, 0], sizes = [1, 128], strides = [1, 1]} : vector<5x128xf32> to vector<1x128xf32>
    %120 = vector.broadcast %119 : vector<1x128xf32> to vector<32x128xf32>
    %121 = arith.mulf %118, %120 : vector<32x128xf32>
    %122 = arith.addf %117, %121 : vector<32x128xf32>
    %c31_i32_44 = arith.constant 31 : i32
    %123 = tpu.dynamic_rotate %109 by %c31_i32_44 dim 0 : vector<32x128xf32>, i32 -> vector<32x128xf32>
    %124 = vector.extract_strided_slice %105 {offsets = [3, 0], sizes = [1, 128], strides = [1, 1]} : vector<5x128xf32> to vector<1x128xf32>
    %125 = vector.broadcast %124 : vector<1x128xf32> to vector<32x128xf32>
    %126 = arith.mulf %123, %125 : vector<32x128xf32>
    %127 = arith.addf %122, %126 : vector<32x128xf32>
    %c30_i32_45 = arith.constant 30 : i32
    %128 = tpu.dynamic_rotate %109 by %c30_i32_45 dim 0 : vector<32x128xf32>, i32 -> vector<32x128xf32>
    %129 = vector.extract_strided_slice %105 {offsets = [4, 0], sizes = [1, 128], strides = [1, 1]} : vector<5x128xf32> to vector<1x128xf32>
    %130 = vector.broadcast %129 : vector<1x128xf32> to vector<32x128xf32>
    %131 = arith.mulf %128, %130 : vector<32x128xf32>
    %132 = arith.addf %127, %131 : vector<32x128xf32>
    %133 = vector.extract_strided_slice %132 {offsets = [8, 0], sizes = [16, 128], strides = [1, 1]} : vector<32x128xf32> to vector<16x128xf32>
    %134 = arith.truncf %133 : vector<16x128xf32> to vector<16x128xbf16>
    %cst_46 = arith.constant dense<0.000000e+00> : vector<16x128xf32>
    %135 = tpu.matmul %134, %106, %cst_46 {dimension_numbers = #tpu.dot_dimension_numbers<[1], [0], [0], [1], [0, 0, 1, 1], [], []>} : vector<16x128xbf16>, vector<128x128xbf16>, vector<16x128xf32> -> vector<16x128xf32>
    %136 = vector.broadcast %107 : vector<1x128xf32> to vector<16x128xf32>
    %137 = arith.addf %135, %136 : vector<16x128xf32>
    %c0_47 = arith.constant 0 : index
    %c0_48 = arith.constant 0 : index
    %138 = vector.load %arg12[%c0_47, %c0_48] : memref<128x128xbf16, #tpu.memory_space<vmem>>, vector<128x128xbf16>
    %c0_49 = arith.constant 0 : index
    %c0_50 = arith.constant 0 : index
    %139 = vector.load %arg13[%c0_49, %c0_50] : memref<1x128xf32, #tpu.memory_space<vmem>>, vector<1x128xf32>
    %140 = vector.extract_strided_slice %27 {offsets = [8, 0], sizes = [16, 128], strides = [1, 1]} : vector<32x128xbf16> to vector<16x128xbf16>
    %cst_51 = arith.constant dense<0.000000e+00> : vector<16x128xf32>
    %141 = tpu.matmul %140, %138, %cst_51 {dimension_numbers = #tpu.dot_dimension_numbers<[1], [0], [0], [1], [0, 0, 1, 1], [], []>} : vector<16x128xbf16>, vector<128x128xbf16>, vector<16x128xf32> -> vector<16x128xf32>
    %142 = vector.broadcast %139 : vector<1x128xf32> to vector<16x128xf32>
    %143 = arith.addf %141, %142 : vector<16x128xf32>
    %144 = arith.addf %137, %143 : vector<16x128xf32>
    %cst_52 = arith.constant 0.000000e+00 : f32
    %145 = vector.broadcast %cst_52 : f32 to vector<16x128xf32>
    %146 = arith.maximumf %144, %145 : vector<16x128xf32>
    %c0_53 = arith.constant 0 : index
    %c0_54 = arith.constant 0 : index
    %c0_55 = arith.constant 0 : index
    %147 = vector.load %arg14[%c0_53, %c0_54, %c0_55] : memref<1x16x128xf32, #tpu.memory_space<vmem>>, vector<1x16x128xf32>
    %148 = vector.shape_cast %147 : vector<1x16x128xf32> to vector<16x128xf32>
    %149 = vector.shape_cast %146 : vector<16x128xf32> to vector<1x16x128xf32>
    tpu.vector_store %arg14[%c0_53, %c0_54, %c0_55], %149 {strides = array<i32>} : memref<1x16x128xf32, #tpu.memory_space<vmem>>, vector<1x16x128xf32>,
    return
  }
  func.func @transform_1(%arg0: i32, %arg1: i32) -> (i32, i32) {
    %c0_i32 = arith.constant 0 : i32
    %c0_i32_0 = arith.constant 0 : i32
    %c0_i32_1 = arith.constant 0 : i32
    return %c0_i32, %c0_i32_0 : i32, i32
  }
  func.func @transform_2(%arg0: i32, %arg1: i32) -> (i32, i32) {
    %c0_i32 = arith.constant 0 : i32
    %c0_i32_0 = arith.constant 0 : i32
    %c0_i32_1 = arith.constant 0 : i32
    return %c0_i32, %c0_i32_0 : i32, i32
  }
  func.func @transform_3(%arg0: i32, %arg1: i32) -> (i32, i32) {
    %c0_i32 = arith.constant 0 : i32
    %c0_i32_0 = arith.constant 0 : i32
    %c0_i32_1 = arith.constant 0 : i32
    return %c0_i32, %c0_i32_0 : i32, i32
  }
  func.func @transform_4(%arg0: i32, %arg1: i32) -> (i32, i32) {
    %c0_i32 = arith.constant 0 : i32
    %c0_i32_0 = arith.constant 0 : i32
    %c0_i32_1 = arith.constant 0 : i32
    return %c0_i32, %c0_i32_0 : i32, i32
  }
  func.func @transform_5(%arg0: i32, %arg1: i32) -> (i32, i32) {
    %c0_i32 = arith.constant 0 : i32
    %c0_i32_0 = arith.constant 0 : i32
    %c0_i32_1 = arith.constant 0 : i32
    return %c0_i32, %c0_i32_0 : i32, i32
  }
  func.func @transform_6(%arg0: i32, %arg1: i32) -> (i32, i32) {
    %c0_i32 = arith.constant 0 : i32
    %c0_i32_0 = arith.constant 0 : i32
    %c0_i32_1 = arith.constant 0 : i32
    return %c0_i32, %c0_i32_0 : i32, i32
  }
  func.func @transform_7(%arg0: i32, %arg1: i32) -> (i32, i32) {
    %c0_i32 = arith.constant 0 : i32
    %c0_i32_0 = arith.constant 0 : i32
    %c0_i32_1 = arith.constant 0 : i32
    return %c0_i32, %c0_i32_0 : i32, i32
  }
  func.func @transform_8(%arg0: i32, %arg1: i32) -> (i32, i32) {
    %c0_i32 = arith.constant 0 : i32
    %c0_i32_0 = arith.constant 0 : i32
    %c0_i32_1 = arith.constant 0 : i32
    return %c0_i32, %c0_i32_0 : i32, i32
  }
  func.func @transform_9(%arg0: i32, %arg1: i32) -> (i32, i32) {
    %c0_i32 = arith.constant 0 : i32
    %c0_i32_0 = arith.constant 0 : i32
    %c0_i32_1 = arith.constant 0 : i32
    return %c0_i32, %c0_i32_0 : i32, i32
  }
  func.func @transform_10(%arg0: i32, %arg1: i32) -> (i32, i32) {
    %c0_i32 = arith.constant 0 : i32
    %c0_i32_0 = arith.constant 0 : i32
    %c0_i32_1 = arith.constant 0 : i32
    return %c0_i32, %c0_i32_0 : i32, i32
  }
  func.func @transform_11(%arg0: i32, %arg1: i32) -> (i32, i32) {
    %c0_i32 = arith.constant 0 : i32
    %c0_i32_0 = arith.constant 0 : i32
    %c0_i32_1 = arith.constant 0 : i32
    return %c0_i32, %c0_i32_0 : i32, i32
  }
  func.func @transform_12(%arg0: i32, %arg1: i32) -> (i32, i32, i32) {
    %c0_i32 = arith.constant 0 : i32
    %c0_i32_0 = arith.constant 0 : i32
    return %arg0, %arg1, %c0_i32 : i32, i32, i32
  }
}

</mosaic_0001>

<bundles_post_ra>
// kernel: tpu_custom_call.1
= control target key start
LH: loop header
LB: loop body
LE: loop exit
PB: predicated region body
PF: predicated region fallthrough
CT: control target
= control target key end

     0   :  { %s2814_s0 = inlined_call_operand.hbm [shape: bf16[2,64,128], index: 0, kind: input, shape index: {}]   ;;  %s2815_s1 = inlined_call_operand.hbm [shape: f32[5,128], index: 1, kind: input, shape index: {}]   ;;  %s2816_s2 = inlined_call_operand.hbm [shape: bf16[128,128], index: 2, kind: input, shape index: {}]   ;;  %s2817_s3 = inlined_call_operand.vmem [shape: f32[1,128], index: 3, kind: input, shape index: {}]   ;;  %s2818_s4 = inlined_call_operand.vmem [shape: f32[5,128], index: 4, kind: input, shape index: {}]   ;;  %s2819_s5 = inlined_call_operand.hbm [shape: bf16[128,128], index: 5, kind: input, shape index: {}]   ;;  %s2820_s6 = inlined_call_operand.vmem [shape: f32[1,128], index: 6, kind: input, shape index: {}]   ;;  %s2821_s7 = inlined_call_operand.vmem [shape: f32[5,128], index: 7, kind: input, shape index: {}]   ;;  %s2822_s8 = inlined_call_operand.hbm [shape: bf16[128,128], index: 8, kind: input, shape index: {}]   ;;  %s2823_s9 = inlined_call_operand.vmem [shape: f32[1,128], index: 9, kind: input, shape index: {}]   ;;  %s2824_s10 = inlined_call_operand.hbm [shape: bf16[128,128], index: 10, kind: input, shape index: {}]   ;;  %s2825_s11 = inlined_call_operand.vmem [shape: f32[1,128], index: 11, kind: input, shape index: {}]   ;;  %s2826_s12 = inlined_call_operand.hbm [shape: f32[2,48,128], index: 12, kind: output, shape index: {}]  }
   0x1   :  { %2846 = sst [smem:[#allocation35_spill]] %s2815_s1 }
   0x2   :  { %2847 = sst [smem:[#allocation36_spill]] %s2816_s2 }
   0x3   :  { %2848 = sst [smem:[#allocation37_spill]] %s2823_s9 }
   0x4   :  { %2849 = sst [smem:[#allocation38_spill]] %s2825_s11 }
   0x5   :  { %2850 = sst [smem:[#allocation39_spill]] %s2826_s12 }
   0x6   :  { %17 = vsyncpa [#allocation5], 0 }
   0x7   :  { %18 = vsyncpa [#allocation8], 0 }
   0x8   :  { %19 = vsyncpa [#allocation11], 0 }
   0x9   :  { %20 = vsyncpa [#allocation6], 0 }
   0xa   :  { %22 = vsyncpa [#allocation6 + $0x1], 0  ;;  %s2206_s21 = smov 0   ;;  %s2208_s22 = smov 0  }
   0xb   :  { %s2210_s23 = smov 0   ;;  %s2212_s24 = smov 0  }
   0xc   :  { %s2214_s25 = smov 0   ;;  %s2216_s26 = smov 0  }
   0xd   :  { %s2218_s27 = smov 0   ;;  %s2220_s28 = smov 0  }
   0xe LB: > { %2851 = sst [smem:[#allocation25_spill]] %s2098_s21  ;;  %s1449_s29 = sadd.s32 4294967295, %s2126_s28   ;;  %s2126_s28 = sphi %s2220_s28, %s28_s28   ;;  %s2122_s27 = sphi %s2218_s27, %s2897_s27   ;;  %s2118_s26 = sphi %s2216_s26, %s2900_s26   ;;  %s2114_s25 = sphi %s2214_s25, %s2895_s25   ;;  %s2110_s24 = sphi %s2212_s24, %s2894_s24   ;;  %s2106_s23 = sphi %s2210_s23, %s2893_s23   ;;  %s2102_s22 = sphi %s2208_s22, %s2899_s22   ;;  %s2098_s21 = sphi %s2206_s21, %s2898_s21  }
   0xf   : > { %2852 = sst [smem:[#allocation26_spill]] %s2106_s23  ;;  %s1450_s30 = sadd.s32 4294967294, %s2126_s28  }
  0x10   : > { %2853 = sst [smem:[#allocation27_spill]] %s2118_s26  ;;  %s37_s13 = sadd.s32 1, %s2118_s26 }
  0x11   : > { %2854 = sst [smem:[#allocation28_spill]] %s2122_s27  ;;  %s40_s14 = sadd.s32 1, %s2122_s27 }
  0x12   : > { %2855 = sst [smem:[#allocation29_spill]] %s2126_s28  ;;  %p38_p0 = scmp.ge.s32.totalorder %s37_s13, 3 }
  0x13   : > { %s280_s15 = sadd.s32 1, %s2106_s23  ;;  %p290_p1 = scmp.ne.s32.totalorder %s2106_s23, %s2102_s22 }
  0x14   : > { %p291_p2 = scmp.eq.s32.totalorder %s1449_s29, 5  ;;  %s2902_s13 = smov (%p38_p0, %s37_s13), 0 }
  0x15   : > { %2856 = sst [smem:[#allocation30_spill]] %s2902_s13  ;;  %s2904_s14 = smov (!%p38_p0, %s40_s14), %s2122_s27 }
  0x16   : > { %s276_s16 = ssub.s32 %s2118_s26, %s2902_s13  ;;  %p2258_p3 = por %p291_p2, %p290_p1 }
  0x17   : > { %p42_p4 = scmp.ge.s32.totalorder %s2904_s14, 2  ;;  %p296_p5 = scmp.ne.s32.totalorder %s2102_s22, %s2098_s21 }
  0x18   : > { %s2857_s17 = scalar_select %p2258_p3, 1, 0 }
  0x19   : > { %p297_p6 = scmp.eq.s32.totalorder %s1450_s30, 5  ;;  %p1451_p7 = scmp.ge.s32.totalorder %s2126_s28, 1 }
  0x1a   : > { %2858 = sst [smem:[#allocation31_spill]] %s2857_s17  ;;  %s2906_s14 = smov (%p42_p4, %s2904_s14), 0 }
  0x1b   : > { %2859 = sst [smem:[#allocation32_spill]] %s2906_s14  ;;  %p2267_p8 = por %p297_p6, %p296_p5 }
  0x1c   : > { %p304_p9 = scmp.lt.s32.totalorder %s2126_s28, 7  ;;  %s275_s19 = ssub.s32 %s2122_s27, %s2906_s14 }
  0x1d   : > { %s2860_s18 = scalar_select %p2267_p8, 1, 0 }
  0x1e   : > { %s277_s20 = sor.u32 %s276_s16, %s275_s19  ;;  %p2274_p10 = pnand %p1451_p7, %p304_p9 }
  0x1f   : > { %2861 = sst [smem:[#allocation33_spill]] %s2860_s18  ;;  %p278_p11 = scmp.eq.s32.totalorder %s277_s20, 0 }
  0x20   : > { %s2862_s13 = scalar_select %p2274_p10, 1, 0 }
  0x21   : > { %p2278_p12 = scmp.eq.s32.totalorder %s1449_s29, 0  ;;  %p1681_p13 = pneg %p2274_p10 }
  0x22   : > { %s2285_s30 = scalar_select %p278_p11, %s2106_s23, %s280_s15  }
  0x23   : > { %s2863_s26 = scalar_select %p2278_p12, 1, 0 }
  0x24   : > { %2864 = sst [smem:[#allocation34_spill]] %s2285_s30  ;;  %p2289_p0 = pnand %p2278_p12, %p1681_p13 }
  0x25   : > { %s2128_s16 = smov [#allocation7]   ;;  %s2866_s2 = sld [smem:[#allocation36_spill]] }
  0x26   : > { %s327_s19 = sshll.u32 %s2128_s16, 4  ;;  %p2301_p2 = pneg %p2289_p0  ;;  %s328_s19 = int_to_ptr.vmem [resolvable:$true] %s327_s19 }
  0x2b   : > { %s1822_s29 = scalar_lea.hbm %s2866_s2, 1024 }
  0x2c   : > { %p1823_p1 = scmp.ne.s32.totalorder %s2866_s2, %s1822_s29  ;;  %p1829_p6 = scmp.lt.u32.totalorder %s1822_s29, %s2866_s2 }
  0x2e   : > { %p1825_p4 = pnand %p2301_p2, %p1823_p1 }
  0x30   : > { %p1826_p5 = pneg %p1825_p4 }
  0x32   : > { %p1831_p7 = pnand %p1829_p6, %p1826_p5 }
  0x34   : > { %1834 = shalt.err (!%p1831_p7)
}
  0x35   : > { %s1835_s14 = scalar_lea.vmem %s328_s19, 1024  ;;  %p1843_p8 = scmp.lt.s32.totalorder %s328_s19, %s328_s19 }
  0x36   : > { %p1836_p9 = scmp.ne.s32.totalorder %s328_s19, %s1835_s14  ;;  %p1844_p3 = scmp.lt.s32.totalorder %s1835_s14, %s1835_s14 }
  0x38   : > { %p1838_p11 = pnand %p1836_p9, %p2301_p2  ;;  %p1845_p12 = por %p1844_p3, %p1843_p8 }
  0x3a   : > { %p1839_p13 = pneg %p1838_p11 }
  0x3c   : > { %p1846_p10 = pnand %p1845_p12, %p1839_p13 }
  0x3e   : > { %1849 = shalt.err (!%p1846_p10)
}
  0x3f   : > { %s2129_s21 = smov 64   ;;  %s2130_s27 = smov 4  }
  0x40   : > { %1687 = dma.hbm_to_vmem [thread:$0]  (!%p2289_p0), %s2866_s2, 1024, %s328_s19, [#allocation8], %s2129_s21, %s2129_s21, %s2130_s27  }
  0x41   : > { %s2131_s29 = smov [#allocation10]   ;;  %s1850_s28 = scalar_lea.hbm %s2822_s8, 1024 }
  0x42   : > { %s365_s16 = sshll.u32 %s2131_s29, 4  ;;  %p1851_p3 = scmp.ne.s32.totalorder %s2822_s8, %s1850_s28  ;;  %s366_s16 = int_to_ptr.vmem [resolvable:$true] %s365_s16 }
  0x43   : > { %p1857_p12 = scmp.lt.u32.totalorder %s1850_s28, %s2822_s8 }
  0x44   : > { %p1853_p8 = pnand %p1851_p3, %p2301_p2 }
  0x46   : > { %p1854_p10 = pneg %p1853_p8 }
  0x48   : > { %p1859_p1 = pnand %p1857_p12, %p1854_p10 }
  0x4a   : > { %1862 = shalt.err (!%p1859_p1)
}
  0x4b   : > { %s1863_s19 = scalar_lea.vmem %s366_s16, 1024  ;;  %p1871_p7 = scmp.lt.s32.totalorder %s366_s16, %s366_s16 }
  0x4c   : > { %p1864_p4 = scmp.ne.s32.totalorder %s366_s16, %s1863_s19  ;;  %p1872_p9 = scmp.lt.s32.totalorder %s1863_s19, %s1863_s19 }
  0x4e   : > { %p1866_p5 = pnand %p1864_p4, %p2301_p2  ;;  %p1873_p11 = por %p1872_p9, %p1871_p7 }
  0x50   : > { %p1867_p6 = pneg %p1866_p5 }
  0x52   : > { %p1874_p13 = pnand %p1873_p11, %p1867_p6 }
  0x54   : > { %1877 = shalt.err (!%p1874_p13)
}
  0x55   : > { %1693 = dma.hbm_to_vmem [thread:$0]  (!%p2289_p0), %s2822_s8, 1024, %s366_s16, [#allocation11], %s2129_s21, %s2129_s21, %s2130_s27  }
  0x56   : > { %s2132_s12 = smov [#allocation4]   ;;  %s2133_s28 = smov [#allocation9]  }
  0x57   : > { %s317_s23 = sshll.u32 %s2132_s12, 4  ;;  %s346_s17 = sshll.u32 %s2133_s28, 4  ;;  %s318_s23 = int_to_ptr.vmem [resolvable:$true] %s317_s23  ;;  %s347_s17 = int_to_ptr.vmem [resolvable:$true] %s346_s17 }
  0x58   : > { %s2868_s1 = sld [smem:[#allocation35_spill]] }
  0x5e   : > { %s1878_s29 = scalar_lea.hbm %s2868_s1, 128 }
  0x5f   : > { %p1879_p3 = scmp.ne.s32.totalorder %s2868_s1, %s1878_s29  ;;  %p1885_p12 = scmp.lt.u32.totalorder %s1878_s29, %s2868_s1 }
  0x61   : > { %p1881_p8 = pnand %p1879_p3, %p2301_p2 }
  0x63   : > { %p1882_p10 = pneg %p1881_p8 }
  0x65   : > { %p1887_p1 = pnand %p1885_p12, %p1882_p10 }
  0x67   : > { %1890 = shalt.err (!%p1887_p1)
}
  0x68   : > { %s1891_s16 = scalar_lea.vmem %s318_s23, 128  ;;  %p1899_p7 = scmp.lt.s32.totalorder %s318_s23, %s318_s23 }
  0x69   : > { %p1892_p4 = scmp.ne.s32.totalorder %s318_s23, %s1891_s16  ;;  %p1900_p9 = scmp.lt.s32.totalorder %s1891_s16, %s1891_s16 }
  0x6b   : > { %p1894_p5 = pnand %p1892_p4, %p2301_p2  ;;  %p1901_p11 = por %p1900_p9, %p1899_p7 }
  0x6d   : > { %p1895_p6 = pneg %p1894_p5 }
  0x6f   : > { %p1902_p13 = pnand %p1901_p11, %p1895_p6 }
  0x71   : > { %1905 = shalt.err (!%p1902_p13)
}
  0x72   : > { %1684 = dma.hbm_to_vmem [thread:$0]  (!%p2289_p0), %s2868_s1, 128, %s318_s23, [#allocation5]  }
  0x73   : > { %s1906_s30 = scalar_lea.hbm %s2819_s5, 1024 }
  0x74   : > { %p1907_p3 = scmp.ne.s32.totalorder %s2819_s5, %s1906_s30  ;;  %p1913_p12 = scmp.lt.u32.totalorder %s1906_s30, %s2819_s5 }
  0x76   : > { %p1909_p8 = pnand %p1907_p3, %p2301_p2 }
  0x78   : > { %p1910_p10 = pneg %p1909_p8 }
  0x7a   : > { %p1915_p1 = pnand %p1913_p12, %p1910_p10 }
  0x7c   : > { %1918 = shalt.err (!%p1915_p1)
}
  0x7d   : > { %s1919_s9 = scalar_lea.vmem %s347_s17, 1024  ;;  %p1927_p7 = scmp.lt.s32.totalorder %s347_s17, %s347_s17 }
  0x7e   : > { %p1920_p4 = scmp.ne.s32.totalorder %s347_s17, %s1919_s9  ;;  %p1928_p9 = scmp.lt.s32.totalorder %s1919_s9, %s1919_s9 }
  0x80   : > { %p1922_p5 = pnand %p1920_p4, %p2301_p2  ;;  %p1929_p11 = por %p1928_p9, %p1927_p7 }
  0x82   : > { %p1923_p6 = pneg %p1922_p5 }
  0x84   : > { %p1930_p13 = pnand %p1929_p11, %p1923_p6 }
  0x86   : > { %1933 = shalt.err (!%p1930_p13)
}
  0x87   : > { %1690 = dma.hbm_to_vmem [thread:$0]  (!%p2289_p0), %s2819_s5, 1024, %s347_s17, [#allocation8], %s2129_s21, %s2129_s21, %s2130_s27  }
  0x88   : > { %s2134_s11 = smov [#allocation12]   ;;  %s1934_s30 = scalar_lea.hbm %s2824_s10, 1024 }
  0x89   : > { %s381_s12 = sshll.u32 %s2134_s11, 4  ;;  %p1935_p3 = scmp.ne.s32.totalorder %s2824_s10, %s1934_s30  ;;  %s382_s12 = int_to_ptr.vmem [resolvable:$true] %s381_s12 }
  0x8a   : > { %p1941_p12 = scmp.lt.u32.totalorder %s1934_s30, %s2824_s10 }
  0x8b   : > { %p1937_p8 = pnand %p1935_p3, %p2301_p2 }
  0x8d   : > { %p1938_p10 = pneg %p1937_p8 }
  0x8f   : > { %p1943_p1 = pnand %p1941_p12, %p1938_p10 }
  0x91   : > { %1946 = shalt.err (!%p1943_p1)
}
  0x92   : > { %s1947_s17 = scalar_lea.vmem %s382_s12, 1024  ;;  %p1955_p7 = scmp.lt.s32.totalorder %s382_s12, %s382_s12 }
  0x93   : > { %p1948_p4 = scmp.ne.s32.totalorder %s382_s12, %s1947_s17  ;;  %p1956_p9 = scmp.lt.s32.totalorder %s1947_s17, %s1947_s17 }
  0x95   : > { %p1950_p5 = pnand %p1948_p4, %p2301_p2  ;;  %p1957_p11 = por %p1956_p9, %p1955_p7 }
  0x97   : > { %p1951_p6 = pneg %p1950_p5 }
  0x99   : > { %p1958_p13 = pnand %p1957_p11, %p1951_p6 }
  0x9b   : > { %1961 = shalt.err (!%p1958_p13)
}
  0x9c   : > { %1696 = dma.hbm_to_vmem [thread:$0]  (!%p2289_p0), %s2824_s10, 1024, %s382_s12, [#allocation11], %s2129_s21, %s2129_s21, %s2130_s27  }
  0x9d   : > { %p2869_p3 = scmp.ne.s32.totalorder %s2862_s13, 0 }
  0x9e   : > { %p2870_p2 = scmp.ne.s32.totalorder (!%p2869_p3), %s2863_s26, 0 }
  0x9f   : > { %400 = sbr.rel (%p2869_p3) target bundleno = 1008 (0x3f0), region = 64 }
  0xa6   : > { %2079 = dma.done.wait (%p2870_p2), [#allocation5], 128  }
  0xa7   : > { %2081 = vsyncadd (%p2870_p2), [#allocation5], 4294967168 }
  0xa8   : > { %2083 = dma.done.wait (%p2870_p2), [#allocation8], 2048  }
  0xa9   : > { %2085 = vsyncadd (%p2870_p2), [#allocation8], 4294965248 }
  0xaa   : > { %2087 = dma.done.wait (%p2870_p2), [#allocation11], 2048  }
  0xab   : > { %2089 = vsyncadd (%p2870_p2), [#allocation11], 4294965248  ;;  %s2843_s13 = sand.u32 1, %s2102_s22   ;;  %p1711_p0 = scmp.eq.s32.totalorder %s2110_s24, 0 }
  0xac   : > { %s2418_s18 = sshll.u32 %s2843_s13, 4  ;;  %s2422_s15 = sshll.u32 %s2110_s24, 4 }
  0xad   : > { %s458_s21 = sshra.s32 %s2422_s15, 3  ;;  %s1466_s27 = sshll.u32 %s2114_s25, 3 }
  0xae   : > { %s461_s26 = sadd.s32 %s1466_s27, %s458_s21  ;;  %s2135_s11 = smov [#allocation2]  }
  0xaf   : > { %s1467_s16 = sshll.u32 %s461_s26, 6  ;;  %s471_s12 = sshll.u32 %s2135_s11, 4  ;;  %s2431_s12 = int_to_ptr.vmem [resolvable:$true] %s471_s12 }
  0xb0   : > { %s463_s30 = scalar_lea.hbm %s2814_s0, %s1467_s16  ;;  %s2845_s19 = scalar_lea.hbm %s2814_s0, 1024 }
  0xb1   : > { %s1962_s20 = scalar_lea.hbm %s463_s30, 256  ;;  %p1967_p1 = scmp.lt.u32.totalorder %s463_s30, %s2814_s0 }
  0xb2   : > { %p1963_p8 = scmp.ne.s32.totalorder %s463_s30, %s1962_s20  ;;  %p1968_p4 = scmp.lt.u32.totalorder %s2845_s19, %s1962_s20 }
  0xb3   : > { %p1970_p6 = scmp.lt.u32.totalorder %s1962_s20, %s463_s30 }
  0xb4   : > { %p1964_p10 = pnand %p1963_p8, %p1711_p0  ;;  %p1969_p5 = por %p1968_p4, %p1967_p1 }
  0xb6   : > { %p1965_p12 = pneg %p1964_p10  ;;  %p1971_p7 = por %p1970_p6, %p1969_p5 }
  0xb8   : > { %p1972_p9 = pnand %p1971_p7, %p1965_p12 }
  0xba   : > { %1975 = shalt.err (!%p1972_p9)  }
  0xbb   : > { %s1976_s26 = scalar_lea.vmem %s2431_s12, 256  ;;  %s2844_s16 = scalar_lea.vmem %s2431_s12, 512 }
  0xbc   : > { %p1977_p11 = scmp.ne.s32.totalorder %s2431_s12, %s1976_s26  ;;  %p1983_p2 = scmp.lt.s32.totalorder %s2431_s12, %s2431_s12 }
  0xbd   : > { %p1984_p8 = scmp.lt.s32.totalorder %s2844_s16, %s1976_s26 }
  0xbe   : > { %p1978_p13 = pnand %p1977_p11, %p1711_p0 }
  0xbf   : > { %p1985_p10 = por %p1984_p8, %p1983_p2 }
  0xc0   : > { %p1979_p3 = pneg %p1978_p13 }
  0xc2   : > { %p1986_p1 = pnand %p1985_p10, %p1979_p3 }
  0xc4   : > { %1989 = shalt.err (!%p1986_p1)  }
  0xc5   : > { %1676 = dma.hbm_to_vmem [thread:$0]  (%p1711_p0), %s463_s30, 256, %s2431_s12, [#allocation3] }
  0xc6   : > { %p475_p12 = scmp.lt.s32.totalorder %s2110_s24, 0  ;;  %s476_s11 = ssub.s32 0, %s2110_s24 }
  0xc7   : > { %s1468_s2 = smin.u32 %s2110_s24, %s476_s11  ;;  %s2461_s17 = scalar_lea.vmem [#allocation13], %s2418_s18 }
  0xc8   : > { %s478_s28 = sand.u32 1, %s1468_s2  }
  0xc9   : > { %s479_s20 = ssub.s32 0, %s478_s28 }
  0xca   : > { %s2908_s20 = smov (!%p475_p12, %s479_s20), %s478_s28 }
  0xcb   : > { %p1470_p4 = scmp.lt.s32.totalorder %s2908_s20, 0  ;;  %s485_s29 = sadd.s32 2, %s2908_s20 }
  0xcd   : > { %s2910_s29 = smov (!%p1470_p4, %s485_s29), %s2908_s20 }
  0xce   : > { %s1524_s14 = sshll.u32 %s2910_s29, 4  ;;  %s491_s23 = scalar_lea.sflag [#allocation3], %s2910_s29 }
  0xcf   : > { %s2463_s9 = scalar_lea.vmem [#allocation2], %s1524_s14 }
  0xd0   : > { %2090 = dma.done.wait %s491_s23, 256 }
  0xd1   : > { %2091 = vsyncadd %s491_s23, 4294967040  ;;  %s496_s30 = sadd.s32 1, %s2110_s24  ;;  %s501_s21 = ssub.s32 1, %s2910_s29  ;;  %v530_v0 = vlaneseq  ;;  %v1790_v2 = vld [vmem:[#allocation7] sm:$0xff]  }
  0xd2   : > { %p2466_p0 = scmp.lt.s32.totalorder %s496_s30, 3  ;;  %s1526_s11 = sadd.s32 16, %s2422_s15 }
  0xd3   : > { %s1527_s2 = sshll.u32 %s501_s21, 4  ;;  %s503_s18 = sshra.s32 %s1526_s11, 3  ;;  %v2476_v1 = vshrl.u32 %v530_v0, 7 }
  0xd4   : > { %s506_s28 = sadd.s32 %s1466_s27, %s503_s18  ;;  %s511_s14 = scalar_lea.vmem [#allocation2], %s1527_s2 }
  0xd5   : > { %s1477_s20 = sshll.u32 %s506_s28, 6  ;;  %s520_s13 = sshll.u32 %s511_s14, 4  ;;  %s521_s13 = int_to_ptr.vmem [resolvable:$true] %s520_s13 }
  0xd6   : > { %s508_s19 = scalar_lea.hbm %s2814_s0, %s1477_s20  ;;  %s512_s29 = scalar_lea.sflag [#allocation3], %s501_s21 }
  0xd7   : > { %s1990_s30 = scalar_lea.hbm %s508_s19, 256  ;;  %p1995_p9 = scmp.lt.u32.totalorder %s508_s19, %s2814_s0 }
  0xd8   : > { %p1991_p5 = scmp.ne.s32.totalorder %s508_s19, %s1990_s30  ;;  %s2872_s18 = scalar_lea.hbm %s2814_s0, 1024 }
  0xd9   : > { %p1996_p11 = scmp.lt.u32.totalorder %s2872_s18, %s1990_s30  ;;  %p1998_p3 = scmp.lt.u32.totalorder %s1990_s30, %s508_s19 }
  0xda   : > { %p1992_p6 = pnand %p1991_p5, %p2466_p0 }
  0xdb   : > { %p1997_p13 = por %p1996_p11, %p1995_p9 }
  0xdc   : > { %p1993_p7 = pneg %p1992_p6 }
  0xdd   : > { %p1999_p2 = por %p1998_p3, %p1997_p13 }
  0xdf   : > { %p2000_p8 = pnand %p1999_p2, %p1993_p7 }
  0xe1   : > { %2003 = shalt.err (!%p2000_p8)  }
  0xe2   : > { %s2004_s16 = scalar_lea.vmem %s521_s13, 256  ;;  %p2011_p4 = scmp.lt.s32.totalorder %s521_s13, %s2431_s12 }
  0xe3   : > { %p2005_p10 = scmp.ne.s32.totalorder %s521_s13, %s2004_s16  ;;  %s2873_s1 = scalar_lea.vmem %s2431_s12, 512 }
  0xe4   : > { %p2012_p5 = scmp.lt.s32.totalorder %s2873_s1, %s2004_s16 }
  0xe5   : > { %p2006_p1 = pnand %p2005_p10, %p2466_p0 }
  0xe6   : > { %p2013_p6 = por %p2012_p5, %p2011_p4 }
  0xe7   : > { %p2007_p12 = pneg %p2006_p1 }
  0xe9   : > { %p2014_p9 = pnand %p2013_p6, %p2007_p12 }
  0xeb   : > { %2017 = shalt.err (!%p2014_p9)  }
  0xec   : > { %1678 = dma.hbm_to_vmem [thread:$0]  (%p2466_p0), %s508_s19, 256, %s521_s13, %s512_s29  ;;  %v1791_v3 = vld [vmem:[#allocation7 + $0x8] sm:$0xff]   ;;  %1566 = vmatprep.subr.bf16.mxu1 %v1790_v2  ;;  %v2495_v4 = vsub.s32 2, %v2476_v1  ;;  %vm583_vm0 = vcmp.lt.s32.totalorder %v2476_v1, 2  ;;  %v1792_v5 = vld [vmem:[#allocation7 + $0x10] sm:$0xff]   ;;  %v2499_v6 = vsub.s32 0, %v2476_v1 }
  0xed   : > { %1567 = vmatpush3.bf16.msra.mxu1 %v1790_v2  ;;  %v2502_v7 = vsub.s32 1, %v2476_v1  ;;  %v2505_v8 = vsub.s32 3, %v2476_v1  ;;  %vm604_vm1 = vcmp.lt.s32.totalorder %v2476_v1, 1  ;;  %vm625_vm2 = vcmp.lt.s32.totalorder %v2476_v1, 7  ;;  %v2510_v9 = vld [vmem:[%s2463_s9] sm:$0xff]  ;;  %v2513_v10 = vld [vmem:[%s2463_s9 + $0x8] sm:$0xff] }
  0xee   : > { %1568 = vmatprep.subr.bf16.mxu1 %v1791_v3  ;;  %vm646_vm3 = vcmp.lt.s32.totalorder %v2476_v1, 6  ;;  %v2517_v11 = vsub.s32 4, %v2476_v1  ;;  %v2520_v12 = vunpack.c.l.bf16 %v2510_v9  ;;  %v2523_v13 = vunpack.c.h.bf16 %v2510_v9  ;;  %v1793_v16 = vld [vmem:[#allocation7 + $0x18] sm:$0xff]   ;;  %v1794_v26 = vld [vmem:[#allocation7 + $0x20] sm:$0xff]   ;;  %v1795_v43 = vld [vmem:[#allocation7 + $0x28] sm:$0xff]   ;;  %s1480_s13 = sadd.s32 4294967288, %s2422_s15 }
  0xef   : > { %v2526_v14 = vunpack.c.l.bf16 %v2513_v10  ;;  %v2529_v15 = vunpack.c.h.bf16 %v2513_v10  ;;  %v553_v17 = vld [vmem:[#allocation4] sm:$0x1f]  ;;  %v1796_v56 = vld [vmem:[#allocation7 + $0x30] sm:$0xff]   ;;  %s2882_s29 = sld [smem:[#allocation37_spill]]  ;;  %s2883_s27 = sld [smem:[#allocation38_spill]] }
  0xf0   : > { %v574_v18 = vrot.slane %v553_v17, %v2495_v4  ;;  %v591_v19 = vrot.slane %v553_v17, %v2499_v6  ;;  %v2534_v20 = vrot.slane %v553_v17, %v2502_v7  ;;  %v2537_v21 = vrot.slane %v553_v17, %v2505_v8  ;;  %s1654_s2 = smul.u32 6, %s2114_s25  ;;  %s1518_s18 = sshll.u32 %s2110_s24, 1 }
  0xf1   : > { %1569 = vmatpush3.bf16.msra.mxu1 %v1791_v3  ;;  %v579_v22 = vrot.slane %v2520_v12, 6  ;;  %v580_v23 = vrot.slane %v2523_v13, 6  ;;  %v582_v24 = vrot.slane %v2529_v15, 6  ;;  %v600_v25 = vrot.slane %v2520_v12, 7  ;;  %s2884_s1 = sld [smem:[#allocation31_spill]]  ;;  %s2885_s19 = sld [smem:[#allocation39_spill]] }
  0xf2   : > { %1570 = vmatprep.subr.bf16.mxu1 %v1792_v5  ;;  %v575_v27 = vmul.f32 %v574_v18, %v2520_v12  ;;  %v576_v28 = vmul.f32 %v574_v18, %v2523_v13  ;;  %v601_v29 = vrot.slane %v2523_v13, 7  ;;  %v603_v30 = vrot.slane %v2529_v15, 7  ;;  %s1305_s16 = sadd.s32 %s1654_s2, %s1518_s18  ;;  %s2886_s21 = sand.u32 1, %s2102_s22  }
  0xf3   : > { %v586_v31 = vsel %vm583_vm0, %v579_v22, %v580_v23  ;;  %v587_v32 = vsel %vm583_vm0, %v582_v24, %v579_v22  ;;  %v621_v33 = vrot.slane %v2520_v12, 1  ;;  %v622_v34 = vrot.slane %v2523_v13, 1  ;;  %s1519_s12 = sshll.u32 %s1305_s16, 7  ;;  %s2762_s15 = scalar_lea.sflag [#allocation6], %s2886_s21 }
  0xf4   : > { %v592_v35 = vmul.f32 %v591_v19, %v587_v32  ;;  %v593_v36 = vmul.f32 %v591_v19, %v586_v31  ;;  %v607_v37 = vsel %vm604_vm1, %v600_v25, %v601_v29  ;;  %v608_v38 = vsel %vm604_vm1, %v603_v30, %v600_v25  ;;  %s2138_s28 = smov [#allocation13]  }
  0xf5   : > { %1571 = vmatpush3.bf16.msra.mxu1 %v1792_v5  ;;  %v613_v39 = vmul.f32 %v2534_v20, %v608_v38  ;;  %v614_v40 = vmul.f32 %v2534_v20, %v607_v37  ;;  %v623_v41 = vrot.slane %v2526_v14, 1  ;;  %v628_v42 = vsel %vm625_vm2, %v621_v33, %v622_v34  ;;  %v1798_v37 = vld [vmem:[#allocation9] sm:$0xff]   ;;  %s2022_s20 = sshll.u32 %s2138_s28, 4  ;;  %s2023_s20 = int_to_ptr.vmem [resolvable:$false] %s2022_s20 }
  0xf6   : > { %1572 = vmatprep.subr.bf16.mxu1 %v1793_v16  ;;  %v596_v44 = vadd.f32 %v592_v35, %v575_v27  ;;  %v597_v45 = vadd.f32 %v593_v36, %v576_v28  ;;  %v634_v46 = vmul.f32 %v2537_v21, %v628_v42  ;;  %v642_v47 = vrot.slane %v2520_v12, 2  ;;  %v1799_v42 = vld [vmem:[#allocation9 + $0x8] sm:$0xff]   ;;  %s2024_s14 = scalar_lea.vmem %s2023_s20, 512 }
  0xf7   : > { %v627_v48 = vsel %vm625_vm2, %v622_v34, %v623_v41  ;;  %v643_v49 = vrot.slane %v2523_v13, 2  ;;  %v644_v50 = vrot.slane %v2526_v14, 2  ;;  %v654_v51 = vrot.slane %v553_v17, %v2517_v11  ;;  %s2757_s9 = scalar_lea.hbm %s2885_s19, %s1519_s12  ;;  %p2887_p7 = scmp.ne.s32.totalorder %s2884_s1, 0 }
  0xf8   : > { %v617_v52 = vadd.f32 %v613_v39, %v596_v44  ;;  %v618_v53 = vadd.f32 %v614_v40, %v597_v45  ;;  %v635_v54 = vmul.f32 %v2537_v21, %v627_v48  ;;  %v577_v55 = vmul.f32 %v574_v18, %v2526_v14  ;;  %v1801_v44 = vld [vmem:[#allocation9 + $0x18] sm:$0xff]   ;;  %v1802_v45 = vld [vmem:[#allocation9 + $0x20] sm:$0xff]  }
  0xf9   : > { %1573 = vmatpush3.bf16.msra.mxu1 %v1793_v16  ;;  %v648_v57 = vsel %vm646_vm3, %v643_v49, %v644_v50  ;;  %v649_v58 = vsel %vm646_vm3, %v642_v47, %v643_v49  ;;  %v578_v59 = vmul.f32 %v574_v18, %v2529_v15  ;;  %v581_v60 = vrot.slane %v2526_v14, 6  ;;  %v1805_v48 = vld [vmem:[#allocation9 + $0x38] sm:$0xff]   ;;  %v1806_v49 = vld [vmem:[#allocation10] sm:$0xff]  }
  0xfa   : > { %1574 = vmatprep.subr.bf16.mxu1 %v1794_v26  ;;  %v638_v61 = vadd.f32 %v634_v46, %v617_v52  ;;  %v639_v62 = vadd.f32 %v635_v54, %v618_v53  ;;  %v655_v63 = vmul.f32 %v654_v51, %v649_v58  ;;  %v656_v0 = vmul.f32 %v654_v51, %v648_v57  ;;  %v1803_v46 = vld [vmem:[#allocation9 + $0x28] sm:$0xff]  }
  0xfb   : > { %v584_v2 = vsel %vm583_vm0, %v581_v60, %v582_v24  ;;  %v585_v3 = vsel %vm583_vm0, %v580_v23, %v581_v60  ;;  %v602_v5 = vrot.slane %v2526_v14, 7  ;;  %v624_v12 = vrot.slane %v2529_v15, 1  ;;  %v772_v60 = vld [vmem:[%s2818_s4] sm:$0x1f] }
  0xfc   : > { %v659_v13 = vadd.f32 %v655_v63, %v638_v61  ;;  %v660_v16 = vadd.f32 %v656_v0, %v639_v62  ;;  %v594_v17 = vmul.f32 %v591_v19, %v585_v3  ;;  %v595_v18 = vmul.f32 %v591_v19, %v584_v2  ;;  %v1797_v19 = vld [vmem:[#allocation7 + $0x38] sm:$0xff]  }
  0xfd   : > { %1575 = vmatpush3.bf16.msra.mxu1 %v1794_v26  ;;  %v605_v22 = vsel %vm604_vm1, %v602_v5, %v603_v30  ;;  %v606_v25 = vsel %vm604_vm1, %v601_v29, %v602_v5  ;;  %v626_v24 = vsel %vm625_vm2, %v623_v41, %v624_v12  ;;  %v629_v23 = vsel %vm625_vm2, %v624_v12, %v621_v33 }
  0xfe   : > { %1576 = vmatprep.subr.bf16.mxu1 %v1795_v43  ;;  %v663_v14 = vpack.c.bf16 %v660_v16, %v659_v13  ;;  %v598_v26 = vadd.f32 %v594_v17, %v577_v55  ;;  %v599_v27 = vadd.f32 %v595_v18, %v578_v59  ;;  %v615_v28 = vmul.f32 %v2534_v20, %v606_v25  ;;  %v1481_v59 = vld [vmem:[%s2817_s3] ss:$0 sm:$0xff] }
  0xff   : > { %v616_v31 = vmul.f32 %v2534_v20, %v605_v22  ;;  %v636_v30 = vmul.f32 %v2537_v21, %v626_v24  ;;  %v637_v29 = vmul.f32 %v2537_v21, %v629_v23  ;;  %v645_v32 = vrot.slane %v2529_v15, 2 }
 0x100   : > { %1582 = vmatprep.mubr.bf16.mxu1 %v663_v14  ;;  %v619_v34 = vadd.f32 %v615_v28, %v598_v26  ;;  %v533_v52 = vadd.s32 16, %v2476_v1  ;;  %v536_v53 = vstv %s1480_s13  ;;  %v534_v54 = vadd.s32 24, %v2476_v1  ;;  %s1308_s13 = sshll.u32 %s2461_s17, 4  ;;  %s2751_s13 = int_to_ptr.vmem [resolvable:$true] %s1308_s13 }
 0x101   : > { %1577 = vmatpush3.bf16.msra.mxu1 %v1795_v43  ;;  %v620_v35 = vadd.f32 %v616_v31, %v599_v27  ;;  %v647_v33 = vsel %vm646_vm3, %v644_v50, %v645_v32  ;;  %v650_v36 = vsel %vm646_vm3, %v645_v32, %v642_v47  ;;  %v1800_v43 = vld [vmem:[#allocation9 + $0x10] sm:$0xff]   ;;  %v2136_v50 = vmov 0.0   ;;  %s2018_s26 = scalar_lea.vmem %s2751_s13, 256  ;;  %p2025_p3 = scmp.lt.s32.totalorder %s2751_s13, %s2023_s20 }
 0x102   : > { %1578 = vmatprep.subr.bf16.mxu1 %v1796_v56  ;;  %v640_v38 = vadd.f32 %v636_v30, %v619_v34  ;;  %v657_v39 = vmul.f32 %v654_v51, %v647_v33  ;;  %v658_v20 = vmul.f32 %v654_v51, %v650_v36  ;;  %v1804_v47 = vld [vmem:[#allocation9 + $0x30] sm:$0xff]   ;;  %1606 = vmatprep.subr.bf16.mxu0 %v2136_v50  ;;  %v1807_v51 = vld [vmem:[#allocation10 + $0x8] sm:$0xff]   ;;  %v532_v57 = vadd.s32 8, %v2476_v1  ;;  %p2019_p0 = scmp.ne.s32.totalorder %s2751_s13, %s2018_s26  ;;  %p2026_p2 = scmp.lt.s32.totalorder %s2024_s14, %s2018_s26 }
 0x103   : > { %v641_v40 = vadd.f32 %v637_v29, %v620_v35  ;;  %1607 = vmatpush3.bf16.msra.mxu0 %v1806_v49  ;;  %v539_v55 = vadd.s32 %v536_v53, %v533_v52  ;;  %v540_v58 = vadd.s32 %v536_v53, %v534_v54  ;;  %v797_v3 = vrot.slane %v772_v60, %v2495_v4 }
 0x104   : > { %v661_v41 = vadd.f32 %v657_v39, %v640_v38  ;;  %1608 = vmatprep.subr.bf16.mxu0 %v2136_v50  ;;  %v538_v62 = vadd.s32 %v536_v53, %v532_v57  ;;  %v813_v26 = vrot.slane %v772_v60, %v2499_v6  ;;  %v833_v28 = vrot.slane %v772_v60, %v2502_v7  ;;  %p2020_p11 = pnand %p2019_p0, %p2887_p7  ;;  %p2027_p8 = por %p2026_p2, %p2025_p3 }
 0x105   : > { %1579 = vmatpush3.bf16.msra.mxu1 %v1796_v56  ;;  %v662_v21 = vadd.f32 %v658_v20, %v641_v40  ;;  %v537_v56 = vadd.s32 %v536_v53, %v2476_v1  ;;  %vm543_vm4 = vcmp.ge.s32.totalorder %v539_v55, 0  ;;  %vm547_vm5 = vcmp.lt.s32.totalorder %v539_v55, 40  ;;  %v1815_v1 = vld [vmem:[#allocation12 + $0x8] sm:$0xff]  }
 0x106   : > { %1580 = vmatprep.subr.bf16.mxu1 %v1797_v19  ;;  %vm544_vm8 = vcmp.ge.s32.totalorder %v540_v58, 0  ;;  %vm548_vm9 = vcmp.lt.s32.totalorder %v540_v58, 40  ;;  %vm2614_vm10 = vmand %vm543_vm4, %vm547_vm5  ;;  %vm542_vm13 = vcmp.ge.s32.totalorder %v538_v62, 0  ;;  %vm546_vm14 = vcmp.lt.s32.totalorder %v538_v62, 40  ;;  %p2021_p13 = pneg %p2020_p11 }
 0x107   : > { %v664_v15 = vpack.c.bf16 %v662_v21, %v661_v41  ;;  %1609 = vmatpush3.bf16.msra.mxu0 %v1807_v51  ;;  %vm541_vm6 = vcmp.ge.s32.totalorder %v537_v56, 0  ;;  %vm545_vm7 = vcmp.lt.s32.totalorder %v537_v56, 40  ;;  %vm2623_vm12 = vmand %vm544_vm8, %vm548_vm9  ;;  %v2636_v31 = vrot.slane %v772_v60, %v2517_v11 }
 0x108   : > { %1610 = vmatprep.subr.bf16.mxu0 %v2136_v50  ;;  %vm2619_vm11 = vmand %vm541_vm6, %vm545_vm7  ;;  %vm2137_vm4 = vmmov 0   ;;  %p2028_p10 = pnand %p2027_p8, %p2021_p13 }
 0x109   : > { %1581 = vmatpush3.bf16.msra.mxu1 %v1797_v19  ;;  %v853_v19 = vrot.slane %v772_v60, %v2505_v8  ;;  %vm2643_vm15 = vmand %vm542_vm13, %vm546_vm14  ;;  %1622 = vmatprep.mubr.msk.bf16.mxu0 %vm2137_vm4, %v2136_v50 }
 0x10a   : > { %1586 = vmatprep.subr.bf16.mxu1 %v1798_v37 }
 0x10c   : > { %1583 = vmatmul.mubr.bf16.vlgmr.msra.gmra.mrb[0].mxu1 %v664_v15 }
 0x10d   : > { %1587 = vmatpush3.bf16.msra.mxu1 %v1798_v37 }
 0x10e   : > { %1588 = vmatprep.subr.bf16.mxu1 %v1799_v42 }
 0x111   : > { %1589 = vmatpush3.bf16.msra.mxu1 %v1799_v42 }
 0x112   : > { %1590 = vmatprep.subr.bf16.mxu1 %v1800_v43 }
 0x115   : > { %1591 = vmatpush3.bf16.msra.mxu1 %v1800_v43 }
 0x116   : > { %1592 = vmatprep.subr.bf16.mxu1 %v1801_v44 }
 0x119   : > { %1593 = vmatpush3.bf16.msra.mxu1 %v1801_v44 }
 0x11a   : > { %1594 = vmatprep.subr.bf16.mxu1 %v1802_v45 }
 0x11d   : > { %1595 = vmatpush3.bf16.msra.mxu1 %v1802_v45 }
 0x11e   : > { %1596 = vmatprep.subr.bf16.mxu1 %v1803_v46 }
 0x121   : > { %1597 = vmatpush3.bf16.msra.mxu1 %v1803_v46 }
 0x122   : > { %1598 = vmatprep.subr.bf16.mxu1 %v1804_v47 }
 0x125   : > { %1599 = vmatpush3.bf16.msra.mxu1 %v1804_v47 }
 0x126   : > { %1600 = vmatprep.subr.bf16.mxu1 %v1805_v48 }
 0x129   : > { %1601 = vmatpush3.bf16.msra.mxu1 %v1805_v48 }
 0x1df   : > { %v1584_v61 = vpop.f32.mrb[0].mxu1 }
 0x1e0   : > { %v762_v63 = vadd.f32 %v1584_v61, %v1481_v59  ;;  %v753_v0 = vpop.f32.mrb[1].mxu1 }
 0x1e1   : > { %v754_v5 = vadd.f32 %v1481_v59, %v753_v0  ;;  %v1585_v12 = vpop.f32.mrb[2].mxu1 }
 0x1e2   : > { %v770_v13 = vmax.f32 %v762_v63, 0.0  ;;  %v765_v17 = vadd.f32 %v1585_v12, %v1481_v59  ;;  %v756_v18 = vpop.f32.mrb[3].mxu1 }
 0x1e3   : > { %v768_v22 = vmax.f32 %v754_v5, 0.0  ;;  %v757_v24 = vadd.f32 %v1481_v59, %v756_v18 }
 0x1e4   : > { %v2629_v23 = vsel %vm2614_vm10, %v770_v13, 0.0  ;;  %v771_v14 = vmax.f32 %v765_v17, 0.0 }
 0x1e5   : > { %v800_v27 = vmul.f32 %v797_v3, %v2629_v23  ;;  %v804_v30 = vrot.slane %v2629_v23, 6  ;;  %v790_v29 = vsel %vm2619_vm11, %v768_v22, 0.0  ;;  %v769_v35 = vmax.f32 %v757_v24, 0.0 }
 0x1e6   : > { %v793_v32 = vsel %vm2623_vm12, %v771_v14, 0.0  ;;  %v824_v33 = vrot.slane %v2629_v23, 7  ;;  %v844_v36 = vrot.slane %v2629_v23, 1  ;;  %v802_v37 = vrot.slane %v790_v29, 6 }
 0x1e7   : > { %v842_v38 = vrot.slane %v790_v29, 1  ;;  %v864_v39 = vrot.slane %v2629_v23, 2  ;;  %v798_v20 = vmul.f32 %v797_v3, %v790_v29  ;;  %v805_v40 = vrot.slane %v793_v32, 6 }
 0x1e8   : > { %v825_v41 = vrot.slane %v793_v32, 7  ;;  %v822_v21 = vrot.slane %v790_v29, 7  ;;  %v862_v15 = vrot.slane %v790_v29, 2  ;;  %v845_v42 = vrot.slane %v793_v32, 1 }
 0x1e9   : > { %v791_v43 = vsel %vm2643_vm15, %v769_v35, 0.0  ;;  %v801_v44 = vmul.f32 %v797_v3, %v793_v32  ;;  %v806_v45 = vsel %vm583_vm0, %v804_v30, %v805_v40  ;;  %v809_v46 = vsel %vm583_vm0, %v805_v40, %v802_v37 }
 0x1ea   : > { %v826_v47 = vsel %vm604_vm1, %v824_v33, %v825_v41  ;;  %v817_v48 = vmul.f32 %v813_v26, %v806_v45  ;;  %v846_v49 = vsel %vm625_vm2, %v844_v36, %v845_v42  ;;  %v849_v51 = vsel %vm625_vm2, %v845_v42, %v842_v38 }
 0x1eb   : > { %v865_v52 = vrot.slane %v793_v32, 2  ;;  %v837_v53 = vmul.f32 %v833_v28, %v826_v47  ;;  %v803_v54 = vrot.slane %v791_v43, 6  ;;  %v823_v55 = vrot.slane %v791_v43, 7 }
 0x1ec   : > { %v843_v56 = vrot.slane %v791_v43, 1  ;;  %v821_v57 = vadd.f32 %v817_v48, %v801_v44  ;;  %v863_v58 = vrot.slane %v791_v43, 2  ;;  %v814_v59 = vmul.f32 %v813_v26, %v809_v46 }
 0x1ed   : > { %v829_v60 = vsel %vm604_vm1, %v825_v41, %v822_v21  ;;  %v807_v61 = vsel %vm583_vm0, %v803_v54, %v804_v30  ;;  %v808_v62 = vsel %vm583_vm0, %v802_v37, %v803_v54  ;;  %v827_v63 = vsel %vm604_vm1, %v823_v55, %v824_v33  ;;  %v1808_v54 = vld [vmem:[#allocation10 + $0x10] sm:$0xff]  }
 0x1ee   : > { %v828_v0 = vsel %vm604_vm1, %v822_v21, %v823_v55  ;;  %v841_v5 = vadd.f32 %v837_v53, %v821_v57  ;;  %v799_v12 = vmul.f32 %v797_v3, %v791_v43  ;;  %v815_v13 = vmul.f32 %v813_v26, %v808_v62  ;;  %1611 = vmatpush3.bf16.msra.mxu0 %v1808_v54  ;;  %v1811_v55 = vld [vmem:[#allocation10 + $0x28] sm:$0xff]   ;;  %v1490_v57 = vld [vmem:[%s2820_s6] ss:$0 sm:$0xff] }
 0x1ef   : > { %v816_v17 = vmul.f32 %v813_v26, %v807_v61  ;;  %v818_v18 = vadd.f32 %v814_v59, %v798_v20  ;;  %v834_v22 = vmul.f32 %v833_v28, %v829_v60  ;;  %v847_v24 = vsel %vm625_vm2, %v843_v56, %v844_v36  ;;  %1612 = vmatprep.subr.bf16.mxu0 %v2136_v50 }
 0x1f0   : > { %v856_v23 = vmul.f32 %v853_v19, %v846_v49  ;;  %v819_v14 = vadd.f32 %v815_v13, %v799_v12  ;;  %v835_v30 = vmul.f32 %v833_v28, %v828_v0  ;;  %v848_v29 = vsel %vm625_vm2, %v842_v38, %v843_v56  ;;  %v1813_v56 = vld [vmem:[#allocation10 + $0x38] sm:$0xff]  }
 0x1f1   : > { %v867_v32 = vsel %vm646_vm3, %v863_v58, %v864_v39  ;;  %v836_v35 = vmul.f32 %v833_v28, %v827_v63  ;;  %v838_v33 = vadd.f32 %v834_v22, %v818_v18  ;;  %v854_v37 = vmul.f32 %v853_v19, %v848_v29  ;;  %v991_v0 = vld [vmem:[%s2821_s7] sm:$0x1f] }
 0x1f2   : > { %v868_v3 = vsel %vm646_vm3, %v862_v15, %v863_v58  ;;  %v839_v26 = vadd.f32 %v835_v30, %v819_v14  ;;  %v855_v20 = vmul.f32 %v853_v19, %v847_v24  ;;  %v820_v40 = vadd.f32 %v816_v17, %v800_v27 }
 0x1f3   : > { %v857_v41 = vmul.f32 %v853_v19, %v849_v51  ;;  %v858_v36 = vadd.f32 %v854_v37, %v838_v33  ;;  %v874_v21 = vmul.f32 %v2636_v31, %v868_v3  ;;  %v866_v42 = vsel %vm646_vm3, %v864_v39, %v865_v52 }
 0x1f4   : > { %v869_v38 = vsel %vm646_vm3, %v865_v52, %v862_v15  ;;  %v859_v43 = vadd.f32 %v855_v20, %v839_v26  ;;  %v875_v28 = vmul.f32 %v2636_v31, %v867_v32  ;;  %v840_v44 = vadd.f32 %v836_v35, %v820_v40  ;;  %v1809_v15 = vld [vmem:[#allocation10 + $0x18] sm:$0xff]   ;;  %v1810_v52 = vld [vmem:[#allocation10 + $0x20] sm:$0xff]  }
 0x1f5   : > { %v861_v45 = vadd.f32 %v857_v41, %v841_v5  ;;  %v878_v46 = vadd.f32 %v874_v21, %v858_v36  ;;  %v877_v47 = vmul.f32 %v2636_v31, %v869_v38  ;;  %v876_v19 = vmul.f32 %v2636_v31, %v866_v42  ;;  %1613 = vmatpush3.bf16.msra.mxu0 %v1809_v15  ;;  %v1812_v31 = vld [vmem:[#allocation10 + $0x30] sm:$0xff]  }
 0x1f6   : > { %v879_v48 = vadd.f32 %v875_v28, %v859_v43  ;;  %v860_v27 = vadd.f32 %v856_v23, %v840_v44  ;;  %1614 = vmatprep.subr.bf16.mxu0 %v2136_v50  ;;  %v1016_v24 = vrot.slane %v991_v0, %v2495_v4  ;;  %v1053_v23 = vrot.slane %v991_v0, %v2505_v8 }
 0x1f7   : > { %v881_v49 = vadd.f32 %v877_v47, %v861_v45  ;;  %v1027_v32 = vrot.slane %v991_v0, %v2499_v6  ;;  %v1040_v8 = vrot.slane %v991_v0, %v2502_v7 }
 0x1f8   : > { %v882_v51 = vpack.c.bf16 %v879_v48, %v878_v46  ;;  %v880_v53 = vadd.f32 %v876_v19, %v860_v27  ;;  %v1066_v48 = vrot.slane %v991_v0, %v2517_v11  ;;  %v1816_v11 = vld [vmem:[#allocation12 + $0x10] sm:$0xff]  }
 0x1f9   : > { %1615 = vmatpush3.bf16.msra.mxu0 %v1810_v52  ;;  %v1820_v0 = vld [vmem:[#allocation12 + $0x30] sm:$0xff]  }
 0x1fa   : > { %1602 = vmatprep.mubr.bf16.mxu1 %v882_v51  ;;  %v883_v39 = vpack.c.bf16 %v881_v49, %v880_v53  ;;  %1616 = vmatprep.subr.bf16.mxu0 %v2136_v50 }
 0x1fc   : > { %1603 = vmatmul.mubr.bf16.vlgmr.msra.gmra.mrb[4].mxu1 %v883_v39 }
 0x1fd   : > { %1617 = vmatpush3.bf16.msra.mxu0 %v1811_v55 }
 0x1fe   : > { %1618 = vmatprep.subr.bf16.mxu0 %v2136_v50 }
 0x201   : > { %1619 = vmatpush3.bf16.msra.mxu0 %v1812_v31 }
 0x202   : > { %1620 = vmatprep.subr.bf16.mxu0 %v2136_v50 }
 0x205   : > { %1621 = vmatpush3.bf16.msra.mxu0 %v1813_v56 }
 0x206   : > { %1626 = vmatprep.subr.bf16.mxu0 %v2136_v50 }
 0x2cf   : > { %v1604_v58 = vpop.f32.mrb[4].mxu1 }
 0x2d0   : > { %v981_v59 = vadd.f32 %v1604_v58, %v1490_v57  ;;  %v972_v60 = vpop.f32.mrb[5].mxu1 }
 0x2d1   : > { %v973_v61 = vadd.f32 %v1490_v57, %v972_v60  ;;  %v1605_v62 = vpop.f32.mrb[6].mxu1 }
 0x2d2   : > { %v989_v63 = vmax.f32 %v981_v59, 0.0  ;;  %v984_v5 = vadd.f32 %v1605_v62, %v1490_v57  ;;  %v975_v12 = vpop.f32.mrb[7].mxu1  ;;  %v1814_v59 = vld [vmem:[#allocation12] sm:$0xff]  }
 0x2d3   : > { %v987_v13 = vmax.f32 %v973_v61, 0.0  ;;  %v976_v17 = vadd.f32 %v1490_v57, %v975_v12  ;;  %v1817_v61 = vld [vmem:[#allocation12 + $0x18] sm:$0xff]   ;;  %v1818_v62 = vld [vmem:[#allocation12 + $0x20] sm:$0xff]   ;;  %v1193_v12 = vrot.slane %v2510_v9, 4 }
 0x2d4   : > { %v1011_v18 = vsel %vm2614_vm10, %v989_v63, 0.0  ;;  %v990_v22 = vmax.f32 %v984_v5, 0.0  ;;  %v1819_v63 = vld [vmem:[#allocation12 + $0x28] sm:$0xff]   ;;  %v1821_v5 = vld [vmem:[#allocation12 + $0x38] sm:$0xff]  }
 0x2d5   : > { %v1009_v14 = vsel %vm2619_vm11, %v987_v13, 0.0  ;;  %v988_v29 = vmax.f32 %v976_v17, 0.0  ;;  %v1046_v35 = vrot.slane %v1011_v18, 1  ;;  %v1059_v33 = vrot.slane %v1011_v18, 2 }
 0x2d6   : > { %v1012_v30 = vsel %vm2623_vm12, %v990_v22, 0.0  ;;  %v1021_v2 = vrot.slane %v1011_v18, 6  ;;  %v1034_v26 = vrot.slane %v1011_v18, 7  ;;  %v1019_v20 = vrot.slane %v1009_v14, 6  ;;  %v1508_v22 = vld [vmem:[%s2883_s27] ss:$0 sm:$0xff] }
 0x2d7   : > { %v1047_v37 = vrot.slane %v1012_v30, 1  ;;  %v1060_v3 = vrot.slane %v1012_v30, 2  ;;  %v1010_v4 = vsel %vm2643_vm15, %v988_v29, 0.0  ;;  %v1032_v6 = vrot.slane %v1009_v14, 7 }
 0x2d8   : > { %v1020_v40 = vrot.slane %v1010_v4, 6  ;;  %v1033_v41 = vrot.slane %v1010_v4, 7  ;;  %v1045_v36 = vrot.slane %v1010_v4, 1  ;;  %v1058_v21 = vrot.slane %v1010_v4, 2 }
 0x2d9   : > { %v1048_v16 = vsel %vm625_vm2, %v1046_v35, %v1047_v37  ;;  %v1061_v25 = vsel %vm646_vm3, %v1059_v33, %v1060_v3  ;;  %v1018_v42 = vmul.f32 %v1016_v24, %v1011_v18  ;;  %v1017_v38 = vmul.f32 %v1016_v24, %v1010_v4  ;;  %v1499_v18 = vld [vmem:[%s2882_s29] ss:$0 sm:$0xff] }
 0x2da   : > { %v1022_v34 = vsel %vm583_vm0, %v1020_v40, %v1021_v2  ;;  %v1023_v7 = vsel %vm583_vm0, %v1019_v20, %v1020_v40  ;;  %v1035_v44 = vsel %vm604_vm1, %v1033_v41, %v1034_v26  ;;  %v1036_v45 = vsel %vm604_vm1, %v1032_v6, %v1033_v41 }
 0x2db   : > { %v1028_v43 = vmul.f32 %v1027_v32, %v1023_v7  ;;  %v1029_v28 = vmul.f32 %v1027_v32, %v1022_v34  ;;  %v1049_v46 = vsel %vm625_vm2, %v1045_v36, %v1046_v35  ;;  %v1062_v47 = vsel %vm646_vm3, %v1058_v21, %v1059_v33 }
 0x2dc   : > { %v1041_v49 = vmul.f32 %v1040_v8, %v1036_v45  ;;  %v1042_v51 = vmul.f32 %v1040_v8, %v1035_v44  ;;  %v1055_v53 = vmul.f32 %v1053_v23, %v1048_v16  ;;  %v1054_v15 = vmul.f32 %v1053_v23, %v1049_v46 }
 0x2dd   : > { %v1030_v27 = vadd.f32 %v1028_v43, %v1017_v38  ;;  %v1031_v19 = vadd.f32 %v1029_v28, %v1018_v42  ;;  %v1067_v31 = vmul.f32 %v1066_v48, %v1062_v47  ;;  %v1068_v56 = vmul.f32 %v1066_v48, %v1061_v25 }
 0x2de   : > { %v1194_v13 = vrot.slane %v2513_v10, 4  ;;  %vm1192_vm0 = vcmask 1043456   ;;  %v1646_v9 = vadd.f32 %v1508_v22, %v1499_v18 }
 0x2df   : > { %v1043_v39 = vadd.f32 %v1041_v49, %v1030_v27  ;;  %v1044_v54 = vadd.f32 %v1042_v51, %v1031_v19 }
 0x2e0   : > { %v1195_v17 = vsel %vm1192_vm0, %v1193_v12, %v1194_v13 }
 0x2e1   : > { %v1056_v52 = vadd.f32 %v1054_v15, %v1043_v39  ;;  %v1057_v55 = vadd.f32 %v1055_v53, %v1044_v54 }
 0x2e3   : > { %v1069_v57 = vadd.f32 %v1067_v31, %v1056_v52  ;;  %v1070_v58 = vadd.f32 %v1068_v56, %v1057_v55 }
 0x2e5   : > { %v1071_v60 = vpack.c.bf16 %v1070_v58, %v1069_v57 }
 0x2e7   : > { %1623 = vmatmul.mubr.bf16.vlgmr.msra.gmra.mrb[0].mxu0 %v1071_v60 }
 0x2e8   : > { %1627 = vmatpush3.bf16.msra.mxu0 %v1814_v59  ;;  %1642 = vmatprep.mubr.msk.bf16.mxu0 %vm2137_vm4, %v2136_v50 }
 0x2e9   : > { %1628 = vmatprep.subr.bf16.mxu0 %v2136_v50 }
 0x2ec   : > { %1629 = vmatpush3.bf16.msra.mxu0 %v1815_v1 }
 0x2ed   : > { %1630 = vmatprep.subr.bf16.mxu0 %v2136_v50 }
 0x2f0   : > { %1631 = vmatpush3.bf16.msra.mxu0 %v1816_v11 }
 0x2f1   : > { %1632 = vmatprep.subr.bf16.mxu0 %v2136_v50 }
 0x2f4   : > { %1633 = vmatpush3.bf16.msra.mxu0 %v1817_v61 }
 0x2f5   : > { %1634 = vmatprep.subr.bf16.mxu0 %v2136_v50 }
 0x2f8   : > { %1635 = vmatpush3.bf16.msra.mxu0 %v1818_v62 }
 0x2f9   : > { %1636 = vmatprep.subr.bf16.mxu0 %v2136_v50 }
 0x2fc   : > { %1637 = vmatpush3.bf16.msra.mxu0 %v1819_v63 }
 0x2fd   : > { %1638 = vmatprep.subr.bf16.mxu0 %v2136_v50 }
 0x300   : > { %1639 = vmatpush3.bf16.msra.mxu0 %v1820_v0 }
 0x301   : > { %1640 = vmatprep.subr.bf16.mxu0 %v2136_v50 }
 0x304   : > { %1641 = vmatpush3.bf16.msra.mxu0 %v1821_v5 }
 0x307   : > { %1643 = vmatmul.mubr.bf16.vlgmr.msra.gmra.mrb[0].mxu0 %v1195_v17 }
 0x3da   : > { %v1279_v10 = vpop.f32.mrb[0].mxu0 }
 0x3db   : > { %v1647_v50 = vadd.f32 %v1646_v9, %v1279_v10  ;;  %v1644_v24 = vpop.f32.mrb[1].mxu0 }
 0x3dc   : > { %v1282_v23 = vpop.f32.mrb[2].mxu0 }
 0x3dd   : > { %v1288_v14 = vmax.f32 %v1647_v50, 0.0  ;;  %v1649_v30 = vadd.f32 %v1646_v9, %v1282_v23  ;;  %v1645_v29 = vpop.f32.mrb[3].mxu0 }
 0x3df   : > { %1290 = vst [vmem:[%s2461_s17] sm:$0xff] %v1288_v14  ;;  %v1289_v32 = vmax.f32 %v1649_v30, 0.0 }
 0x3e1   : > { %1291 = vst [vmem:[%s2461_s17 + $0x8] sm:$0xff] %v1289_v32 }
 0x3e2   : > { %2031 = shalt.err (!%p2028_p10)
}
 0x3e3   : > { %s2032_s17 = scalar_lea.hbm %s2757_s9, 256  ;;  %s2036_s30 = scalar_lea.hbm %s2885_s19, 1536 }
 0x3e4   : > { %p2033_p1 = scmp.ne.s32.totalorder %s2757_s9, %s2032_s17  ;;  %p2037_p5 = scmp.lt.u32.totalorder %s2757_s9, %s2885_s19 }
 0x3e5   : > { %p2038_p6 = scmp.lt.u32.totalorder %s2036_s30, %s2032_s17  ;;  %p2040_p0 = scmp.lt.u32.totalorder %s2032_s17, %s2757_s9 }
 0x3e6   : > { %p2034_p12 = pnand %p2033_p1, %p2887_p7 }
 0x3e7   : > { %p2039_p9 = por %p2038_p6, %p2037_p5 }
 0x3e8   : > { %p2035_p4 = pneg %p2034_p12 }
 0x3e9   : > { %p2041_p11 = por %p2040_p0, %p2039_p9 }
 0x3eb   : > { %p2042_p13 = pnand %p2041_p11, %p2035_p4 }
 0x3ed   : > { %2045 = shalt.err (!%p2042_p13)
}
 0x3ee   : > { %s2139_s2 = smov 128   ;;  %s2140_s18 = smov 8  }
 0x3ef   : > { %1679 = dma.vmem_to_hbm [thread:$0]  (%p2887_p7), %s2751_s13, 256, %s2757_s9, %s2762_s15, %s2139_s2, %s2139_s2, %s2140_s18  }
 0x3f0 PF: > { %s2888_s16 = sld [smem:[#allocation29_spill]]  ;;  %s2889_s12 = sld [smem:[#allocation25_spill]] }
 0x3f1   : > { %s2890_s24 = sld [smem:[#allocation33_spill]] }
 0x3f6   : > { %p1713_p3 = scmp.ge.s32.totalorder %s2888_s16, 2  ;;  %s1323_s25 = sand.u32 1, %s2889_s12  }
 0x3f7   : > { %p2891_p2 = scmp.ne.s32.totalorder %s2890_s24, 0  ;;  %s1324_s21 = scalar_lea.sflag [#allocation6], %s1323_s25 }
 0x3f9   : > { %p1698_p8 = pnand %p1713_p3, %p2891_p2 }
 0x3fb   : > { %2093 = dma.done.wait (!%p1698_p8), %s1324_s21, 256  }
 0x3fc   : > { %2095 = vsyncadd (!%p1698_p8), %s1324_s21, 4294967040  ;;  %s28_s28 = sadd.s32 1, %s2888_s16   ;;  %s2892_s26 = sld [smem:[#allocation26_spill]] }
 0x3fd   : > { %p25_p10 = scmp.ge.s32.totalorder %s28_s28, 8   ;;  %s2893_s23 = sld [smem:[#allocation34_spill]] }
 0x3fe   : > { %s2894_s24 = sld [smem:[#allocation27_spill]]  ;;  %s2895_s25 = sld [smem:[#allocation28_spill]] }
 0x3ff   : > { %s2896_s1 = sld [smem:[#allocation30_spill]]  ;;  %s2897_s27 = sld [smem:[#allocation32_spill]] }
 0x400   : > { %s2898_s21 = smov %s2102_s22  ;;  %27 = sbr.rel (!%p25_p10) target bundleno = 14 (0xe), region = 140 }
 0x402   : > { %s2899_s22 = smov %s2892_s26 }
 0x405   : > { %s2900_s26 = smov %s2896_s1 }
 0x407   :  { %1329 = vsyncpa [#allocation5], 1 }
 0x408   :  { %1331 = vsyncpa [#allocation5 + $0x1], 1 }
 0x409   :  { %1332 = vsyncpa [#allocation8], 1 }
 0x40a   :  { %1333 = vsyncpa [#allocation11], 1 }
 0x40b   :  { %1334 = vsyncpa [#allocation6], 1 }
 0x40c   :  { %1336 = vsyncpa [#allocation6 + $0x1], 1 }
 0x40d   :  { %1337 = vsyncmov [#allocation3] }
 0x410   :  { %s1338_s13 = vpop.sfrf %1337 }
 0x411   :  { %p1522_p7 = scmp.ne.s32.totalorder %s1338_s13, 0 }
 0x413   :  { %1342 = shalt.err (%p1522_p7)  }
 0x414   :  { %1344 = vsyncmov [#allocation3 + $0x1] }
 0x417   :  { %s1345_s9 = vpop.sfrf %1344 }
 0x418   :  { %p1523_p1 = scmp.ne.s32.totalorder %s1345_s9, 0 }
 0x41a   :  { %1349 = shalt.err (%p1523_p1)  }

// kernel: tpu_custom_call.1
= control target key start
LH: loop header
LB: loop body
LE: loop exit
PB: predicated region body
PF: predicated region fallthrough
CT: control target
= control target key end

     0   :  { %s2814_s0 = inlined_call_operand.hbm [shape: bf16[2,64,128], index: 0, kind: input, shape index: {}]   ;;  %s2815_s1 = inlined_call_operand.hbm [shape: f32[5,128], index: 1, kind: input, shape index: {}]   ;;  %s2816_s2 = inlined_call_operand.hbm [shape: bf16[128,128], index: 2, kind: input, shape index: {}]   ;;  %s2817_s3 = inlined_call_operand.vmem [shape: f32[1,128], index: 3, kind: input, shape index: {}]   ;;  %s2818_s4 = inlined_call_operand.vmem [shape: f32[5,128], index: 4, kind: input, shape index: {}]   ;;  %s2819_s5 = inlined_call_operand.hbm [shape: bf16[128,128], index: 5, kind: input, shape index: {}]   ;;  %s2820_s6 = inlined_call_operand.vmem [shape: f32[1,128], index: 6, kind: input, shape index: {}]   ;;  %s2821_s7 = inlined_call_operand.vmem [shape: f32[5,128], index: 7, kind: input, shape index: {}]   ;;  %s2822_s8 = inlined_call_operand.hbm [shape: bf16[128,128], index: 8, kind: input, shape index: {}]   ;;  %s2823_s9 = inlined_call_operand.vmem [shape: f32[1,128], index: 9, kind: input, shape index: {}]   ;;  %s2824_s10 = inlined_call_operand.hbm [shape: bf16[128,128], index: 10, kind: input, shape index: {}]   ;;  %s2825_s11 = inlined_call_operand.vmem [shape: f32[1,128], index: 11, kind: input, shape index: {}]   ;;  %s2826_s12 = inlined_call_operand.hbm [shape: f32[2,48,128], index: 12, kind: output, shape index: {}]  }
   0x1   :  { %2846 = sst [smem:[#allocation35_spill]] %s2815_s1 }
   0x2   :  { %2847 = sst [smem:[#allocation36_spill]] %s2816_s2 }
   0x3   :  { %2848 = sst [smem:[#allocation37_spill]] %s2823_s9 }
   0x4   :  { %2849 = sst [smem:[#allocation38_spill]] %s2825_s11 }
   0x5   :  { %2850 = sst [smem:[#allocation39_spill]] %s2826_s12 }
   0x6   :  { %17 = vsyncpa [#allocation5], 0 }
   0x7   :  { %18 = vsyncpa [#allocation8], 0 }
   0x8   :  { %19 = vsyncpa [#allocation11], 0 }
   0x9   :  { %20 = vsyncpa [#allocation6], 0 }
   0xa   :  { %22 = vsyncpa [#allocation6 + $0x1], 0  ;;  %s2206_s21 = smov 0   ;;  %s2208_s22 = smov 0  }
   0xb   :  { %s2210_s23 = smov 0   ;;  %s2212_s24 = smov 0  }
   0xc   :  { %s2214_s25 = smov 0   ;;  %s2216_s26 = smov 0  }
   0xd   :  { %s2218_s27 = smov 0   ;;  %s2220_s28 = smov 0  }
   0xe LB: > { %2851 = sst [smem:[#allocation25_spill]] %s2098_s21  ;;  %s1449_s29 = sadd.s32 4294967295, %s2126_s28   ;;  %s2126_s28 = sphi %s2220_s28, %s28_s28   ;;  %s2122_s27 = sphi %s2218_s27, %s2897_s27   ;;  %s2118_s26 = sphi %s2216_s26, %s2900_s26   ;;  %s2114_s25 = sphi %s2214_s25, %s2895_s25   ;;  %s2110_s24 = sphi %s2212_s24, %s2894_s24   ;;  %s2106_s23 = sphi %s2210_s23, %s2893_s23   ;;  %s2102_s22 = sphi %s2208_s22, %s2899_s22   ;;  %s2098_s21 = sphi %s2206_s21, %s2898_s21  }
   0xf   : > { %2852 = sst [smem:[#allocation26_spill]] %s2106_s23  ;;  %s1450_s30 = sadd.s32 4294967294, %s2126_s28  }
  0x10   : > { %2853 = sst [smem:[#allocation27_spill]] %s2118_s26  ;;  %s37_s13 = sadd.s32 1, %s2118_s26 }
  0x11   : > { %2854 = sst [smem:[#allocation28_spill]] %s2122_s27  ;;  %s40_s14 = sadd.s32 1, %s2122_s27 }
  0x12   : > { %2855 = sst [smem:[#allocation29_spill]] %s2126_s28  ;;  %p38_p0 = scmp.ge.s32.totalorder %s37_s13, 3 }
  0x13   : > { %s280_s15 = sadd.s32 1, %s2106_s23  ;;  %p290_p1 = scmp.ne.s32.totalorder %s2106_s23, %s2102_s22 }
  0x14   : > { %p291_p2 = scmp.eq.s32.totalorder %s1449_s29, 5  ;;  %s2902_s13 = smov (%p38_p0, %s37_s13), 0 }
  0x15   : > { %2856 = sst [smem:[#allocation30_spill]] %s2902_s13  ;;  %s2904_s14 = smov (!%p38_p0, %s40_s14), %s2122_s27 }
  0x16   : > { %s276_s16 = ssub.s32 %s2118_s26, %s2902_s13  ;;  %p2258_p3 = por %p291_p2, %p290_p1 }
  0x17   : > { %p42_p4 = scmp.ge.s32.totalorder %s2904_s14, 2  ;;  %p296_p5 = scmp.ne.s32.totalorder %s2102_s22, %s2098_s21 }
  0x18   : > { %s2857_s17 = scalar_select %p2258_p3, 1, 0 }
  0x19   : > { %p297_p6 = scmp.eq.s32.totalorder %s1450_s30, 5  ;;  %p1451_p7 = scmp.ge.s32.totalorder %s2126_s28, 1 }
  0x1a   : > { %2858 = sst [smem:[#allocation31_spill]] %s2857_s17  ;;  %s2906_s14 = smov (%p42_p4, %s2904_s14), 0 }
  0x1b   : > { %2859 = sst [smem:[#allocation32_spill]] %s2906_s14  ;;  %p2267_p8 = por %p297_p6, %p296_p5 }
  0x1c   : > { %p304_p9 = scmp.lt.s32.totalorder %s2126_s28, 7  ;;  %s275_s19 = ssub.s32 %s2122_s27, %s2906_s14 }
  0x1d   : > { %s2860_s18 = scalar_select %p2267_p8, 1, 0 }
  0x1e   : > { %s277_s20 = sor.u32 %s276_s16, %s275_s19  ;;  %p2274_p10 = pnand %p1451_p7, %p304_p9 }
  0x1f   : > { %2861 = sst [smem:[#allocation33_spill]] %s2860_s18  ;;  %p278_p11 = scmp.eq.s32.totalorder %s277_s20, 0 }
  0x20   : > { %s2862_s13 = scalar_select %p2274_p10, 1, 0 }
  0x21   : > { %p2278_p12 = scmp.eq.s32.totalorder %s1449_s29, 0  ;;  %p1681_p13 = pneg %p2274_p10 }
  0x22   : > { %s2285_s30 = scalar_select %p278_p11, %s2106_s23, %s280_s15  }
  0x23   : > { %s2863_s26 = scalar_select %p2278_p12, 1, 0 }
  0x24   : > { %2864 = sst [smem:[#allocation34_spill]] %s2285_s30  ;;  %p2289_p0 = pnand %p2278_p12, %p1681_p13 }
  0x25   : > { %s2128_s16 = smov [#allocation7]   ;;  %s2866_s2 = sld [smem:[#allocation36_spill]] }
  0x26   : > { %s327_s19 = sshll.u32 %s2128_s16, 4  ;;  %p2301_p2 = pneg %p2289_p0  ;;  %s328_s19 = int_to_ptr.vmem [resolvable:$true] %s327_s19 }
  0x2b   : > { %s1822_s29 = scalar_lea.hbm %s2866_s2, 1024 }
  0x2c   : > { %p1823_p1 = scmp.ne.s32.totalorder %s2866_s2, %s1822_s29  ;;  %p1829_p6 = scmp.lt.u32.totalorder %s1822_s29, %s2866_s2 }
  0x2e   : > { %p1825_p4 = pnand %p2301_p2, %p1823_p1 }
  0x30   : > { %p1826_p5 = pneg %p1825_p4 }
  0x32   : > { %p1831_p7 = pnand %p1829_p6, %p1826_p5 }
  0x34   : > { %1834 = shalt.err (!%p1831_p7)
}
  0x35   : > { %s1835_s14 = scalar_lea.vmem %s328_s19, 1024  ;;  %p1843_p8 = scmp.lt.s32.totalorder %s328_s19, %s328_s19 }
  0x36   : > { %p1836_p9 = scmp.ne.s32.totalorder %s328_s19, %s1835_s14  ;;  %p1844_p3 = scmp.lt.s32.totalorder %s1835_s14, %s1835_s14 }
  0x38   : > { %p1838_p11 = pnand %p1836_p9, %p2301_p2  ;;  %p1845_p12 = por %p1844_p3, %p1843_p8 }
  0x3a   : > { %p1839_p13 = pneg %p1838_p11 }
  0x3c   : > { %p1846_p10 = pnand %p1845_p12, %p1839_p13 }
  0x3e   : > { %1849 = shalt.err (!%p1846_p10)
}
  0x3f   : > { %s2129_s21 = smov 64   ;;  %s2130_s27 = smov 4  }
  0x40   : > { %1687 = dma.hbm_to_vmem [thread:$0]  (!%p2289_p0), %s2866_s2, 1024, %s328_s19, [#allocation8], %s2129_s21, %s2129_s21, %s2130_s27  }
  0x41   : > { %s2131_s29 = smov [#allocation10]   ;;  %s1850_s28 = scalar_lea.hbm %s2822_s8, 1024 }
  0x42   : > { %s365_s16 = sshll.u32 %s2131_s29, 4  ;;  %p1851_p3 = scmp.ne.s32.totalorder %s2822_s8, %s1850_s28  ;;  %s366_s16 = int_to_ptr.vmem [resolvable:$true] %s365_s16 }
  0x43   : > { %p1857_p12 = scmp.lt.u32.totalorder %s1850_s28, %s2822_s8 }
  0x44   : > { %p1853_p8 = pnand %p1851_p3, %p2301_p2 }
  0x46   : > { %p1854_p10 = pneg %p1853_p8 }
  0x48   : > { %p1859_p1 = pnand %p1857_p12, %p1854_p10 }
  0x4a   : > { %1862 = shalt.err (!%p1859_p1)
}
  0x4b   : > { %s1863_s19 = scalar_lea.vmem %s366_s16, 1024  ;;  %p1871_p7 = scmp.lt.s32.totalorder %s366_s16, %s366_s16 }
  0x4c   : > { %p1864_p4 = scmp.ne.s32.totalorder %s366_s16, %s1863_s19  ;;  %p1872_p9 = scmp.lt.s32.totalorder %s1863_s19, %s1863_s19 }
  0x4e   : > { %p1866_p5 = pnand %p1864_p4, %p2301_p2  ;;  %p1873_p11 = por %p1872_p9, %p1871_p7 }
  0x50   : > { %p1867_p6 = pneg %p1866_p5 }
  0x52   : > { %p1874_p13 = pnand %p1873_p11, %p1867_p6 }
  0x54   : > { %1877 = shalt.err (!%p1874_p13)
}
  0x55   : > { %1693 = dma.hbm_to_vmem [thread:$0]  (!%p2289_p0), %s2822_s8, 1024, %s366_s16, [#allocation11], %s2129_s21, %s2129_s21, %s2130_s27  }
  0x56   : > { %s2132_s12 = smov [#allocation4]   ;;  %s2133_s28 = smov [#allocation9]  }
  0x57   : > { %s317_s23 = sshll.u32 %s2132_s12, 4  ;;  %s346_s17 = sshll.u32 %s2133_s28, 4  ;;  %s318_s23 = int_to_ptr.vmem [resolvable:$true] %s317_s23  ;;  %s347_s17 = int_to_ptr.vmem [resolvable:$true] %s346_s17 }
  0x58   : > { %s2868_s1 = sld [smem:[#allocation35_spill]] }
  0x5e   : > { %s1878_s29 = scalar_lea.hbm %s2868_s1, 128 }
  0x5f   : > { %p1879_p3 = scmp.ne.s32.totalorder %s2868_s1, %s1878_s29  ;;  %p1885_p12 = scmp.lt.u32.totalorder %s1878_s29, %s2868_s1 }
  0x61   : > { %p1881_p8 = pnand %p1879_p3, %p2301_p2 }
  0x63   : > { %p1882_p10 = pneg %p1881_p8 }
  0x65   : > { %p1887_p1 = pnand %p1885_p12, %p1882_p10 }
  0x67   : > { %1890 = shalt.err (!%p1887_p1)
}
  0x68   : > { %s1891_s16 = scalar_lea.vmem %s318_s23, 128  ;;  %p1899_p7 = scmp.lt.s32.totalorder %s318_s23, %s318_s23 }
  0x69   : > { %p1892_p4 = scmp.ne.s32.totalorder %s318_s23, %s1891_s16  ;;  %p1900_p9 = scmp.lt.s32.totalorder %s1891_s16, %s1891_s16 }
  0x6b   : > { %p1894_p5 = pnand %p1892_p4, %p2301_p2  ;;  %p1901_p11 = por %p1900_p9, %p1899_p7 }
  0x6d   : > { %p1895_p6 = pneg %p1894_p5 }
  0x6f   : > { %p1902_p13 = pnand %p1901_p11, %p1895_p6 }
  0x71   : > { %1905 = shalt.err (!%p1902_p13)
}
  0x72   : > { %1684 = dma.hbm_to_vmem [thread:$0]  (!%p2289_p0), %s2868_s1, 128, %s318_s23, [#allocation5]  }
  0x73   : > { %s1906_s30 = scalar_lea.hbm %s2819_s5, 1024 }
  0x74   : > { %p1907_p3 = scmp.ne.s32.totalorder %s2819_s5, %s1906_s30  ;;  %p1913_p12 = scmp.lt.u32.totalorder %s1906_s30, %s2819_s5 }
  0x76   : > { %p1909_p8 = pnand %p1907_p3, %p2301_p2 }
  0x78   : > { %p1910_p10 = pneg %p1909_p8 }
  0x7a   : > { %p1915_p1 = pnand %p1913_p12, %p1910_p10 }
  0x7c   : > { %1918 = shalt.err (!%p1915_p1)
}
  0x7d   : > { %s1919_s9 = scalar_lea.vmem %s347_s17, 1024  ;;  %p1927_p7 = scmp.lt.s32.totalorder %s347_s17, %s347_s17 }
  0x7e   : > { %p1920_p4 = scmp.ne.s32.totalorder %s347_s17, %s1919_s9  ;;  %p1928_p9 = scmp.lt.s32.totalorder %s1919_s9, %s1919_s9 }
  0x80   : > { %p1922_p5 = pnand %p1920_p4, %p2301_p2  ;;  %p1929_p11 = por %p1928_p9, %p1927_p7 }
  0x82   : > { %p1923_p6 = pneg %p1922_p5 }
  0x84   : > { %p1930_p13 = pnand %p1929_p11, %p1923_p6 }
  0x86   : > { %1933 = shalt.err (!%p1930_p13)
}
  0x87   : > { %1690 = dma.hbm_to_vmem [thread:$0]  (!%p2289_p0), %s2819_s5, 1024, %s347_s17, [#allocation8], %s2129_s21, %s2129_s21, %s2130_s27  }
  0x88   : > { %s2134_s11 = smov [#allocation12]   ;;  %s1934_s30 = scalar_lea.hbm %s2824_s10, 1024 }
  0x89   : > { %s381_s12 = sshll.u32 %s2134_s11, 4  ;;  %p1935_p3 = scmp.ne.s32.totalorder %s2824_s10, %s1934_s30  ;;  %s382_s12 = int_to_ptr.vmem [resolvable:$true] %s381_s12 }
  0x8a   : > { %p1941_p12 = scmp.lt.u32.totalorder %s1934_s30, %s2824_s10 }
  0x8b   : > { %p1937_p8 = pnand %p1935_p3, %p2301_p2 }
  0x8d   : > { %p1938_p10 = pneg %p1937_p8 }
  0x8f   : > { %p1943_p1 = pnand %p1941_p12, %p1938_p10 }
  0x91   : > { %1946 = shalt.err (!%p1943_p1)
}
  0x92   : > { %s1947_s17 = scalar_lea.vmem %s382_s12, 1024  ;;  %p1955_p7 = scmp.lt.s32.totalorder %s382_s12, %s382_s12 }
  0x93   : > { %p1948_p4 = scmp.ne.s32.totalorder %s382_s12, %s1947_s17  ;;  %p1956_p9 = scmp.lt.s32.totalorder %s1947_s17, %s1947_s17 }
  0x95   : > { %p1950_p5 = pnand %p1948_p4, %p2301_p2  ;;  %p1957_p11 = por %p1956_p9, %p1955_p7 }
  0x97   : > { %p1951_p6 = pneg %p1950_p5 }
  0x99   : > { %p1958_p13 = pnand %p1957_p11, %p1951_p6 }
  0x9b   : > { %1961 = shalt.err (!%p1958_p13)
}
  0x9c   : > { %1696 = dma.hbm_to_vmem [thread:$0]  (!%p2289_p0), %s2824_s10, 1024, %s382_s12, [#allocation11], %s2129_s21, %s2129_s21, %s2130_s27  }
  0x9d   : > { %p2869_p3 = scmp.ne.s32.totalorder %s2862_s13, 0 }
  0x9e   : > { %p2870_p2 = scmp.ne.s32.totalorder (!%p2869_p3), %s2863_s26, 0 }
  0x9f   : > { %400 = sbr.rel (%p2869_p3) target bundleno = 1008 (0x3f0), region = 64 }
  0xa6   : > { %2079 = dma.done.wait (%p2870_p2), [#allocation5], 128  }
  0xa7   : > { %2081 = vsyncadd (%p2870_p2), [#allocation5], 4294967168 }
  0xa8   : > { %2083 = dma.done.wait (%p2870_p2), [#allocation8], 2048  }
  0xa9   : > { %2085 = vsyncadd (%p2870_p2), [#allocation8], 4294965248 }
  0xaa   : > { %2087 = dma.done.wait (%p2870_p2), [#allocation11], 2048  }
  0xab   : > { %2089 = vsyncadd (%p2870_p2), [#allocation11], 4294965248  ;;  %s2843_s13 = sand.u32 1, %s2102_s22   ;;  %p1711_p0 = scmp.eq.s32.totalorder %s2110_s24, 0 }
  0xac   : > { %s2418_s18 = sshll.u32 %s2843_s13, 4  ;;  %s2422_s15 = sshll.u32 %s2110_s24, 4 }
  0xad   : > { %s458_s21 = sshra.s32 %s2422_s15, 3  ;;  %s1466_s27 = sshll.u32 %s2114_s25, 3 }
  0xae   : > { %s461_s26 = sadd.s32 %s1466_s27, %s458_s21  ;;  %s2135_s11 = smov [#allocation2]  }
  0xaf   : > { %s1467_s16 = sshll.u32 %s461_s26, 6  ;;  %s471_s12 = sshll.u32 %s2135_s11, 4  ;;  %s2431_s12 = int_to_ptr.vmem [resolvable:$true] %s471_s12 }
  0xb0   : > { %s463_s30 = scalar_lea.hbm %s2814_s0, %s1467_s16  ;;  %s2845_s19 = scalar_lea.hbm %s2814_s0, 1024 }
  0xb1   : > { %s1962_s20 = scalar_lea.hbm %s463_s30, 256  ;;  %p1967_p1 = scmp.lt.u32.totalorder %s463_s30, %s2814_s0 }
  0xb2   : > { %p1963_p8 = scmp.ne.s32.totalorder %s463_s30, %s1962_s20  ;;  %p1968_p4 = scmp.lt.u32.totalorder %s2845_s19, %s1962_s20 }
  0xb3   : > { %p1970_p6 = scmp.lt.u32.totalorder %s1962_s20, %s463_s30 }
  0xb4   : > { %p1964_p10 = pnand %p1963_p8, %p1711_p0  ;;  %p1969_p5 = por %p1968_p4, %p1967_p1 }
  0xb6   : > { %p1965_p12 = pneg %p1964_p10  ;;  %p1971_p7 = por %p1970_p6, %p1969_p5 }
  0xb8   : > { %p1972_p9 = pnand %p1971_p7, %p1965_p12 }
  0xba   : > { %1975 = shalt.err (!%p1972_p9)  }
  0xbb   : > { %s1976_s26 = scalar_lea.vmem %s2431_s12, 256  ;;  %s2844_s16 = scalar_lea.vmem %s2431_s12, 512 }
  0xbc   : > { %p1977_p11 = scmp.ne.s32.totalorder %s2431_s12, %s1976_s26  ;;  %p1983_p2 = scmp.lt.s32.totalorder %s2431_s12, %s2431_s12 }
  0xbd   : > { %p1984_p8 = scmp.lt.s32.totalorder %s2844_s16, %s1976_s26 }
  0xbe   : > { %p1978_p13 = pnand %p1977_p11, %p1711_p0 }
  0xbf   : > { %p1985_p10 = por %p1984_p8, %p1983_p2 }
  0xc0   : > { %p1979_p3 = pneg %p1978_p13 }
  0xc2   : > { %p1986_p1 = pnand %p1985_p10, %p1979_p3 }
  0xc4   : > { %1989 = shalt.err (!%p1986_p1)  }
  0xc5   : > { %1676 = dma.hbm_to_vmem [thread:$0]  (%p1711_p0), %s463_s30, 256, %s2431_s12, [#allocation3] }
  0xc6   : > { %p475_p12 = scmp.lt.s32.totalorder %s2110_s24, 0  ;;  %s476_s11 = ssub.s32 0, %s2110_s24 }
  0xc7   : > { %s1468_s2 = smin.u32 %s2110_s24, %s476_s11  ;;  %s2461_s17 = scalar_lea.vmem [#allocation13], %s2418_s18 }
  0xc8   : > { %s478_s28 = sand.u32 1, %s1468_s2  }
  0xc9   : > { %s479_s20 = ssub.s32 0, %s478_s28 }
  0xca   : > { %s2908_s20 = smov (!%p475_p12, %s479_s20), %s478_s28 }
  0xcb   : > { %p1470_p4 = scmp.lt.s32.totalorder %s2908_s20, 0  ;;  %s485_s29 = sadd.s32 2, %s2908_s20 }
  0xcd   : > { %s2910_s29 = smov (!%p1470_p4, %s485_s29), %s2908_s20 }
  0xce   : > { %s1524_s14 = sshll.u32 %s2910_s29, 4  ;;  %s491_s23 = scalar_lea.sflag [#allocation3], %s2910_s29 }
  0xcf   : > { %s2463_s9 = scalar_lea.vmem [#allocation2], %s1524_s14 }
  0xd0   : > { %2090 = dma.done.wait %s491_s23, 256 }
  0xd1   : > { %2091 = vsyncadd %s491_s23, 4294967040  ;;  %s496_s30 = sadd.s32 1, %s2110_s24  ;;  %s501_s21 = ssub.s32 1, %s2910_s29  ;;  %v530_v0 = vlaneseq  ;;  %v1790_v2 = vld [vmem:[#allocation7] sm:$0xff]  }
  0xd2   : > { %p2466_p0 = scmp.lt.s32.totalorder %s496_s30, 3  ;;  %s1526_s11 = sadd.s32 16, %s2422_s15 }
  0xd3   : > { %s1527_s2 = sshll.u32 %s501_s21, 4  ;;  %s503_s18 = sshra.s32 %s1526_s11, 3  ;;  %v2476_v1 = vshrl.u32 %v530_v0, 7 }
  0xd4   : > { %s506_s28 = sadd.s32 %s1466_s27, %s503_s18  ;;  %s511_s14 = scalar_lea.vmem [#allocation2], %s1527_s2 }
  0xd5   : > { %s1477_s20 = sshll.u32 %s506_s28, 6  ;;  %s520_s13 = sshll.u32 %s511_s14, 4  ;;  %s521_s13 = int_to_ptr.vmem [resolvable:$true] %s520_s13 }
  0xd6   : > { %s508_s19 = scalar_lea.hbm %s2814_s0, %s1477_s20  ;;  %s512_s29 = scalar_lea.sflag [#allocation3], %s501_s21 }
  0xd7   : > { %s1990_s30 = scalar_lea.hbm %s508_s19, 256  ;;  %p1995_p9 = scmp.lt.u32.totalorder %s508_s19, %s2814_s0 }
  0xd8   : > { %p1991_p5 = scmp.ne.s32.totalorder %s508_s19, %s1990_s30  ;;  %s2872_s18 = scalar_lea.hbm %s2814_s0, 1024 }
  0xd9   : > { %p1996_p11 = scmp.lt.u32.totalorder %s2872_s18, %s1990_s30  ;;  %p1998_p3 = scmp.lt.u32.totalorder %s1990_s30, %s508_s19 }
  0xda   : > { %p1992_p6 = pnand %p1991_p5, %p2466_p0 }
  0xdb   : > { %p1997_p13 = por %p1996_p11, %p1995_p9 }
  0xdc   : > { %p1993_p7 = pneg %p1992_p6 }
  0xdd   : > { %p1999_p2 = por %p1998_p3, %p1997_p13 }
  0xdf   : > { %p2000_p8 = pnand %p1999_p2, %p1993_p7 }
  0xe1   : > { %2003 = shalt.err (!%p2000_p8)  }
  0xe2   : > { %s2004_s16 = scalar_lea.vmem %s521_s13, 256  ;;  %p2011_p4 = scmp.lt.s32.totalorder %s521_s13, %s2431_s12 }
  0xe3   : > { %p2005_p10 = scmp.ne.s32.totalorder %s521_s13, %s2004_s16  ;;  %s2873_s1 = scalar_lea.vmem %s2431_s12, 512 }
  0xe4   : > { %p2012_p5 = scmp.lt.s32.totalorder %s2873_s1, %s2004_s16 }
  0xe5   : > { %p2006_p1 = pnand %p2005_p10, %p2466_p0 }
  0xe6   : > { %p2013_p6 = por %p2012_p5, %p2011_p4 }
  0xe7   : > { %p2007_p12 = pneg %p2006_p1 }
  0xe9   : > { %p2014_p9 = pnand %p2013_p6, %p2007_p12 }
  0xeb   : > { %2017 = shalt.err (!%p2014_p9)  }
  0xec   : > { %1678 = dma.hbm_to_vmem [thread:$0]  (%p2466_p0), %s508_s19, 256, %s521_s13, %s512_s29  ;;  %v1791_v3 = vld [vmem:[#allocation7 + $0x8] sm:$0xff]   ;;  %1566 = vmatprep.subr.bf16.mxu1 %v1790_v2  ;;  %v2495_v4 = vsub.s32 2, %v2476_v1  ;;  %vm583_vm0 = vcmp.lt.s32.totalorder %v2476_v1, 2  ;;  %v1792_v5 = vld [vmem:[#allocation7 + $0x10] sm:$0xff]   ;;  %v2499_v6 = vsub.s32 0, %v2476_v1 }
  0xed   : > { %1567 = vmatpush3.bf16.msra.mxu1 %v1790_v2  ;;  %v2502_v7 = vsub.s32 1, %v2476_v1  ;;  %v2505_v8 = vsub.s32 3, %v2476_v1  ;;  %vm604_vm1 = vcmp.lt.s32.totalorder %v2476_v1, 1  ;;  %vm625_vm2 = vcmp.lt.s32.totalorder %v2476_v1, 7  ;;  %v2510_v9 = vld [vmem:[%s2463_s9] sm:$0xff]  ;;  %v2513_v10 = vld [vmem:[%s2463_s9 + $0x8] sm:$0xff] }
  0xee   : > { %1568 = vmatprep.subr.bf16.mxu1 %v1791_v3  ;;  %vm646_vm3 = vcmp.lt.s32.totalorder %v2476_v1, 6  ;;  %v2517_v11 = vsub.s32 4, %v2476_v1  ;;  %v2520_v12 = vunpack.c.l.bf16 %v2510_v9  ;;  %v2523_v13 = vunpack.c.h.bf16 %v2510_v9  ;;  %v1793_v16 = vld [vmem:[#allocation7 + $0x18] sm:$0xff]   ;;  %v1794_v26 = vld [vmem:[#allocation7 + $0x20] sm:$0xff]   ;;  %v1795_v43 = vld [vmem:[#allocation7 + $0x28] sm:$0xff]   ;;  %s1480_s13 = sadd.s32 4294967288, %s2422_s15 }
  0xef   : > { %v2526_v14 = vunpack.c.l.bf16 %v2513_v10  ;;  %v2529_v15 = vunpack.c.h.bf16 %v2513_v10  ;;  %v553_v17 = vld [vmem:[#allocation4] sm:$0x1f]  ;;  %v1796_v56 = vld [vmem:[#allocation7 + $0x30] sm:$0xff]   ;;  %s2882_s29 = sld [smem:[#allocation37_spill]]  ;;  %s2883_s27 = sld [smem:[#allocation38_spill]] }
  0xf0   : > { %v574_v18 = vrot.slane %v553_v17, %v2495_v4  ;;  %v591_v19 = vrot.slane %v553_v17, %v2499_v6  ;;  %v2534_v20 = vrot.slane %v553_v17, %v2502_v7  ;;  %v2537_v21 = vrot.slane %v553_v17, %v2505_v8  ;;  %s1654_s2 = smul.u32 6, %s2114_s25  ;;  %s1518_s18 = sshll.u32 %s2110_s24, 1 }
  0xf1   : > { %1569 = vmatpush3.bf16.msra.mxu1 %v1791_v3  ;;  %v579_v22 = vrot.slane %v2520_v12, 6  ;;  %v580_v23 = vrot.slane %v2523_v13, 6  ;;  %v582_v24 = vrot.slane %v2529_v15, 6  ;;  %v600_v25 = vrot.slane %v2520_v12, 7  ;;  %s2884_s1 = sld [smem:[#allocation31_spill]]  ;;  %s2885_s19 = sld [smem:[#allocation39_spill]] }
  0xf2   : > { %1570 = vmatprep.subr.bf16.mxu1 %v1792_v5  ;;  %v575_v27 = vmul.f32 %v574_v18, %v2520_v12  ;;  %v576_v28 = vmul.f32 %v574_v18, %v2523_v13  ;;  %v601_v29 = vrot.slane %v2523_v13, 7  ;;  %v603_v30 = vrot.slane %v2529_v15, 7  ;;  %s1305_s16 = sadd.s32 %s1654_s2, %s1518_s18  ;;  %s2886_s21 = sand.u32 1, %s2102_s22  }
  0xf3   : > { %v586_v31 = vsel %vm583_vm0, %v579_v22, %v580_v23  ;;  %v587_v32 = vsel %vm583_vm0, %v582_v24, %v579_v22  ;;  %v621_v33 = vrot.slane %v2520_v12, 1  ;;  %v622_v34 = vrot.slane %v2523_v13, 1  ;;  %s1519_s12 = sshll.u32 %s1305_s16, 7  ;;  %s2762_s15 = scalar_lea.sflag [#allocation6], %s2886_s21 }
  0xf4   : > { %v592_v35 = vmul.f32 %v591_v19, %v587_v32  ;;  %v593_v36 = vmul.f32 %v591_v19, %v586_v31  ;;  %v607_v37 = vsel %vm604_vm1, %v600_v25, %v601_v29  ;;  %v608_v38 = vsel %vm604_vm1, %v603_v30, %v600_v25  ;;  %s2138_s28 = smov [#allocation13]  }
  0xf5   : > { %1571 = vmatpush3.bf16.msra.mxu1 %v1792_v5  ;;  %v613_v39 = vmul.f32 %v2534_v20, %v608_v38  ;;  %v614_v40 = vmul.f32 %v2534_v20, %v607_v37  ;;  %v623_v41 = vrot.slane %v2526_v14, 1  ;;  %v628_v42 = vsel %vm625_vm2, %v621_v33, %v622_v34  ;;  %v1798_v37 = vld [vmem:[#allocation9] sm:$0xff]   ;;  %s2022_s20 = sshll.u32 %s2138_s28, 4  ;;  %s2023_s20 = int_to_ptr.vmem [resolvable:$false] %s2022_s20 }
  0xf6   : > { %1572 = vmatprep.subr.bf16.mxu1 %v1793_v16  ;;  %v596_v44 = vadd.f32 %v592_v35, %v575_v27  ;;  %v597_v45 = vadd.f32 %v593_v36, %v576_v28  ;;  %v634_v46 = vmul.f32 %v2537_v21, %v628_v42  ;;  %v642_v47 = vrot.slane %v2520_v12, 2  ;;  %v1799_v42 = vld [vmem:[#allocation9 + $0x8] sm:$0xff]   ;;  %s2024_s14 = scalar_lea.vmem %s2023_s20, 512 }
  0xf7   : > { %v627_v48 = vsel %vm625_vm2, %v622_v34, %v623_v41  ;;  %v643_v49 = vrot.slane %v2523_v13, 2  ;;  %v644_v50 = vrot.slane %v2526_v14, 2  ;;  %v654_v51 = vrot.slane %v553_v17, %v2517_v11  ;;  %s2757_s9 = scalar_lea.hbm %s2885_s19, %s1519_s12  ;;  %p2887_p7 = scmp.ne.s32.totalorder %s2884_s1, 0 }
  0xf8   : > { %v617_v52 = vadd.f32 %v613_v39, %v596_v44  ;;  %v618_v53 = vadd.f32 %v614_v40, %v597_v45  ;;  %v635_v54 = vmul.f32 %v2537_v21, %v627_v48  ;;  %v577_v55 = vmul.f32 %v574_v18, %v2526_v14  ;;  %v1801_v44 = vld [vmem:[#allocation9 + $0x18] sm:$0xff]   ;;  %v1802_v45 = vld [vmem:[#allocation9 + $0x20] sm:$0xff]  }
  0xf9   : > { %1573 = vmatpush3.bf16.msra.mxu1 %v1793_v16  ;;  %v648_v57 = vsel %vm646_vm3, %v643_v49, %v644_v50  ;;  %v649_v58 = vsel %vm646_vm3, %v642_v47, %v643_v49  ;;  %v578_v59 = vmul.f32 %v574_v18, %v2529_v15  ;;  %v581_v60 = vrot.slane %v2526_v14, 6  ;;  %v1805_v48 = vld [vmem:[#allocation9 + $0x38] sm:$0xff]   ;;  %v1806_v49 = vld [vmem:[#allocation10] sm:$0xff]  }
  0xfa   : > { %1574 = vmatprep.subr.bf16.mxu1 %v1794_v26  ;;  %v638_v61 = vadd.f32 %v634_v46, %v617_v52  ;;  %v639_v62 = vadd.f32 %v635_v54, %v618_v53  ;;  %v655_v63 = vmul.f32 %v654_v51, %v649_v58  ;;  %v656_v0 = vmul.f32 %v654_v51, %v648_v57  ;;  %v1803_v46 = vld [vmem:[#allocation9 + $0x28] sm:$0xff]  }
  0xfb   : > { %v584_v2 = vsel %vm583_vm0, %v581_v60, %v582_v24  ;;  %v585_v3 = vsel %vm583_vm0, %v580_v23, %v581_v60  ;;  %v602_v5 = vrot.slane %v2526_v14, 7  ;;  %v624_v12 = vrot.slane %v2529_v15, 1  ;;  %v772_v60 = vld [vmem:[%s2818_s4] sm:$0x1f] }
  0xfc   : > { %v659_v13 = vadd.f32 %v655_v63, %v638_v61  ;;  %v660_v16 = vadd.f32 %v656_v0, %v639_v62  ;;  %v594_v17 = vmul.f32 %v591_v19, %v585_v3  ;;  %v595_v18 = vmul.f32 %v591_v19, %v584_v2  ;;  %v1797_v19 = vld [vmem:[#allocation7 + $0x38] sm:$0xff]  }
  0xfd   : > { %1575 = vmatpush3.bf16.msra.mxu1 %v1794_v26  ;;  %v605_v22 = vsel %vm604_vm1, %v602_v5, %v603_v30  ;;  %v606_v25 = vsel %vm604_vm1, %v601_v29, %v602_v5  ;;  %v626_v24 = vsel %vm625_vm2, %v623_v41, %v624_v12  ;;  %v629_v23 = vsel %vm625_vm2, %v624_v12, %v621_v33 }
  0xfe   : > { %1576 = vmatprep.subr.bf16.mxu1 %v1795_v43  ;;  %v663_v14 = vpack.c.bf16 %v660_v16, %v659_v13  ;;  %v598_v26 = vadd.f32 %v594_v17, %v577_v55  ;;  %v599_v27 = vadd.f32 %v595_v18, %v578_v59  ;;  %v615_v28 = vmul.f32 %v2534_v20, %v606_v25  ;;  %v1481_v59 = vld [vmem:[%s2817_s3] ss:$0 sm:$0xff] }
  0xff   : > { %v616_v31 = vmul.f32 %v2534_v20, %v605_v22  ;;  %v636_v30 = vmul.f32 %v2537_v21, %v626_v24  ;;  %v637_v29 = vmul.f32 %v2537_v21, %v629_v23  ;;  %v645_v32 = vrot.slane %v2529_v15, 2 }
 0x100   : > { %1582 = vmatprep.mubr.bf16.mxu1 %v663_v14  ;;  %v619_v34 = vadd.f32 %v615_v28, %v598_v26  ;;  %v533_v52 = vadd.s32 16, %v2476_v1  ;;  %v536_v53 = vstv %s1480_s13  ;;  %v534_v54 = vadd.s32 24, %v2476_v1  ;;  %s1308_s13 = sshll.u32 %s2461_s17, 4  ;;  %s2751_s13 = int_to_ptr.vmem [resolvable:$true] %s1308_s13 }
 0x101   : > { %1577 = vmatpush3.bf16.msra.mxu1 %v1795_v43  ;;  %v620_v35 = vadd.f32 %v616_v31, %v599_v27  ;;  %v647_v33 = vsel %vm646_vm3, %v644_v50, %v645_v32  ;;  %v650_v36 = vsel %vm646_vm3, %v645_v32, %v642_v47  ;;  %v1800_v43 = vld [vmem:[#allocation9 + $0x10] sm:$0xff]   ;;  %v2136_v50 = vmov 0.0   ;;  %s2018_s26 = scalar_lea.vmem %s2751_s13, 256  ;;  %p2025_p3 = scmp.lt.s32.totalorder %s2751_s13, %s2023_s20 }
 0x102   : > { %1578 = vmatprep.subr.bf16.mxu1 %v1796_v56  ;;  %v640_v38 = vadd.f32 %v636_v30, %v619_v34  ;;  %v657_v39 = vmul.f32 %v654_v51, %v647_v33  ;;  %v658_v20 = vmul.f32 %v654_v51, %v650_v36  ;;  %v1804_v47 = vld [vmem:[#allocation9 + $0x30] sm:$0xff]   ;;  %1606 = vmatprep.subr.bf16.mxu0 %v2136_v50  ;;  %v1807_v51 = vld [vmem:[#allocation10 + $0x8] sm:$0xff]   ;;  %v532_v57 = vadd.s32 8, %v2476_v1  ;;  %p2019_p0 = scmp.ne.s32.totalorder %s2751_s13, %s2018_s26  ;;  %p2026_p2 = scmp.lt.s32.totalorder %s2024_s14, %s2018_s26 }
 0x103   : > { %v641_v40 = vadd.f32 %v637_v29, %v620_v35  ;;  %1607 = vmatpush3.bf16.msra.mxu0 %v1806_v49  ;;  %v539_v55 = vadd.s32 %v536_v53, %v533_v52  ;;  %v540_v58 = vadd.s32 %v536_v53, %v534_v54  ;;  %v797_v3 = vrot.slane %v772_v60, %v2495_v4 }
 0x104   : > { %v661_v41 = vadd.f32 %v657_v39, %v640_v38  ;;  %1608 = vmatprep.subr.bf16.mxu0 %v2136_v50  ;;  %v538_v62 = vadd.s32 %v536_v53, %v532_v57  ;;  %v813_v26 = vrot.slane %v772_v60, %v2499_v6  ;;  %v833_v28 = vrot.slane %v772_v60, %v2502_v7  ;;  %p2020_p11 = pnand %p2019_p0, %p2887_p7  ;;  %p2027_p8 = por %p2026_p2, %p2025_p3 }
 0x105   : > { %1579 = vmatpush3.bf16.msra.mxu1 %v1796_v56  ;;  %v662_v21 = vadd.f32 %v658_v20, %v641_v40  ;;  %v537_v56 = vadd.s32 %v536_v53, %v2476_v1  ;;  %vm543_vm4 = vcmp.ge.s32.totalorder %v539_v55, 0  ;;  %vm547_vm5 = vcmp.lt.s32.totalorder %v539_v55, 40  ;;  %v1815_v1 = vld [vmem:[#allocation12 + $0x8] sm:$0xff]  }
 0x106   : > { %1580 = vmatprep.subr.bf16.mxu1 %v1797_v19  ;;  %vm544_vm8 = vcmp.ge.s32.totalorder %v540_v58, 0  ;;  %vm548_vm9 = vcmp.lt.s32.totalorder %v540_v58, 40  ;;  %vm2614_vm10 = vmand %vm543_vm4, %vm547_vm5  ;;  %vm542_vm13 = vcmp.ge.s32.totalorder %v538_v62, 0  ;;  %vm546_vm14 = vcmp.lt.s32.totalorder %v538_v62, 40  ;;  %p2021_p13 = pneg %p2020_p11 }
 0x107   : > { %v664_v15 = vpack.c.bf16 %v662_v21, %v661_v41  ;;  %1609 = vmatpush3.bf16.msra.mxu0 %v1807_v51  ;;  %vm541_vm6 = vcmp.ge.s32.totalorder %v537_v56, 0  ;;  %vm545_vm7 = vcmp.lt.s32.totalorder %v537_v56, 40  ;;  %vm2623_vm12 = vmand %vm544_vm8, %vm548_vm9  ;;  %v2636_v31 = vrot.slane %v772_v60, %v2517_v11 }
 0x108   : > { %1610 = vmatprep.subr.bf16.mxu0 %v2136_v50  ;;  %vm2619_vm11 = vmand %vm541_vm6, %vm545_vm7  ;;  %vm2137_vm4 = vmmov 0   ;;  %p2028_p10 = pnand %p2027_p8, %p2021_p13 }
 0x109   : > { %1581 = vmatpush3.bf16.msra.mxu1 %v1797_v19  ;;  %v853_v19 = vrot.slane %v772_v60, %v2505_v8  ;;  %vm2643_vm15 = vmand %vm542_vm13, %vm546_vm14  ;;  %1622 = vmatprep.mubr.msk.bf16.mxu0 %vm2137_vm4, %v2136_v50 }
 0x10a   : > { %1586 = vmatprep.subr.bf16.mxu1 %v1798_v37 }
 0x10c   : > { %1583 = vmatmul.mubr.bf16.vlgmr.msra.gmra.mrb[0].mxu1 %v664_v15 }
 0x10d   : > { %1587 = vmatpush3.bf16.msra.mxu1 %v1798_v37 }
 0x10e   : > { %1588 = vmatprep.subr.bf16.mxu1 %v1799_v42 }
 0x111   : > { %1589 = vmatpush3.bf16.msra.mxu1 %v1799_v42 }
 0x112   : > { %1590 = vmatprep.subr.bf16.mxu1 %v1800_v43 }
 0x115   : > { %1591 = vmatpush3.bf16.msra.mxu1 %v1800_v43 }
 0x116   : > { %1592 = vmatprep.subr.bf16.mxu1 %v1801_v44 }
 0x119   : > { %1593 = vmatpush3.bf16.msra.mxu1 %v1801_v44 }
 0x11a   : > { %1594 = vmatprep.subr.bf16.mxu1 %v1802_v45 }
 0x11d   : > { %1595 = vmatpush3.bf16.msra.mxu1 %v1802_v45 }
 0x11e   : > { %1596 = vmatprep.subr.bf16.mxu1 %v1803_v46 }
 0x121   : > { %1597 = vmatpush3.bf16.msra.mxu1 %v1803_v46 }
 0x122   : > { %1598 = vmatprep.subr.bf16.mxu1 %v1804_v47 }
 0x125   : > { %1599 = vmatpush3.bf16.msra.mxu1 %v1804_v47 }
 0x126   : > { %1600 = vmatprep.subr.bf16.mxu1 %v1805_v48 }
 0x129   : > { %1601 = vmatpush3.bf16.msra.mxu1 %v1805_v48 }
 0x1df   : > { %v1584_v61 = vpop.f32.mrb[0].mxu1 }
 0x1e0   : > { %v762_v63 = vadd.f32 %v1584_v61, %v1481_v59  ;;  %v753_v0 = vpop.f32.mrb[1].mxu1 }
 0x1e1   : > { %v754_v5 = vadd.f32 %v1481_v59, %v753_v0  ;;  %v1585_v12 = vpop.f32.mrb[2].mxu1 }
 0x1e2   : > { %v770_v13 = vmax.f32 %v762_v63, 0.0  ;;  %v765_v17 = vadd.f32 %v1585_v12, %v1481_v59  ;;  %v756_v18 = vpop.f32.mrb[3].mxu1 }
 0x1e3   : > { %v768_v22 = vmax.f32 %v754_v5, 0.0  ;;  %v757_v24 = vadd.f32 %v1481_v59, %v756_v18 }
 0x1e4   : > { %v2629_v23 = vsel %vm2614_vm10, %v770_v13, 0.0  ;;  %v771_v14 = vmax.f32 %v765_v17, 0.0 }
 0x1e5   : > { %v800_v27 = vmul.f32 %v797_v3, %v2629_v23  ;;  %v804_v30 = vrot.slane %v2629_v23, 6  ;;  %v790_v29 = vsel %vm2619_vm11, %v768_v22, 0.0  ;;  %v769_v35 = vmax.f32 %v757_v24, 0.0 }
 0x1e6   : > { %v793_v32 = vsel %vm2623_vm12, %v771_v14, 0.0  ;;  %v824_v33 = vrot.slane %v2629_v23, 7  ;;  %v844_v36 = vrot.slane %v2629_v23, 1  ;;  %v802_v37 = vrot.slane %v790_v29, 6 }
 0x1e7   : > { %v842_v38 = vrot.slane %v790_v29, 1  ;;  %v864_v39 = vrot.slane %v2629_v23, 2  ;;  %v798_v20 = vmul.f32 %v797_v3, %v790_v29  ;;  %v805_v40 = vrot.slane %v793_v32, 6 }
 0x1e8   : > { %v825_v41 = vrot.slane %v793_v32, 7  ;;  %v822_v21 = vrot.slane %v790_v29, 7  ;;  %v862_v15 = vrot.slane %v790_v29, 2  ;;  %v845_v42 = vrot.slane %v793_v32, 1 }
 0x1e9   : > { %v791_v43 = vsel %vm2643_vm15, %v769_v35, 0.0  ;;  %v801_v44 = vmul.f32 %v797_v3, %v793_v32  ;;  %v806_v45 = vsel %vm583_vm0, %v804_v30, %v805_v40  ;;  %v809_v46 = vsel %vm583_vm0, %v805_v40, %v802_v37 }
 0x1ea   : > { %v826_v47 = vsel %vm604_vm1, %v824_v33, %v825_v41  ;;  %v817_v48 = vmul.f32 %v813_v26, %v806_v45  ;;  %v846_v49 = vsel %vm625_vm2, %v844_v36, %v845_v42  ;;  %v849_v51 = vsel %vm625_vm2, %v845_v42, %v842_v38 }
 0x1eb   : > { %v865_v52 = vrot.slane %v793_v32, 2  ;;  %v837_v53 = vmul.f32 %v833_v28, %v826_v47  ;;  %v803_v54 = vrot.slane %v791_v43, 6  ;;  %v823_v55 = vrot.slane %v791_v43, 7 }
 0x1ec   : > { %v843_v56 = vrot.slane %v791_v43, 1  ;;  %v821_v57 = vadd.f32 %v817_v48, %v801_v44  ;;  %v863_v58 = vrot.slane %v791_v43, 2  ;;  %v814_v59 = vmul.f32 %v813_v26, %v809_v46 }
 0x1ed   : > { %v829_v60 = vsel %vm604_vm1, %v825_v41, %v822_v21  ;;  %v807_v61 = vsel %vm583_vm0, %v803_v54, %v804_v30  ;;  %v808_v62 = vsel %vm583_vm0, %v802_v37, %v803_v54  ;;  %v827_v63 = vsel %vm604_vm1, %v823_v55, %v824_v33  ;;  %v1808_v54 = vld [vmem:[#allocation10 + $0x10] sm:$0xff]  }
 0x1ee   : > { %v828_v0 = vsel %vm604_vm1, %v822_v21, %v823_v55  ;;  %v841_v5 = vadd.f32 %v837_v53, %v821_v57  ;;  %v799_v12 = vmul.f32 %v797_v3, %v791_v43  ;;  %v815_v13 = vmul.f32 %v813_v26, %v808_v62  ;;  %1611 = vmatpush3.bf16.msra.mxu0 %v1808_v54  ;;  %v1811_v55 = vld [vmem:[#allocation10 + $0x28] sm:$0xff]   ;;  %v1490_v57 = vld [vmem:[%s2820_s6] ss:$0 sm:$0xff] }
 0x1ef   : > { %v816_v17 = vmul.f32 %v813_v26, %v807_v61  ;;  %v818_v18 = vadd.f32 %v814_v59, %v798_v20  ;;  %v834_v22 = vmul.f32 %v833_v28, %v829_v60  ;;  %v847_v24 = vsel %vm625_vm2, %v843_v56, %v844_v36  ;;  %1612 = vmatprep.subr.bf16.mxu0 %v2136_v50 }
 0x1f0   : > { %v856_v23 = vmul.f32 %v853_v19, %v846_v49  ;;  %v819_v14 = vadd.f32 %v815_v13, %v799_v12  ;;  %v835_v30 = vmul.f32 %v833_v28, %v828_v0  ;;  %v848_v29 = vsel %vm625_vm2, %v842_v38, %v843_v56  ;;  %v1813_v56 = vld [vmem:[#allocation10 + $0x38] sm:$0xff]  }
 0x1f1   : > { %v867_v32 = vsel %vm646_vm3, %v863_v58, %v864_v39  ;;  %v836_v35 = vmul.f32 %v833_v28, %v827_v63  ;;  %v838_v33 = vadd.f32 %v834_v22, %v818_v18  ;;  %v854_v37 = vmul.f32 %v853_v19, %v848_v29  ;;  %v991_v0 = vld [vmem:[%s2821_s7] sm:$0x1f] }
 0x1f2   : > { %v868_v3 = vsel %vm646_vm3, %v862_v15, %v863_v58  ;;  %v839_v26 = vadd.f32 %v835_v30, %v819_v14  ;;  %v855_v20 = vmul.f32 %v853_v19, %v847_v24  ;;  %v820_v40 = vadd.f32 %v816_v17, %v800_v27 }
 0x1f3   : > { %v857_v41 = vmul.f32 %v853_v19, %v849_v51  ;;  %v858_v36 = vadd.f32 %v854_v37, %v838_v33  ;;  %v874_v21 = vmul.f32 %v2636_v31, %v868_v3  ;;  %v866_v42 = vsel %vm646_vm3, %v864_v39, %v865_v52 }
 0x1f4   : > { %v869_v38 = vsel %vm646_vm3, %v865_v52, %v862_v15  ;;  %v859_v43 = vadd.f32 %v855_v20, %v839_v26  ;;  %v875_v28 = vmul.f32 %v2636_v31, %v867_v32  ;;  %v840_v44 = vadd.f32 %v836_v35, %v820_v40  ;;  %v1809_v15 = vld [vmem:[#allocation10 + $0x18] sm:$0xff]   ;;  %v1810_v52 = vld [vmem:[#allocation10 + $0x20] sm:$0xff]  }
 0x1f5   : > { %v861_v45 = vadd.f32 %v857_v41, %v841_v5  ;;  %v878_v46 = vadd.f32 %v874_v21, %v858_v36  ;;  %v877_v47 = vmul.f32 %v2636_v31, %v869_v38  ;;  %v876_v19 = vmul.f32 %v2636_v31, %v866_v42  ;;  %1613 = vmatpush3.bf16.msra.mxu0 %v1809_v15  ;;  %v1812_v31 = vld [vmem:[#allocation10 + $0x30] sm:$0xff]  }
 0x1f6   : > { %v879_v48 = vadd.f32 %v875_v28, %v859_v43  ;;  %v860_v27 = vadd.f32 %v856_v23, %v840_v44  ;;  %1614 = vmatprep.subr.bf16.mxu0 %v2136_v50  ;;  %v1016_v24 = vrot.slane %v991_v0, %v2495_v4  ;;  %v1053_v23 = vrot.slane %v991_v0, %v2505_v8 }
 0x1f7   : > { %v881_v49 = vadd.f32 %v877_v47, %v861_v45  ;;  %v1027_v32 = vrot.slane %v991_v0, %v2499_v6  ;;  %v1040_v8 = vrot.slane %v991_v0, %v2502_v7 }
 0x1f8   : > { %v882_v51 = vpack.c.bf16 %v879_v48, %v878_v46  ;;  %v880_v53 = vadd.f32 %v876_v19, %v860_v27  ;;  %v1066_v48 = vrot.slane %v991_v0, %v2517_v11  ;;  %v1816_v11 = vld [vmem:[#allocation12 + $0x10] sm:$0xff]  }
 0x1f9   : > { %1615 = vmatpush3.bf16.msra.mxu0 %v1810_v52  ;;  %v1820_v0 = vld [vmem:[#allocation12 + $0x30] sm:$0xff]  }
 0x1fa   : > { %1602 = vmatprep.mubr.bf16.mxu1 %v882_v51  ;;  %v883_v39 = vpack.c.bf16 %v881_v49, %v880_v53  ;;  %1616 = vmatprep.subr.bf16.mxu0 %v2136_v50 }
 0x1fc   : > { %1603 = vmatmul.mubr.bf16.vlgmr.msra.gmra.mrb[4].mxu1 %v883_v39 }
 0x1fd   : > { %1617 = vmatpush3.bf16.msra.mxu0 %v1811_v55 }
 0x1fe   : > { %1618 = vmatprep.subr.bf16.mxu0 %v2136_v50 }
 0x201   : > { %1619 = vmatpush3.bf16.msra.mxu0 %v1812_v31 }
 0x202   : > { %1620 = vmatprep.subr.bf16.mxu0 %v2136_v50 }
 0x205   : > { %1621 = vmatpush3.bf16.msra.mxu0 %v1813_v56 }
 0x206   : > { %1626 = vmatprep.subr.bf16.mxu0 %v2136_v50 }
 0x2cf   : > { %v1604_v58 = vpop.f32.mrb[4].mxu1 }
 0x2d0   : > { %v981_v59 = vadd.f32 %v1604_v58, %v1490_v57  ;;  %v972_v60 = vpop.f32.mrb[5].mxu1 }
 0x2d1   : > { %v973_v61 = vadd.f32 %v1490_v57, %v972_v60  ;;  %v1605_v62 = vpop.f32.mrb[6].mxu1 }
 0x2d2   : > { %v989_v63 = vmax.f32 %v981_v59, 0.0  ;;  %v984_v5 = vadd.f32 %v1605_v62, %v1490_v57  ;;  %v975_v12 = vpop.f32.mrb[7].mxu1  ;;  %v1814_v59 = vld [vmem:[#allocation12] sm:$0xff]  }
 0x2d3   : > { %v987_v13 = vmax.f32 %v973_v61, 0.0  ;;  %v976_v17 = vadd.f32 %v1490_v57, %v975_v12  ;;  %v1817_v61 = vld [vmem:[#allocation12 + $0x18] sm:$0xff]   ;;  %v1818_v62 = vld [vmem:[#allocation12 + $0x20] sm:$0xff]   ;;  %v1193_v12 = vrot.slane %v2510_v9, 4 }
 0x2d4   : > { %v1011_v18 = vsel %vm2614_vm10, %v989_v63, 0.0  ;;  %v990_v22 = vmax.f32 %v984_v5, 0.0  ;;  %v1819_v63 = vld [vmem:[#allocation12 + $0x28] sm:$0xff]   ;;  %v1821_v5 = vld [vmem:[#allocation12 + $0x38] sm:$0xff]  }
 0x2d5   : > { %v1009_v14 = vsel %vm2619_vm11, %v987_v13, 0.0  ;;  %v988_v29 = vmax.f32 %v976_v17, 0.0  ;;  %v1046_v35 = vrot.slane %v1011_v18, 1  ;;  %v1059_v33 = vrot.slane %v1011_v18, 2 }
 0x2d6   : > { %v1012_v30 = vsel %vm2623_vm12, %v990_v22, 0.0  ;;  %v1021_v2 = vrot.slane %v1011_v18, 6  ;;  %v1034_v26 = vrot.slane %v1011_v18, 7  ;;  %v1019_v20 = vrot.slane %v1009_v14, 6  ;;  %v1508_v22 = vld [vmem:[%s2883_s27] ss:$0 sm:$0xff] }
 0x2d7   : > { %v1047_v37 = vrot.slane %v1012_v30, 1  ;;  %v1060_v3 = vrot.slane %v1012_v30, 2  ;;  %v1010_v4 = vsel %vm2643_vm15, %v988_v29, 0.0  ;;  %v1032_v6 = vrot.slane %v1009_v14, 7 }
 0x2d8   : > { %v1020_v40 = vrot.slane %v1010_v4, 6  ;;  %v1033_v41 = vrot.slane %v1010_v4, 7  ;;  %v1045_v36 = vrot.slane %v1010_v4, 1  ;;  %v1058_v21 = vrot.slane %v1010_v4, 2 }
 0x2d9   : > { %v1048_v16 = vsel %vm625_vm2, %v1046_v35, %v1047_v37  ;;  %v1061_v25 = vsel %vm646_vm3, %v1059_v33, %v1060_v3  ;;  %v1018_v42 = vmul.f32 %v1016_v24, %v1011_v18  ;;  %v1017_v38 = vmul.f32 %v1016_v24, %v1010_v4  ;;  %v1499_v18 = vld [vmem:[%s2882_s29] ss:$0 sm:$0xff] }
 0x2da   : > { %v1022_v34 = vsel %vm583_vm0, %v1020_v40, %v1021_v2  ;;  %v1023_v7 = vsel %vm583_vm0, %v1019_v20, %v1020_v40  ;;  %v1035_v44 = vsel %vm604_vm1, %v1033_v41, %v1034_v26  ;;  %v1036_v45 = vsel %vm604_vm1, %v1032_v6, %v1033_v41 }
 0x2db   : > { %v1028_v43 = vmul.f32 %v1027_v32, %v1023_v7  ;;  %v1029_v28 = vmul.f32 %v1027_v32, %v1022_v34  ;;  %v1049_v46 = vsel %vm625_vm2, %v1045_v36, %v1046_v35  ;;  %v1062_v47 = vsel %vm646_vm3, %v1058_v21, %v1059_v33 }
 0x2dc   : > { %v1041_v49 = vmul.f32 %v1040_v8, %v1036_v45  ;;  %v1042_v51 = vmul.f32 %v1040_v8, %v1035_v44  ;;  %v1055_v53 = vmul.f32 %v1053_v23, %v1048_v16  ;;  %v1054_v15 = vmul.f32 %v1053_v23, %v1049_v46 }
 0x2dd   : > { %v1030_v27 = vadd.f32 %v1028_v43, %v1017_v38  ;;  %v1031_v19 = vadd.f32 %v1029_v28, %v1018_v42  ;;  %v1067_v31 = vmul.f32 %v1066_v48, %v1062_v47  ;;  %v1068_v56 = vmul.f32 %v1066_v48, %v1061_v25 }
 0x2de   : > { %v1194_v13 = vrot.slane %v2513_v10, 4  ;;  %vm1192_vm0 = vcmask 1043456   ;;  %v1646_v9 = vadd.f32 %v1508_v22, %v1499_v18 }
 0x2df   : > { %v1043_v39 = vadd.f32 %v1041_v49, %v1030_v27  ;;  %v1044_v54 = vadd.f32 %v1042_v51, %v1031_v19 }
 0x2e0   : > { %v1195_v17 = vsel %vm1192_vm0, %v1193_v12, %v1194_v13 }
 0x2e1   : > { %v1056_v52 = vadd.f32 %v1054_v15, %v1043_v39  ;;  %v1057_v55 = vadd.f32 %v1055_v53, %v1044_v54 }
 0x2e3   : > { %v1069_v57 = vadd.f32 %v1067_v31, %v1056_v52  ;;  %v1070_v58 = vadd.f32 %v1068_v56, %v1057_v55 }
 0x2e5   : > { %v1071_v60 = vpack.c.bf16 %v1070_v58, %v1069_v57 }
 0x2e7   : > { %1623 = vmatmul.mubr.bf16.vlgmr.msra.gmra.mrb[0].mxu0 %v1071_v60 }
 0x2e8   : > { %1627 = vmatpush3.bf16.msra.mxu0 %v1814_v59  ;;  %1642 = vmatprep.mubr.msk.bf16.mxu0 %vm2137_vm4, %v2136_v50 }
 0x2e9   : > { %1628 = vmatprep.subr.bf16.mxu0 %v2136_v50 }
 0x2ec   : > { %1629 = vmatpush3.bf16.msra.mxu0 %v1815_v1 }
 0x2ed   : > { %1630 = vmatprep.subr.bf16.mxu0 %v2136_v50 }
 0x2f0   : > { %1631 = vmatpush3.bf16.msra.mxu0 %v1816_v11 }
 0x2f1   : > { %1632 = vmatprep.subr.bf16.mxu0 %v2136_v50 }
 0x2f4   : > { %1633 = vmatpush3.bf16.msra.mxu0 %v1817_v61 }
 0x2f5   : > { %1634 = vmatprep.subr.bf16.mxu0 %v2136_v50 }
 0x2f8   : > { %1635 = vmatpush3.bf16.msra.mxu0 %v1818_v62 }
 0x2f9   : > { %1636 = vmatprep.subr.bf16.mxu0 %v2136_v50 }
 0x2fc   : > { %1637 = vmatpush3.bf16.msra.mxu0 %v1819_v63 }
 0x2fd   : > { %1638 = vmatprep.subr.bf16.mxu0 %v2136_v50 }
 0x300   : > { %1639 = vmatpush3.bf16.msra.mxu0 %v1820_v0 }
 0x301   : > { %1640 = vmatprep.subr.bf16.mxu0 %v2136_v50 }
 0x304   : > { %1641 = vmatpush3.bf16.msra.mxu0 %v1821_v5 }
 0x307   : > { %1643 = vmatmul.mubr.bf16.vlgmr.msra.gmra.mrb[0].mxu0 %v1195_v17 }
 0x3da   : > { %v1279_v10 = vpop.f32.mrb[0].mxu0 }
 0x3db   : > { %v1647_v50 = vadd.f32 %v1646_v9, %v1279_v10  ;;  %v1644_v24 = vpop.f32.mrb[1].mxu0 }
 0x3dc   : > { %v1282_v23 = vpop.f32.mrb[2].mxu0 }
 0x3dd   : > { %v1288_v14 = vmax.f32 %v1647_v50, 0.0  ;;  %v1649_v30 = vadd.f32 %v1646_v9, %v1282_v23  ;;  %v1645_v29 = vpop.f32.mrb[3].mxu0 }
 0x3df   : > { %1290 = vst [vmem:[%s2461_s17] sm:$0xff] %v1288_v14  ;;  %v1289_v32 = vmax.f32 %v1649_v30, 0.0 }
 0x3e1   : > { %1291 = vst [vmem:[%s2461_s17 + $0x8] sm:$0xff] %v1289_v32 }
 0x3e2   : > { %2031 = shalt.err (!%p2028_p10)
}
 0x3e3   : > { %s2032_s17 = scalar_lea.hbm %s2757_s9, 256  ;;  %s2036_s30 = scalar_lea.hbm %s2885_s19, 1536 }
 0x3e4   : > { %p2033_p1 = scmp.ne.s32.totalorder %s2757_s9, %s2032_s17  ;;  %p2037_p5 = scmp.lt.u32.totalorder %s2757_s9, %s2885_s19 }
 0x3e5   : > { %p2038_p6 = scmp.lt.u32.totalorder %s2036_s30, %s2032_s17  ;;  %p2040_p0 = scmp.lt.u32.totalorder %s2032_s17, %s2757_s9 }
 0x3e6   : > { %p2034_p12 = pnand %p2033_p1, %p2887_p7 }
 0x3e7   : > { %p2039_p9 = por %p2038_p6, %p2037_p5 }
 0x3e8   : > { %p2035_p4 = pneg %p2034_p12 }
 0x3e9   : > { %p2041_p11 = por %p2040_p0, %p2039_p9 }
 0x3eb   : > { %p2042_p13 = pnand %p2041_p11, %p2035_p4 }
 0x3ed   : > { %2045 = shalt.err (!%p2042_p13)
}
 0x3ee   : > { %s2139_s2 = smov 128   ;;  %s2140_s18 = smov 8  }
 0x3ef   : > { %1679 = dma.vmem_to_hbm [thread:$0]  (%p2887_p7), %s2751_s13, 256, %s2757_s9, %s2762_s15, %s2139_s2, %s2139_s2, %s2140_s18  }
 0x3f0 PF: > { %s2888_s16 = sld [smem:[#allocation29_spill]]  ;;  %s2889_s12 = sld [smem:[#allocation25_spill]] }
 0x3f1   : > { %s2890_s24 = sld [smem:[#allocation33_spill]] }
 0x3f6   : > { %p1713_p3 = scmp.ge.s32.totalorder %s2888_s16, 2  ;;  %s1323_s25 = sand.u32 1, %s2889_s12  }
 0x3f7   : > { %p2891_p2 = scmp.ne.s32.totalorder %s2890_s24, 0  ;;  %s1324_s21 = scalar_lea.sflag [#allocation6], %s1323_s25 }
 0x3f9   : > { %p1698_p8 = pnand %p1713_p3, %p2891_p2 }
 0x3fb   : > { %2093 = dma.done.wait (!%p1698_p8), %s1324_s21, 256  }
 0x3fc   : > { %2095 = vsyncadd (!%p1698_p8), %s1324_s21, 4294967040  ;;  %s28_s28 = sadd.s32 1, %s2888_s16   ;;  %s2892_s26 = sld [smem:[#allocation26_spill]] }
 0x3fd   : > { %p25_p10 = scmp.ge.s32.totalorder %s28_s28, 8   ;;  %s2893_s23 = sld [smem:[#allocation34_spill]] }
 0x3fe   : > { %s2894_s24 = sld [smem:[#allocation27_spill]]  ;;  %s2895_s25 = sld [smem:[#allocation28_spill]] }
 0x3ff   : > { %s2896_s1 = sld [smem:[#allocation30_spill]]  ;;  %s2897_s27 = sld [smem:[#allocation32_spill]] }
 0x400   : > { %s2898_s21 = smov %s2102_s22  ;;  %27 = sbr.rel (!%p25_p10) target bundleno = 14 (0xe), region = 140 }
 0x402   : > { %s2899_s22 = smov %s2892_s26 }
 0x405   : > { %s2900_s26 = smov %s2896_s1 }
 0x407   :  { %1329 = vsyncpa [#allocation5], 1 }
 0x408   :  { %1331 = vsyncpa [#allocation5 + $0x1], 1 }
 0x409   :  { %1332 = vsyncpa [#allocation8], 1 }
 0x40a   :  { %1333 = vsyncpa [#allocation11], 1 }
 0x40b   :  { %1334 = vsyncpa [#allocation6], 1 }
 0x40c   :  { %1336 = vsyncpa [#allocation6 + $0x1], 1 }
 0x40d   :  { %1337 = vsyncmov [#allocation3] }
 0x410   :  { %s1338_s13 = vpop.sfrf %1337 }
 0x411   :  { %p1522_p7 = scmp.ne.s32.totalorder %s1338_s13, 0 }
 0x413   :  { %1342 = shalt.err (%p1522_p7)  }
 0x414   :  { %1344 = vsyncmov [#allocation3 + $0x1] }
 0x417   :  { %s1345_s9 = vpop.sfrf %1344 }
 0x418   :  { %p1523_p1 = scmp.ne.s32.totalorder %s1345_s9, 0 }
 0x41a   :  { %1349 = shalt.err (%p1523_p1)  }

</bundles_post_ra>
